<compile_context>
chip_gen: v7x
topology: tpu7x:2x2x1
jax: 0.10.0
libtpu: 0.0.40
codegen_flags: <defaults>
</compile_context>

<pallas_src>
import functools

import jax
import jax.numpy as jnp
from jax import lax
from jax.experimental import pallas as pl
from jax.experimental.pallas import tpu as pltpu


# ------------------------------ fused kernel --------------------------------

def _convnet_kernel(x_ref, wc1_ref, b1_ref, wc2_ref, b2_ref,
                    wfc1_ref, bfc1_ref, wfc2_ref, bfc2_ref, out_ref, *, B):
    dot = functools.partial(jnp.dot, preferred_element_type=jnp.float32)

    x2 = x_ref[0]                                    # (28, 28*B), lane = w*B + b

    # ---- conv1; the 2x height pooling is folded into even/odd banded weight
    # matrices: wc1_ref[p*5+kw] maps input rows h -> pooled output rows. ----
    def conv1_parity(p):
        acc = None
        for kw in range(5):
            xs = x2[:, kw * B:(kw + 24) * B]                   # (28, 24*B)
            t = dot(wc1_ref[p * 5 + kw], xs)                   # (120, 24*B)
            acc = t if acc is None else acc + t
        return acc                                             # rows = c*12 + hp

    mh1 = jnp.maximum(conv1_parity(0), conv1_parity(1))        # (120, 24*B)
    # Width half of the 2x2 max-pool: exact VPU max of lane-shifted slices.
    # Result stays lane-dilated: pooled column wp lives at lane (2*wp)*B.
    mw1 = jnp.maximum(mh1[:, :-B], mh1[:, B:])                 # (120, 23*B)
    p1 = jnp.maximum(mw1 + b1_ref[...], 0.0)                   # (120, 23*B)

    # ---- conv2 (+ fused height pooling), consuming the dilated p1 layout ----
    def conv2_parity(p):
        acc = None
        for kw in range(5):
            ps = p1[:, kw * 2 * B: kw * 2 * B + 15 * B]        # (120, 15*B)
            t = dot(wc2_ref[p * 5 + kw], ps)                   # (80, 15*B)
            acc = t if acc is None else acc + t
        return acc                                             # rows = co*4 + hp

    mh2 = jnp.maximum(conv2_parity(0), conv2_parity(1))        # (80, 15*B)
    mw2 = jnp.maximum(mh2[:, :-2 * B], mh2[:, 2 * B:])         # (80, 13*B)
    p2 = jnp.maximum(mw2 + b2_ref[...], 0.0)                   # (80, 13*B)
    # valid pooled column wp2 in {0..3} lives at lane offset (4*wp2)*B.

    # ---- fc1: (50,80) x (80,B) per pooled-width column, batch on lanes ----
    acc = None
    for w in range(4):
        t = dot(wfc1_ref[w], p2[:, w * 4 * B: w * 4 * B + B])  # (50, B)
        acc = t if acc is None else acc + t
    h1 = jnp.maximum(acc + bfc1_ref[...], 0.0)                 # (50, B)

    # ---- fc2 + log_softmax over the 10 classes (sublane axis) ----
    z = dot(wfc2_ref[...], h1) + bfc2_ref[...]                 # (10, B)
    zmax = jnp.max(z, axis=0, keepdims=True)                   # (1, B)
    lse = jnp.log(jnp.sum(jnp.exp(z - zmax), axis=0, keepdims=True)) + zmax
    out_ref[0] = z - lse                                       # (10, B)


# ----------------------- wrapper-side weight repacking -----------------------

def _banded_conv_mats(w, h_in):
    """For conv weights w (Cout, Cin, 5, 5) of a VALID conv followed by 2x
    height pooling, build matrices M of shape (2*5, Cout*Hp, Cin*Hin) with
      M[p*5 + kw][co*Hp + hp, ci*Hin + h] = w[co, ci, h - (2*hp + p), kw]
    (zero outside the 5-tap band), so that the height/in-channel contraction
    of output rows with parity p becomes one matmul per kernel column kw."""
    c_out, c_in, ksz, _ = w.shape                  # 5x5 kernel
    h_p = (h_in - ksz + 1) // 2
    hp = jnp.arange(h_p)
    h = jnp.arange(h_in)
    mats = []
    for p in range(2):
        k = h[None, :] - (2 * hp[:, None] + p)                  # (h_p, h_in)
        valid = (k >= 0) & (k < ksz)
        g = w[:, :, jnp.clip(k, 0, ksz - 1), :]                 # (co, ci, h_p, h_in, kw)
        g = jnp.where(valid[None, None, :, :, None], g, 0.0)
        g = g.transpose(4, 0, 2, 1, 3).reshape(ksz, c_out * h_p, c_in * h_in)
        mats.append(g)
    return jnp.concatenate(mats, axis=0)           # (10, Cout*Hp, Cin*Hin)


def _compiler_params():
    cls = getattr(pltpu, "CompilerParams", None)
    if cls is None:  # older JAX releases
        cls = getattr(pltpu, "TPUCompilerParams")
    return cls(dimension_semantics=("parallel",))


@functools.partial(jax.jit, static_argnames=("block_b",))
def convnet_forward(x, p, *, block_b=16):
    N, C, H, W = x.shape
    assert (C, H, W) == (1, 28, 28), "ConvNet expects (N, 1, 28, 28) inputs"
    B = block_b
    n_pad = -(-N // B) * B
    g = n_pad // B

    # Batch tile on the lane (minor) dimension: x_t[grp, h, w*B + b].
    xp = jnp.pad(x.reshape(N, 28, 28), ((0, n_pad - N), (0, 0), (0, 0)))
    x_t = xp.reshape(g, B, 28, 28).transpose(0, 2, 3, 1).reshape(g, 28, 28 * B)

    # One-time weight repacking (tiny; fused under jit).
    wc1 = _banded_conv_mats(p["w_conv1"], 28)                 # (10, 120, 28)
    wc2 = _banded_conv_mats(p["w_conv2"], 12)                 # (10, 80, 120)
    b1r = jnp.repeat(p["b_conv1"], 12)[:, None]               # (120, 1)
    b2r = jnp.repeat(p["b_conv2"], 4)[:, None]                # (80, 1)
    wfc1 = (p["w_fc1"].reshape(50, 20, 4, 4)
            .transpose(3, 0, 1, 2).reshape(4, 50, 80))        # (4, 50, 80)
    bfc1 = p["b_fc1"][:, None]                                # (50, 1)
    wfc2 = p["w_fc2"]                                         # (10, 50)
    bfc2 = p["b_fc2"][:, None]                                # (10, 1)

    def full_spec(shape):                 # replicated constant input
        return pl.BlockSpec(shape, lambda n: (0,) * len(shape))

    out = pl.pallas_call(
        functools.partial(_convnet_kernel, B=B),
        out_shape=jax.ShapeDtypeStruct((g, 10, B), jnp.float32),
        grid=(g,),
        in_specs=[
            pl.BlockSpec((1, 28, 28 * B), lambda n: (n, 0, 0)),  # batch tile
            full_spec((10, 120, 28)),
            full_spec((120, 1)),
            full_spec((10, 80, 120)),
            full_spec((80, 1)),
            full_spec((4, 50, 80)),
            full_spec((50, 1)),
            full_spec((10, 50)),
            full_spec((10, 1)),
        ],
        out_specs=pl.BlockSpec((1, 10, B), lambda n: (n, 0, 0)),
        compiler_params=_compiler_params(),
    )(x_t, wc1, b1r, wc2, b2r, wfc1, bfc1, wfc2, bfc2)

    return out.transpose(0, 2, 1).reshape(n_pad, 10)[:N]      # (N, 10)


# --------------------------- pure-JAX reference ------------------------------

def _pool_relu_ref(y):
    n, c, h, w = y.shape
    y = y.reshape(n, c, h // 2, 2, w // 2, 2).max(axis=(3, 5))
    return jnp.maximum(y, 0.0)


def ref_forward(x, p):
    dn = ("NCHW", "OIHW", "NCHW")
    y = lax.conv_general_dilated(x, p["w_conv1"], (1, 1), "VALID",
                                 dimension_numbers=dn,
                                 precision=lax.Precision.HIGHEST)
    y = _pool_relu_ref(y + p["b_conv1"][None, :, None, None])
    y = lax.conv_general_dilated(y, p["w_conv2"], (1, 1), "VALID",
                                 dimension_numbers=dn,
                                 precision=lax.Precision.HIGHEST)
    y = _pool_relu_ref(y + p["b_conv2"][None, :, None, None])
    y = y.reshape(y.shape[0], -1)
    h = jnp.maximum(jnp.dot(y, p["w_fc1"].T, precision=lax.Precision.HIGHEST)
                    + p["b_fc1"], 0.0)
    z = jnp.dot(h, p["w_fc2"].T, precision=lax.Precision.HIGHEST) + p["b_fc2"]
    return jax.nn.log_softmax(z, axis=-1)


# ---------------------------------- main --------------------------------------

def init_params(key):
    ks = jax.random.split(key, 8)
    s = 0.1
    return {
        "w_conv1": jax.random.normal(ks[0], (10, 1, 5, 5), jnp.float32) * s,
        "b_conv1": jax.random.normal(ks[1], (10,), jnp.float32) * s,
        "w_conv2": jax.random.normal(ks[2], (20, 10, 5, 5), jnp.float32) * s,
        "b_conv2": jax.random.normal(ks[3], (20,), jnp.float32) * s,
        "w_fc1":   jax.random.normal(ks[4], (50, 320), jnp.float32) * s,
        "b_fc1":   jax.random.normal(ks[5], (50,), jnp.float32) * s,
        "w_fc2":   jax.random.normal(ks[6], (10, 50), jnp.float32) * s,
        "b_fc2":   jax.random.normal(ks[7], (10,), jnp.float32) * s,
    }


if __name__ == "__main__":
    root = jax.random.PRNGKey(0)
    kx, kp = jax.random.split(root)
    params = init_params(kp)
    # MNIST-style input (28x28x1 is required by the fc1(320) flatten).
    # N=32 with block_b=16 -> grid of 2 batch tiles (both v7x cores busy).
    x = jax.random.normal(kx, (32, 1, 28, 28), jnp.float32)

    out = jax.block_until_ready(convnet_forward(x, params, block_b=16))
    ref = jax.block_until_ready(ref_forward(x, params))

    assert out.shape == (32, 10), out.shape
    max_diff = float(jnp.max(jnp.abs(out - ref)))
    # Kernel weight matmuls use native MXU precision (bf16 inputs, f32
    # accumulate) while the reference runs at f32 HIGHEST; pooling/data
    # movement in the kernel is exact, so only a few 1e-2 of drift remain.
    assert jnp.allclose(out, ref, atol=3e-2, rtol=3e-2), f"max abs diff {max_diff}"
    # rows of log_softmax must sum to 1 after exp
    assert jnp.allclose(jnp.exp(out).sum(axis=-1), 1.0, atol=1e-4)

    # Tail handling: N not a multiple of block_b goes through the zero-padding
    # path (grid of 1); per-sample results must be identical.
    out_tail = jax.block_until_ready(convnet_forward(x[:5], params, block_b=16))
    assert out_tail.shape == (5, 10), out_tail.shape
    assert jnp.allclose(out_tail, ref[:5], atol=3e-2, rtol=3e-2)

    print("KERNEL_OK")
</pallas_src>

<mosaic_0001>
module attributes {stable_mosaic.version = 11 : i64} {
  func.func @_convnet_kernel(%arg0: i32, %arg1: memref<1x28x448xf32, #tpu.memory_space<vmem>>, %arg2: memref<10x120x28xf32, #tpu.memory_space<vmem>>, %arg3: memref<120x1xf32, #tpu.memory_space<vmem>>, %arg4: memref<10x80x120xf32, #tpu.memory_space<vmem>>, %arg5: memref<80x1xf32, #tpu.memory_space<vmem>>, %arg6: memref<4x50x80xf32, #tpu.memory_space<vmem>>, %arg7: memref<50x1xf32, #tpu.memory_space<vmem>>, %arg8: memref<10x50xf32, #tpu.memory_space<vmem>>, %arg9: memref<10x1xf32, #tpu.memory_space<vmem>>, %arg10: memref<1x10x16xf32, #tpu.memory_space<vmem>>) attributes {dimension_semantics = [#tpu.dimension_semantics<parallel>], iteration_bounds = array<i64: 2>, scalar_prefetch = 0 : i64, scratch_operands = 0 : i64, tpu.core_type = #tpu.core_type<tc>, window_params = [{transform_indices = @transform_0, window_bounds = array<i64: 1, 28, 448>}, {pipeline_mode = #tpu.pipeline_mode<synchronous>, transform_indices = @transform_1, window_bounds = array<i64: 10, 120, 28>}, {pipeline_mode = #tpu.pipeline_mode<synchronous>, transform_indices = @transform_2, window_bounds = array<i64: 120, 1>}, {pipeline_mode = #tpu.pipeline_mode<synchronous>, transform_indices = @transform_3, window_bounds = array<i64: 10, 80, 120>}, {pipeline_mode = #tpu.pipeline_mode<synchronous>, transform_indices = @transform_4, window_bounds = array<i64: 80, 1>}, {pipeline_mode = #tpu.pipeline_mode<synchronous>, transform_indices = @transform_5, window_bounds = array<i64: 4, 50, 80>}, {pipeline_mode = #tpu.pipeline_mode<synchronous>, transform_indices = @transform_6, window_bounds = array<i64: 50, 1>}, {pipeline_mode = #tpu.pipeline_mode<synchronous>, transform_indices = @transform_7, window_bounds = array<i64: 10, 50>}, {pipeline_mode = #tpu.pipeline_mode<synchronous>, transform_indices = @transform_8, window_bounds = array<i64: 10, 1>}, {transform_indices = @transform_9, window_bounds = array<i64: 1, 10, 16>}]} {
    %c0 = arith.constant 0 : index
    %c0_0 = arith.constant 0 : index
    %c0_1 = arith.constant 0 : index
    %0 = vector.load %arg1[%c0, %c0_0, %c0_1] : memref<1x28x448xf32, #tpu.memory_space<vmem>>, vector<1x28x448xf32>
    %1 = vector.shape_cast %0 : vector<1x28x448xf32> to vector<28x448xf32>
    %2 = vector.extract_strided_slice %1 {offsets = [0, 0], sizes = [28, 384], strides = [1, 1]} : vector<28x448xf32> to vector<28x384xf32>
    %c0_2 = arith.constant 0 : index
    %c0_3 = arith.constant 0 : index
    %c0_4 = arith.constant 0 : index
    %3 = vector.load %arg2[%c0_2, %c0_3, %c0_4] : memref<10x120x28xf32, #tpu.memory_space<vmem>>, vector<1x120x28xf32>
    %4 = vector.shape_cast %3 : vector<1x120x28xf32> to vector<120x28xf32>
    %cst = arith.constant dense<0.000000e+00> : vector<120x384xf32>
    %5 = tpu.matmul %4, %2, %cst {dimension_numbers = #tpu.dot_dimension_numbers<[1], [0], [0], [1], [0, 0, 1, 1], [], []>} : vector<120x28xf32>, vector<28x384xf32>, vector<120x384xf32> -> vector<120x384xf32>
    %6 = vector.extract_strided_slice %1 {offsets = [0, 16], sizes = [28, 384], strides = [1, 1]} : vector<28x448xf32> to vector<28x384xf32>
    %c1 = arith.constant 1 : index
    %c0_5 = arith.constant 0 : index
    %c0_6 = arith.constant 0 : index
    %7 = vector.load %arg2[%c1, %c0_5, %c0_6] : memref<10x120x28xf32, #tpu.memory_space<vmem>>, vector<1x120x28xf32>
    %8 = vector.shape_cast %7 : vector<1x120x28xf32> to vector<120x28xf32>
    %cst_7 = arith.constant dense<0.000000e+00> : vector<120x384xf32>
    %9 = tpu.matmul %8, %6, %cst_7 {dimension_numbers = #tpu.dot_dimension_numbers<[1], [0], [0], [1], [0, 0, 1, 1], [], []>} : vector<120x28xf32>, vector<28x384xf32>, vector<120x384xf32> -> vector<120x384xf32>
    %10 = arith.addf %5, %9 : vector<120x384xf32>
    %11 = vector.extract_strided_slice %1 {offsets = [0, 32], sizes = [28, 384], strides = [1, 1]} : vector<28x448xf32> to vector<28x384xf32>
    %c2 = arith.constant 2 : index
    %c0_8 = arith.constant 0 : index
    %c0_9 = arith.constant 0 : index
    %12 = vector.load %arg2[%c2, %c0_8, %c0_9] : memref<10x120x28xf32, #tpu.memory_space<vmem>>, vector<1x120x28xf32>
    %13 = vector.shape_cast %12 : vector<1x120x28xf32> to vector<120x28xf32>
    %cst_10 = arith.constant dense<0.000000e+00> : vector<120x384xf32>
    %14 = tpu.matmul %13, %11, %cst_10 {dimension_numbers = #tpu.dot_dimension_numbers<[1], [0], [0], [1], [0, 0, 1, 1], [], []>} : vector<120x28xf32>, vector<28x384xf32>, vector<120x384xf32> -> vector<120x384xf32>
    %15 = arith.addf %10, %14 : vector<120x384xf32>
    %16 = vector.extract_strided_slice %1 {offsets = [0, 48], sizes = [28, 384], strides = [1, 1]} : vector<28x448xf32> to vector<28x384xf32>
    %c3 = arith.constant 3 : index
    %c0_11 = arith.constant 0 : index
    %c0_12 = arith.constant 0 : index
    %17 = vector.load %arg2[%c3, %c0_11, %c0_12] : memref<10x120x28xf32, #tpu.memory_space<vmem>>, vector<1x120x28xf32>
    %18 = vector.shape_cast %17 : vector<1x120x28xf32> to vector<120x28xf32>
    %cst_13 = arith.constant dense<0.000000e+00> : vector<120x384xf32>
    %19 = tpu.matmul %18, %16, %cst_13 {dimension_numbers = #tpu.dot_dimension_numbers<[1], [0], [0], [1], [0, 0, 1, 1], [], []>} : vector<120x28xf32>, vector<28x384xf32>, vector<120x384xf32> -> vector<120x384xf32>
    %20 = arith.addf %15, %19 : vector<120x384xf32>
    %21 = vector.extract_strided_slice %1 {offsets = [0, 64], sizes = [28, 384], strides = [1, 1]} : vector<28x448xf32> to vector<28x384xf32>
    %c4 = arith.constant 4 : index
    %c0_14 = arith.constant 0 : index
    %c0_15 = arith.constant 0 : index
    %22 = vector.load %arg2[%c4, %c0_14, %c0_15] : memref<10x120x28xf32, #tpu.memory_space<vmem>>, vector<1x120x28xf32>
    %23 = vector.shape_cast %22 : vector<1x120x28xf32> to vector<120x28xf32>
    %cst_16 = arith.constant dense<0.000000e+00> : vector<120x384xf32>
    %24 = tpu.matmul %23, %21, %cst_16 {dimension_numbers = #tpu.dot_dimension_numbers<[1], [0], [0], [1], [0, 0, 1, 1], [], []>} : vector<120x28xf32>, vector<28x384xf32>, vector<120x384xf32> -> vector<120x384xf32>
    %25 = arith.addf %20, %24 : vector<120x384xf32>
    %26 = vector.extract_strided_slice %1 {offsets = [0, 0], sizes = [28, 384], strides = [1, 1]} : vector<28x448xf32> to vector<28x384xf32>
    %c5 = arith.constant 5 : index
    %c0_17 = arith.constant 0 : index
    %c0_18 = arith.constant 0 : index
    %27 = vector.load %arg2[%c5, %c0_17, %c0_18] : memref<10x120x28xf32, #tpu.memory_space<vmem>>, vector<1x120x28xf32>
    %28 = vector.shape_cast %27 : vector<1x120x28xf32> to vector<120x28xf32>
    %cst_19 = arith.constant dense<0.000000e+00> : vector<120x384xf32>
    %29 = tpu.matmul %28, %26, %cst_19 {dimension_numbers = #tpu.dot_dimension_numbers<[1], [0], [0], [1], [0, 0, 1, 1], [], []>} : vector<120x28xf32>, vector<28x384xf32>, vector<120x384xf32> -> vector<120x384xf32>
    %30 = vector.extract_strided_slice %1 {offsets = [0, 16], sizes = [28, 384], strides = [1, 1]} : vector<28x448xf32> to vector<28x384xf32>
    %c6 = arith.constant 6 : index
    %c0_20 = arith.constant 0 : index
    %c0_21 = arith.constant 0 : index
    %31 = vector.load %arg2[%c6, %c0_20, %c0_21] : memref<10x120x28xf32, #tpu.memory_space<vmem>>, vector<1x120x28xf32>
    %32 = vector.shape_cast %31 : vector<1x120x28xf32> to vector<120x28xf32>
    %cst_22 = arith.constant dense<0.000000e+00> : vector<120x384xf32>
    %33 = tpu.matmul %32, %30, %cst_22 {dimension_numbers = #tpu.dot_dimension_numbers<[1], [0], [0], [1], [0, 0, 1, 1], [], []>} : vector<120x28xf32>, vector<28x384xf32>, vector<120x384xf32> -> vector<120x384xf32>
    %34 = arith.addf %29, %33 : vector<120x384xf32>
    %35 = vector.extract_strided_slice %1 {offsets = [0, 32], sizes = [28, 384], strides = [1, 1]} : vector<28x448xf32> to vector<28x384xf32>
    %c7 = arith.constant 7 : index
    %c0_23 = arith.constant 0 : index
    %c0_24 = arith.constant 0 : index
    %36 = vector.load %arg2[%c7, %c0_23, %c0_24] : memref<10x120x28xf32, #tpu.memory_space<vmem>>, vector<1x120x28xf32>
    %37 = vector.shape_cast %36 : vector<1x120x28xf32> to vector<120x28xf32>
    %cst_25 = arith.constant dense<0.000000e+00> : vector<120x384xf32>
    %38 = tpu.matmul %37, %35, %cst_25 {dimension_numbers = #tpu.dot_dimension_numbers<[1], [0], [0], [1], [0, 0, 1, 1], [], []>} : vector<120x28xf32>, vector<28x384xf32>, vector<120x384xf32> -> vector<120x384xf32>
    %39 = arith.addf %34, %38 : vector<120x384xf32>
    %40 = vector.extract_strided_slice %1 {offsets = [0, 48], sizes = [28, 384], strides = [1, 1]} : vector<28x448xf32> to vector<28x384xf32>
    %c8 = arith.constant 8 : index
    %c0_26 = arith.constant 0 : index
    %c0_27 = arith.constant 0 : index
    %41 = vector.load %arg2[%c8, %c0_26, %c0_27] : memref<10x120x28xf32, #tpu.memory_space<vmem>>, vector<1x120x28xf32>
    %42 = vector.shape_cast %41 : vector<1x120x28xf32> to vector<120x28xf32>
    %cst_28 = arith.constant dense<0.000000e+00> : vector<120x384xf32>
    %43 = tpu.matmul %42, %40, %cst_28 {dimension_numbers = #tpu.dot_dimension_numbers<[1], [0], [0], [1], [0, 0, 1, 1], [], []>} : vector<120x28xf32>, vector<28x384xf32>, vector<120x384xf32> -> vector<120x384xf32>
    %44 = arith.addf %39, %43 : vector<120x384xf32>
    %45 = vector.extract_strided_slice %1 {offsets = [0, 64], sizes = [28, 384], strides = [1, 1]} : vector<28x448xf32> to vector<28x384xf32>
    %c9 = arith.constant 9 : index
    %c0_29 = arith.constant 0 : index
    %c0_30 = arith.constant 0 : index
    %46 = vector.load %arg2[%c9, %c0_29, %c0_30] : memref<10x120x28xf32, #tpu.memory_space<vmem>>, vector<1x120x28xf32>
    %47 = vector.shape_cast %46 : vector<1x120x28xf32> to vector<120x28xf32>
    %cst_31 = arith.constant dense<0.000000e+00> : vector<120x384xf32>
    %48 = tpu.matmul %47, %45, %cst_31 {dimension_numbers = #tpu.dot_dimension_numbers<[1], [0], [0], [1], [0, 0, 1, 1], [], []>} : vector<120x28xf32>, vector<28x384xf32>, vector<120x384xf32> -> vector<120x384xf32>
    %49 = arith.addf %44, %48 : vector<120x384xf32>
    %50 = arith.maximumf %25, %49 : vector<120x384xf32>
    %51 = vector.extract_strided_slice %50 {offsets = [0, 0], sizes = [120, 368], strides = [1, 1]} : vector<120x384xf32> to vector<120x368xf32>
    %52 = vector.extract_strided_slice %50 {offsets = [0, 16], sizes = [120, 368], strides = [1, 1]} : vector<120x384xf32> to vector<120x368xf32>
    %53 = arith.maximumf %51, %52 : vector<120x368xf32>
    %c0_32 = arith.constant 0 : index
    %c0_33 = arith.constant 0 : index
    %54 = vector.load %arg3[%c0_32, %c0_33] : memref<120x1xf32, #tpu.memory_space<vmem>>, vector<120x1xf32>
    %55 = vector.broadcast %54 : vector<120x1xf32> to vector<120x368xf32>
    %56 = arith.addf %53, %55 : vector<120x368xf32>
    %cst_34 = arith.constant 0.000000e+00 : f32
    %57 = vector.broadcast %cst_34 : f32 to vector<120x368xf32>
    %58 = arith.maximumf %56, %57 : vector<120x368xf32>
    %59 = vector.extract_strided_slice %58 {offsets = [0, 0], sizes = [120, 240], strides = [1, 1]} : vector<120x368xf32> to vector<120x240xf32>
    %c0_35 = arith.constant 0 : index
    %c0_36 = arith.constant 0 : index
    %c0_37 = arith.constant 0 : index
    %60 = vector.load %arg4[%c0_35, %c0_36, %c0_37] : memref<10x80x120xf32, #tpu.memory_space<vmem>>, vector<1x80x120xf32>
    %61 = vector.shape_cast %60 : vector<1x80x120xf32> to vector<80x120xf32>
    %cst_38 = arith.constant dense<0.000000e+00> : vector<80x240xf32>
    %62 = tpu.matmul %61, %59, %cst_38 {dimension_numbers = #tpu.dot_dimension_numbers<[1], [0], [0], [1], [0, 0, 1, 1], [], []>} : vector<80x120xf32>, vector<120x240xf32>, vector<80x240xf32> -> vector<80x240xf32>
    %63 = vector.extract_strided_slice %58 {offsets = [0, 32], sizes = [120, 240], strides = [1, 1]} : vector<120x368xf32> to vector<120x240xf32>
    %c1_39 = arith.constant 1 : index
    %c0_40 = arith.constant 0 : index
    %c0_41 = arith.constant 0 : index
    %64 = vector.load %arg4[%c1_39, %c0_40, %c0_41] : memref<10x80x120xf32, #tpu.memory_space<vmem>>, vector<1x80x120xf32>
    %65 = vector.shape_cast %64 : vector<1x80x120xf32> to vector<80x120xf32>
    %cst_42 = arith.constant dense<0.000000e+00> : vector<80x240xf32>
    %66 = tpu.matmul %65, %63, %cst_42 {dimension_numbers = #tpu.dot_dimension_numbers<[1], [0], [0], [1], [0, 0, 1, 1], [], []>} : vector<80x120xf32>, vector<120x240xf32>, vector<80x240xf32> -> vector<80x240xf32>
    %67 = arith.addf %62, %66 : vector<80x240xf32>
    %68 = vector.extract_strided_slice %58 {offsets = [0, 64], sizes = [120, 240], strides = [1, 1]} : vector<120x368xf32> to vector<120x240xf32>
    %c2_43 = arith.constant 2 : index
    %c0_44 = arith.constant 0 : index
    %c0_45 = arith.constant 0 : index
    %69 = vector.load %arg4[%c2_43, %c0_44, %c0_45] : memref<10x80x120xf32, #tpu.memory_space<vmem>>, vector<1x80x120xf32>
    %70 = vector.shape_cast %69 : vector<1x80x120xf32> to vector<80x120xf32>
    %cst_46 = arith.constant dense<0.000000e+00> : vector<80x240xf32>
    %71 = tpu.matmul %70, %68, %cst_46 {dimension_numbers = #tpu.dot_dimension_numbers<[1], [0], [0], [1], [0, 0, 1, 1], [], []>} : vector<80x120xf32>, vector<120x240xf32>, vector<80x240xf32> -> vector<80x240xf32>
    %72 = arith.addf %67, %71 : vector<80x240xf32>
    %73 = vector.extract_strided_slice %58 {offsets = [0, 96], sizes = [120, 240], strides = [1, 1]} : vector<120x368xf32> to vector<120x240xf32>
    %c3_47 = arith.constant 3 : index
    %c0_48 = arith.constant 0 : index
    %c0_49 = arith.constant 0 : index
    %74 = vector.load %arg4[%c3_47, %c0_48, %c0_49] : memref<10x80x120xf32, #tpu.memory_space<vmem>>, vector<1x80x120xf32>
    %75 = vector.shape_cast %74 : vector<1x80x120xf32> to vector<80x120xf32>
    %cst_50 = arith.constant dense<0.000000e+00> : vector<80x240xf32>
    %76 = tpu.matmul %75, %73, %cst_50 {dimension_numbers = #tpu.dot_dimension_numbers<[1], [0], [0], [1], [0, 0, 1, 1], [], []>} : vector<80x120xf32>, vector<120x240xf32>, vector<80x240xf32> -> vector<80x240xf32>
    %77 = arith.addf %72, %76 : vector<80x240xf32>
    %78 = vector.extract_strided_slice %58 {offsets = [0, 128], sizes = [120, 240], strides = [1, 1]} : vector<120x368xf32> to vector<120x240xf32>
    %c4_51 = arith.constant 4 : index
    %c0_52 = arith.constant 0 : index
    %c0_53 = arith.constant 0 : index
    %79 = vector.load %arg4[%c4_51, %c0_52, %c0_53] : memref<10x80x120xf32, #tpu.memory_space<vmem>>, vector<1x80x120xf32>
    %80 = vector.shape_cast %79 : vector<1x80x120xf32> to vector<80x120xf32>
    %cst_54 = arith.constant dense<0.000000e+00> : vector<80x240xf32>
    %81 = tpu.matmul %80, %78, %cst_54 {dimension_numbers = #tpu.dot_dimension_numbers<[1], [0], [0], [1], [0, 0, 1, 1], [], []>} : vector<80x120xf32>, vector<120x240xf32>, vector<80x240xf32> -> vector<80x240xf32>
    %82 = arith.addf %77, %81 : vector<80x240xf32>
    %83 = vector.extract_strided_slice %58 {offsets = [0, 0], sizes = [120, 240], strides = [1, 1]} : vector<120x368xf32> to vector<120x240xf32>
    %c5_55 = arith.constant 5 : index
    %c0_56 = arith.constant 0 : index
    %c0_57 = arith.constant 0 : index
    %84 = vector.load %arg4[%c5_55, %c0_56, %c0_57] : memref<10x80x120xf32, #tpu.memory_space<vmem>>, vector<1x80x120xf32>
    %85 = vector.shape_cast %84 : vector<1x80x120xf32> to vector<80x120xf32>
    %cst_58 = arith.constant dense<0.000000e+00> : vector<80x240xf32>
    %86 = tpu.matmul %85, %83, %cst_58 {dimension_numbers = #tpu.dot_dimension_numbers<[1], [0], [0], [1], [0, 0, 1, 1], [], []>} : vector<80x120xf32>, vector<120x240xf32>, vector<80x240xf32> -> vector<80x240xf32>
    %87 = vector.extract_strided_slice %58 {offsets = [0, 32], sizes = [120, 240], strides = [1, 1]} : vector<120x368xf32> to vector<120x240xf32>
    %c6_59 = arith.constant 6 : index
    %c0_60 = arith.constant 0 : index
    %c0_61 = arith.constant 0 : index
    %88 = vector.load %arg4[%c6_59, %c0_60, %c0_61] : memref<10x80x120xf32, #tpu.memory_space<vmem>>, vector<1x80x120xf32>
    %89 = vector.shape_cast %88 : vector<1x80x120xf32> to vector<80x120xf32>
    %cst_62 = arith.constant dense<0.000000e+00> : vector<80x240xf32>
    %90 = tpu.matmul %89, %87, %cst_62 {dimension_numbers = #tpu.dot_dimension_numbers<[1], [0], [0], [1], [0, 0, 1, 1], [], []>} : vector<80x120xf32>, vector<120x240xf32>, vector<80x240xf32> -> vector<80x240xf32>
    %91 = arith.addf %86, %90 : vector<80x240xf32>
    %92 = vector.extract_strided_slice %58 {offsets = [0, 64], sizes = [120, 240], strides = [1, 1]} : vector<120x368xf32> to vector<120x240xf32>
    %c7_63 = arith.constant 7 : index
    %c0_64 = arith.constant 0 : index
    %c0_65 = arith.constant 0 : index
    %93 = vector.load %arg4[%c7_63, %c0_64, %c0_65] : memref<10x80x120xf32, #tpu.memory_space<vmem>>, vector<1x80x120xf32>
    %94 = vector.shape_cast %93 : vector<1x80x120xf32> to vector<80x120xf32>
    %cst_66 = arith.constant dense<0.000000e+00> : vector<80x240xf32>
    %95 = tpu.matmul %94, %92, %cst_66 {dimension_numbers = #tpu.dot_dimension_numbers<[1], [0], [0], [1], [0, 0, 1, 1], [], []>} : vector<80x120xf32>, vector<120x240xf32>, vector<80x240xf32> -> vector<80x240xf32>
    %96 = arith.addf %91, %95 : vector<80x240xf32>
    %97 = vector.extract_strided_slice %58 {offsets = [0, 96], sizes = [120, 240], strides = [1, 1]} : vector<120x368xf32> to vector<120x240xf32>
    %c8_67 = arith.constant 8 : index
    %c0_68 = arith.constant 0 : index
    %c0_69 = arith.constant 0 : index
    %98 = vector.load %arg4[%c8_67, %c0_68, %c0_69] : memref<10x80x120xf32, #tpu.memory_space<vmem>>, vector<1x80x120xf32>
    %99 = vector.shape_cast %98 : vector<1x80x120xf32> to vector<80x120xf32>
    %cst_70 = arith.constant dense<0.000000e+00> : vector<80x240xf32>
    %100 = tpu.matmul %99, %97, %cst_70 {dimension_numbers = #tpu.dot_dimension_numbers<[1], [0], [0], [1], [0, 0, 1, 1], [], []>} : vector<80x120xf32>, vector<120x240xf32>, vector<80x240xf32> -> vector<80x240xf32>
    %101 = arith.addf %96, %100 : vector<80x240xf32>
    %102 = vector.extract_strided_slice %58 {offsets = [0, 128], sizes = [120, 240], strides = [1, 1]} : vector<120x368xf32> to vector<120x240xf32>
    %c9_71 = arith.constant 9 : index
    %c0_72 = arith.constant 0 : index
    %c0_73 = arith.constant 0 : index
    %103 = vector.load %arg4[%c9_71, %c0_72, %c0_73] : memref<10x80x120xf32, #tpu.memory_space<vmem>>, vector<1x80x120xf32>
    %104 = vector.shape_cast %103 : vector<1x80x120xf32> to vector<80x120xf32>
    %cst_74 = arith.constant dense<0.000000e+00> : vector<80x240xf32>
    %105 = tpu.matmul %104, %102, %cst_74 {dimension_numbers = #tpu.dot_dimension_numbers<[1], [0], [0], [1], [0, 0, 1, 1], [], []>} : vector<80x120xf32>, vector<120x240xf32>, vector<80x240xf32> -> vector<80x240xf32>
    %106 = arith.addf %101, %105 : vector<80x240xf32>
    %107 = arith.maximumf %82, %106 : vector<80x240xf32>
    %108 = vector.extract_strided_slice %107 {offsets = [0, 0], sizes = [80, 208], strides = [1, 1]} : vector<80x240xf32> to vector<80x208xf32>
    %109 = vector.extract_strided_slice %107 {offsets = [0, 32], sizes = [80, 208], strides = [1, 1]} : vector<80x240xf32> to vector<80x208xf32>
    %110 = arith.maximumf %108, %109 : vector<80x208xf32>
    %c0_75 = arith.constant 0 : index
    %c0_76 = arith.constant 0 : index
    %111 = vector.load %arg5[%c0_75, %c0_76] : memref<80x1xf32, #tpu.memory_space<vmem>>, vector<80x1xf32>
    %112 = vector.broadcast %111 : vector<80x1xf32> to vector<80x208xf32>
    %113 = arith.addf %110, %112 : vector<80x208xf32>
    %cst_77 = arith.constant 0.000000e+00 : f32
    %114 = vector.broadcast %cst_77 : f32 to vector<80x208xf32>
    %115 = arith.maximumf %113, %114 : vector<80x208xf32>
    %c0_78 = arith.constant 0 : index
    %c0_79 = arith.constant 0 : index
    %c0_80 = arith.constant 0 : index
    %116 = vector.load %arg6[%c0_78, %c0_79, %c0_80] : memref<4x50x80xf32, #tpu.memory_space<vmem>>, vector<1x50x80xf32>
    %117 = vector.shape_cast %116 : vector<1x50x80xf32> to vector<50x80xf32>
    %118 = vector.extract_strided_slice %115 {offsets = [0, 0], sizes = [80, 16], strides = [1, 1]} : vector<80x208xf32> to vector<80x16xf32>
    %cst_81 = arith.constant dense<0.000000e+00> : vector<50x16xf32>
    %119 = tpu.matmul %117, %118, %cst_81 {dimension_numbers = #tpu.dot_dimension_numbers<[1], [0], [0], [1], [0, 0, 1, 1], [], []>} : vector<50x80xf32>, vector<80x16xf32>, vector<50x16xf32> -> vector<50x16xf32>
    %c1_82 = arith.constant 1 : index
    %c0_83 = arith.constant 0 : index
    %c0_84 = arith.constant 0 : index
    %120 = vector.load %arg6[%c1_82, %c0_83, %c0_84] : memref<4x50x80xf32, #tpu.memory_space<vmem>>, vector<1x50x80xf32>
    %121 = vector.shape_cast %120 : vector<1x50x80xf32> to vector<50x80xf32>
    %122 = vector.extract_strided_slice %115 {offsets = [0, 64], sizes = [80, 16], strides = [1, 1]} : vector<80x208xf32> to vector<80x16xf32>
    %cst_85 = arith.constant dense<0.000000e+00> : vector<50x16xf32>
    %123 = tpu.matmul %121, %122, %cst_85 {dimension_numbers = #tpu.dot_dimension_numbers<[1], [0], [0], [1], [0, 0, 1, 1], [], []>} : vector<50x80xf32>, vector<80x16xf32>, vector<50x16xf32> -> vector<50x16xf32>
    %124 = arith.addf %119, %123 : vector<50x16xf32>
    %c2_86 = arith.constant 2 : index
    %c0_87 = arith.constant 0 : index
    %c0_88 = arith.constant 0 : index
    %125 = vector.load %arg6[%c2_86, %c0_87, %c0_88] : memref<4x50x80xf32, #tpu.memory_space<vmem>>, vector<1x50x80xf32>
    %126 = vector.shape_cast %125 : vector<1x50x80xf32> to vector<50x80xf32>
    %127 = vector.extract_strided_slice %115 {offsets = [0, 128], sizes = [80, 16], strides = [1, 1]} : vector<80x208xf32> to vector<80x16xf32>
    %cst_89 = arith.constant dense<0.000000e+00> : vector<50x16xf32>
    %128 = tpu.matmul %126, %127, %cst_89 {dimension_numbers = #tpu.dot_dimension_numbers<[1], [0], [0], [1], [0, 0, 1, 1], [], []>} : vector<50x80xf32>, vector<80x16xf32>, vector<50x16xf32> -> vector<50x16xf32>
    %129 = arith.addf %124, %128 : vector<50x16xf32>
    %c3_90 = arith.constant 3 : index
    %c0_91 = arith.constant 0 : index
    %c0_92 = arith.constant 0 : index
    %130 = vector.load %arg6[%c3_90, %c0_91, %c0_92] : memref<4x50x80xf32, #tpu.memory_space<vmem>>, vector<1x50x80xf32>
    %131 = vector.shape_cast %130 : vector<1x50x80xf32> to vector<50x80xf32>
    %132 = vector.extract_strided_slice %115 {offsets = [0, 192], sizes = [80, 16], strides = [1, 1]} : vector<80x208xf32> to vector<80x16xf32>
    %cst_93 = arith.constant dense<0.000000e+00> : vector<50x16xf32>
    %133 = tpu.matmul %131, %132, %cst_93 {dimension_numbers = #tpu.dot_dimension_numbers<[1], [0], [0], [1], [0, 0, 1, 1], [], []>} : vector<50x80xf32>, vector<80x16xf32>, vector<50x16xf32> -> vector<50x16xf32>
    %134 = arith.addf %129, %133 : vector<50x16xf32>
    %c0_94 = arith.constant 0 : index
    %c0_95 = arith.constant 0 : index
    %135 = vector.load %arg7[%c0_94, %c0_95] : memref<50x1xf32, #tpu.memory_space<vmem>>, vector<50x1xf32>
    %136 = vector.broadcast %135 : vector<50x1xf32> to vector<50x16xf32>
    %137 = arith.addf %134, %136 : vector<50x16xf32>
    %cst_96 = arith.constant 0.000000e+00 : f32
    %138 = vector.broadcast %cst_96 : f32 to vector<50x16xf32>
    %139 = arith.maximumf %137, %138 : vector<50x16xf32>
    %c0_97 = arith.constant 0 : index
    %c0_98 = arith.constant 0 : index
    %140 = vector.load %arg8[%c0_97, %c0_98] : memref<10x50xf32, #tpu.memory_space<vmem>>, vector<10x50xf32>
    %cst_99 = arith.constant dense<0.000000e+00> : vector<10x16xf32>
    %141 = tpu.matmul %140, %139, %cst_99 {dimension_numbers = #tpu.dot_dimension_numbers<[1], [0], [0], [1], [0, 0, 1, 1], [], []>} : vector<10x50xf32>, vector<50x16xf32>, vector<10x16xf32> -> vector<10x16xf32>
    %c0_100 = arith.constant 0 : index
    %c0_101 = arith.constant 0 : index
    %142 = vector.load %arg9[%c0_100, %c0_101] : memref<10x1xf32, #tpu.memory_space<vmem>>, vector<10x1xf32>
    %143 = vector.broadcast %142 : vector<10x1xf32> to vector<10x16xf32>
    %144 = arith.addf %141, %143 : vector<10x16xf32>
    %cst_102 = arith.constant dense<0xFF800000> : vector<16xf32>
    %145 = vector.multi_reduction <maximumf>, %144, %cst_102 [0] : vector<10x16xf32> to vector<16xf32>
    %146 = vector.shape_cast %145 : vector<16xf32> to vector<1x16xf32>
    %147 = vector.broadcast %146 : vector<1x16xf32> to vector<10x16xf32>
    %148 = arith.subf %144, %147 : vector<10x16xf32>
    %149 = math.exp %148 : vector<10x16xf32>
    %cst_103 = arith.constant dense<0.000000e+00> : vector<16xf32>
    %150 = vector.multi_reduction <add>, %149, %cst_103 [0] : vector<10x16xf32> to vector<16xf32>
    %151 = vector.shape_cast %150 : vector<16xf32> to vector<1x16xf32>
    %152 = math.log %151 : vector<1x16xf32>
    %153 = arith.addf %152, %146 : vector<1x16xf32>
    %154 = vector.broadcast %153 : vector<1x16xf32> to vector<10x16xf32>
    %155 = arith.subf %144, %154 : vector<10x16xf32>
    %c0_104 = arith.constant 0 : index
    %c0_105 = arith.constant 0 : index
    %c0_106 = arith.constant 0 : index
    %156 = vector.load %arg10[%c0_104, %c0_105, %c0_106] : memref<1x10x16xf32, #tpu.memory_space<vmem>>, vector<1x10x16xf32>
    %157 = vector.shape_cast %156 : vector<1x10x16xf32> to vector<10x16xf32>
    %158 = vector.shape_cast %155 : vector<10x16xf32> to vector<1x10x16xf32>
    tpu.vector_store %arg10[%c0_104, %c0_105, %c0_106], %158 {strides = array<i32>} : memref<1x10x16xf32, #tpu.memory_space<vmem>>, vector<1x10x16xf32>,
    return
  }
  func.func @transform_0(%arg0: i32) -> (i32, i32, i32) {
    %c0_i32 = arith.constant 0 : i32
    %c0_i32_0 = arith.constant 0 : i32
    %c0_i32_1 = arith.constant 0 : i32
    return %arg0, %c0_i32, %c0_i32_0 : i32, i32, i32
  }
  func.func @transform_1(%arg0: i32) -> (i32, i32, i32) {
    %c0_i32 = arith.constant 0 : i32
    %c0_i32_0 = arith.constant 0 : i32
    %c0_i32_1 = arith.constant 0 : i32
    %c0_i32_2 = arith.constant 0 : i32
    return %c0_i32, %c0_i32_0, %c0_i32_1 : i32, i32, i32
  }
  func.func @transform_2(%arg0: i32) -> (i32, i32) {
    %c0_i32 = arith.constant 0 : i32
    %c0_i32_0 = arith.constant 0 : i32
    %c0_i32_1 = arith.constant 0 : i32
    return %c0_i32, %c0_i32_0 : i32, i32
  }
  func.func @transform_3(%arg0: i32) -> (i32, i32, i32) {
    %c0_i32 = arith.constant 0 : i32
    %c0_i32_0 = arith.constant 0 : i32
    %c0_i32_1 = arith.constant 0 : i32
    %c0_i32_2 = arith.constant 0 : i32
    return %c0_i32, %c0_i32_0, %c0_i32_1 : i32, i32, i32
  }
  func.func @transform_4(%arg0: i32) -> (i32, i32) {
    %c0_i32 = arith.constant 0 : i32
    %c0_i32_0 = arith.constant 0 : i32
    %c0_i32_1 = arith.constant 0 : i32
    return %c0_i32, %c0_i32_0 : i32, i32
  }
  func.func @transform_5(%arg0: i32) -> (i32, i32, i32) {
    %c0_i32 = arith.constant 0 : i32
    %c0_i32_0 = arith.constant 0 : i32
    %c0_i32_1 = arith.constant 0 : i32
    %c0_i32_2 = arith.constant 0 : i32
    return %c0_i32, %c0_i32_0, %c0_i32_1 : i32, i32, i32
  }
  func.func @transform_6(%arg0: i32) -> (i32, i32) {
    %c0_i32 = arith.constant 0 : i32
    %c0_i32_0 = arith.constant 0 : i32
    %c0_i32_1 = arith.constant 0 : i32
    return %c0_i32, %c0_i32_0 : i32, i32
  }
  func.func @transform_7(%arg0: i32) -> (i32, i32) {
    %c0_i32 = arith.constant 0 : i32
    %c0_i32_0 = arith.constant 0 : i32
    %c0_i32_1 = arith.constant 0 : i32
    return %c0_i32, %c0_i32_0 : i32, i32
  }
  func.func @transform_8(%arg0: i32) -> (i32, i32) {
    %c0_i32 = arith.constant 0 : i32
    %c0_i32_0 = arith.constant 0 : i32
    %c0_i32_1 = arith.constant 0 : i32
    return %c0_i32, %c0_i32_0 : i32, i32
  }
  func.func @transform_9(%arg0: i32) -> (i32, i32, i32) {
    %c0_i32 = arith.constant 0 : i32
    %c0_i32_0 = arith.constant 0 : i32
    %c0_i32_1 = arith.constant 0 : i32
    return %arg0, %c0_i32, %c0_i32_0 : i32, i32, i32
  }
}

</mosaic_0001>

<bundles_post_ra>
// kernel: convnet_forward.1
= control target key start
LH: loop header
LB: loop body
LE: loop exit
PB: predicated region body
PF: predicated region fallthrough
CT: control target
= control target key end

     0   :  { %s11760_s30 = smov 0   ;;  %s15352_s0 = inlined_call_operand.vmem [shape: f32[2,28,448], index: 0, kind: input, shape index: {}]   ;;  %s15353_s1 = inlined_call_operand.vmem [shape: f32[10,120,28], index: 1, kind: input, shape index: {}]   ;;  %s15354_s2 = inlined_call_operand.vmem [shape: f32[120,1], index: 2, kind: input, shape index: {}]   ;;  %s15355_s3 = inlined_call_operand.vmem [shape: f32[10,80,120], index: 3, kind: input, shape index: {}]   ;;  %s15356_s4 = inlined_call_operand.vmem [shape: f32[80,1], index: 4, kind: input, shape index: {}]   ;;  %s15357_s5 = inlined_call_operand.vmem [shape: f32[4,50,80], index: 5, kind: input, shape index: {}]   ;;  %s15358_s6 = inlined_call_operand.vmem [shape: f32[50,1], index: 6, kind: input, shape index: {}]   ;;  %s15359_s7 = inlined_call_operand.vmem [shape: f32[10,50], index: 7, kind: input, shape index: {}]   ;;  %s15360_s8 = inlined_call_operand.vmem [shape: f32[10,1], index: 8, kind: input, shape index: {}]   ;;  %s15361_s9 = inlined_call_operand.vmem [shape: f32[2,10,16], index: 9, kind: output, shape index: {}]  }
   0x1 LB: > { %s8281_s10 = sadd.s32 4294967295, %s11698_s30   ;;  %p8285_p0 = scmp.ge.s32.totalorder %s11698_s30, 1  ;;  %s11698_s30 = sphi %s11760_s30, %s19_s30  }
   0x2   : > { %p287_p1 = scmp.lt.s32.totalorder %s11698_s30, 3 }
   0x4   : > { %p288_p2 = pnand %p8285_p0, %p287_p1 }
   0x6   : > { %291 = sbr.rel (%p288_p2) target bundleno = 2469 (0x9a5), region = 56 }
   0xd   : > { %p323_p3 = scmp.lt.s32.totalorder %s8281_s10, 1  ;;  %v15362_v0 = vmov 0.0|0.0   ;;  %s11701_s15 = smov 112   ;;  %v15364_v23 = vmov 0.0   ;;  %vm11703_vm0 = vmmov 0   ;;  %vm428_vm1 = vcmask 916480  }
   0xe   : > { %9989 = vmatprep.subr.bf16.mxu1 %v15362_v0  ;;  %567 = vmatprep.mubr.f32.mxu0 %v15364_v23  ;;  %s11704_s16 = smov 96   ;;  %s11705_s17 = smov 80   ;;  %vm496_vm2 = vcmask 1043456   ;;  %vm11707_vm3 = vmmov 1   ;;  %vm450_vm5 = vcmask 228352   ;;  %vm1192_vm6 = vcmask 785408  }
   0xf   : > { %s15413_s10 = smov (!%p323_p3, %s8281_s10), 1  ;;  %9276 = vmatprep.mubr.msk.f32.mxu1 %vm11703_vm0, %v15364_v23  ;;  %s11706_s18 = smov 64   ;;  %vm11844_vm4 = vmpackc.low %vm496_vm2, %vm11707_vm3  ;;  %vm1653_vm7 = vcmask 654336   ;;  %vm2114_vm8 = vcmask 523264   ;;  %v4750_v59 = vld [vmem:[%s15354_s2 + $0x40] sm:$0xff]  ;;  %vm5138_vm9 = vcmask 982016  }
  0x10   : > { %s8999_s11 = sshll.u32 %s15413_s10, 7  ;;  %vm5886_vm10 = vcmask 261120   ;;  %vm8107_vm11 = vcmask 408576   ;;  %vm8114_vm12 = vcmask 1041408   ;;  %vm8195_vm13 = vcmask 123904   ;;  %s9000_s29 = sshll.u32 %s15413_s10, 4 }
  0x11   : > { %s327_s14 = scalar_lea.vmem %s15352_s0, %s8999_s11  ;;  %vm8193_vm14 = vcmask 130048   ;;  %s332_s13 = scalar_lea.vmem %s15361_s9, %s9000_s29 }
  0x12   : > { %v334_v1 = vld [vmem:[%s327_s14 + $0x8] sm:$0xff]  ;;  %v335_v2 = vld [vmem:[%s327_s14 + $0x10] sm:$0xff]  ;;  %v333_v3 = vld [vmem:[%s327_s14] sm:$0xff] }
  0x13   : > { %v11159_v4 = vpack.i.bf16 %v335_v2, %v334_v1  ;;  %v337_v5 = vld [vmem:[%s327_s14 + $0x20] sm:$0xff]  ;;  %v338_v6 = vld [vmem:[%s327_s14 + $0x28] sm:$0xff]  ;;  %v339_v7 = vld [vmem:[%s327_s14 + $0x30] sm:$0xff] }
  0x14   : > { %v11169_v8 = vpack.i.bf16 %v337_v5, %v333_v3  ;;  %v336_v9 = vld [vmem:[%s327_s14 + $0x18] sm:$0xff]  ;;  %v11164_v11 = vpack.i.bf16 %v339_v7, %v338_v6  ;;  %v11777_v13 = vld [vmem:[%s327_s14 + $0x48] sm:$0xff]  ;;  %v11779_v14 = vld [vmem:[%s327_s14 + $0x50] sm:$0xff]  ;;  %v11805_v26 = vpack.c.bf16 %v338_v6, %v334_v1  ;;  %v11807_v27 = vpack.c.bf16 %v337_v5, %v333_v3 }
  0x15   : > { %v340_v10 = vld [vmem:[%s327_s14 + $0x38] sm:$0xff]  ;;  %11160 = vrot.lane.b32.xlu0 %v11159_v4, %s11701_s15  ;;  %v11781_v15 = vld [vmem:[%s327_s14 + $0x68] sm:$0xf]  ;;  %v11783_v16 = vld [vmem:[%s327_s14 + $0x70] sm:$0xf]  ;;  %v11179_v17 = vpack.i.bf16 %v11779_v14, %v11777_v13  ;;  %v11816_v28 = vpack.c.bf16 %v339_v7, %v335_v2 }
  0x16   : > { %11170 = vrot.lane.b32.xlu1 %v11169_v8, %s11701_s15  ;;  %v11174_v12 = vpack.i.bf16 %v340_v10, %v336_v9  ;;  %v11184_v18 = vpack.i.bf16 %v11783_v16, %v11781_v15  ;;  %v11791_v19 = vld [vmem:[%s327_s14 + $0x40] sm:$0xff]  ;;  %v344_v21 = vld [vmem:[%s327_s14 + $0x58] sm:$0xff] }
  0x17   : > { %v11793_v20 = vld [vmem:[%s327_s14 + $0x60] sm:$0xf]  ;;  %v348_v22 = vld [vmem:[%s327_s14 + $0x78] sm:$0xf] }
  0x18   : > { %v11189_v24 = vpack.i.bf16 %v11793_v20, %v11791_v19  ;;  %v11194_v25 = vpack.i.bf16 %v348_v22, %v344_v21  ;;  %v11883_v22 = vpack.c.bf16 %v11781_v15, %v11777_v13  ;;  %v8291_v13 = vld [vmem:[%s15353_s1 + $0x80] sm:$0xff]  ;;  %v11906_v15 = vpack.c.bf16 %v11793_v20, %v11791_v19  ;;  %v8292_v19 = vld [vmem:[%s15353_s1 + $0x88] sm:$0xff] }
  0x19   : > { %11165 = vrot.lane.b32.xlu0 %v11164_v11, %s11701_s15  ;;  %v8295_v20 = vld [vmem:[%s15353_s1 + $0xa0] sm:$0xff] }
  0x1a   : > { %11175 = vrot.lane.b32.xlu1 %v11174_v12, %s11701_s15 }
  0x1d   : > { %11180 = vrot.lane.b32.xlu0 %v11179_v17, %s11701_s15 }
  0x1e   : > { %11185 = vrot.lane.b32.xlu1 %v11184_v18, %s11701_s15 }
  0x21   : > { %11190 = vrot.lane.b32.xlu0 %v11189_v24, %s11701_s15 }
  0x22   : > { %11195 = vrot.lane.b32.xlu1 %v11194_v25, %s11701_s15 }
  0x25   : > { %11200 = vrot.lane.b32.xlu0 %v11159_v4, %s11704_s16 }
  0x26   : > { %11205 = vrot.lane.b32.xlu1 %v11164_v11, %s11704_s16 }
  0x29   : > { %11210 = vrot.lane.b32.xlu0 %v11169_v8, %s11704_s16 }
  0x2a   : > { %11215 = vrot.lane.b32.xlu1 %v11174_v12, %s11704_s16 }
  0x2d   : > { %11220 = vrot.lane.b32.xlu0 %v11179_v17, %s11704_s16 }
  0x2e   : > { %11225 = vrot.lane.b32.xlu1 %v11184_v18, %s11704_s16 }
  0x31   : > { %11230 = vrot.lane.b32.xlu0 %v11189_v24, %s11704_s16 }
  0x32   : > { %11235 = vrot.lane.b32.xlu1 %v11194_v25, %s11704_s16 }
  0x35   : > { %11240 = vrot.lane.b32.xlu0 %v11159_v4, %s11705_s17 }
  0x36   : > { %11245 = vrot.lane.b32.xlu1 %v11164_v11, %s11705_s17 }
  0x39   : > { %11250 = vrot.lane.b32.xlu0 %v11169_v8, %s11705_s17 }
  0x3a   : > { %11255 = vrot.lane.b32.xlu1 %v11174_v12, %s11705_s17 }
  0x3d   : > { %11260 = vrot.lane.b32.xlu0 %v11179_v17, %s11705_s17 }
  0x3e   : > { %11265 = vrot.lane.b32.xlu1 %v11184_v18, %s11705_s17 }
  0x41   : > { %11270 = vrot.lane.b32.xlu0 %v11189_v24, %s11705_s17 }
  0x42   : > { %11275 = vrot.lane.b32.xlu1 %v11194_v25, %s11705_s17 }
  0x45   : > { %11280 = vrot.lane.b32.xlu0 %v11159_v4, %s11706_s18 }
  0x46   : > { %11285 = vrot.lane.b32.xlu1 %v11164_v11, %s11706_s18 }
  0x49   : > { %11290 = vrot.lane.b32.xlu0 %v11169_v8, %s11706_s18 }
  0x4a   : > { %11295 = vrot.lane.b32.xlu1 %v11174_v12, %s11706_s18 }
  0x4d   : > { %11300 = vrot.lane.b32.xlu0 %v11179_v17, %s11706_s18  ;;  %v8290_v17 = vld [vmem:[%s15353_s1 + $0x78] sm:$0xff] }
  0x4e   : > { %11305 = vrot.lane.b32.xlu1 %v11184_v18, %s11706_s18 }
  0x51   : > { %11310 = vrot.lane.b32.xlu0 %v11189_v24, %s11706_s18 }
  0x52   : > { %11315 = vrot.lane.b32.xlu1 %v11194_v25, %s11706_s18 }
  0x87   : > { %v11161_v29 = vpop.permute.xlu0 %11160 }
  0x88   : > { %v11171_v30 = vpop.permute.xlu1 %11170  ;;  %v11163_v31 = vunpack.i.h.bf16 %v11161_v29  ;;  %v11162_v32 = vunpack.i.l.bf16 %v11161_v29  ;;  %v11914_v29 = vpack.c.bf16 %v11783_v16, %v11779_v14  ;;  %v8293_v14 = vld [vmem:[%s15353_s1 + $0x90] sm:$0xff]  ;;  %v8294_v16 = vld [vmem:[%s15353_s1 + $0x98] sm:$0xff] }
  0x89   : > { %v11173_v33 = vunpack.i.h.bf16 %v11171_v30  ;;  %v11172_v34 = vunpack.i.l.bf16 %v11171_v30 }
  0x8a   : > { %v430_v41 = vsel %vm428_vm1, %v11162_v32, %v11163_v31 }
  0x8b   : > { %v11166_v35 = vpop.permute.xlu0 %11165  ;;  %v429_v43 = vsel %vm428_vm1, %v11172_v34, %v11162_v32  ;;  %v8297_v32 = vld [vmem:[%s15353_s1 + $0xb0] sm:$0xff]  ;;  %v8299_v34 = vld [vmem:[%s15353_s1 + $0xc0] sm:$0xff] }
  0x8c   : > { %v11168_v36 = vunpack.i.h.bf16 %v11166_v35  ;;  %v11167_v37 = vunpack.i.l.bf16 %v11166_v35  ;;  %v11176_v38 = vpop.permute.xlu1 %11175  ;;  %v8300_v35 = vld [vmem:[%s15353_s1 + $0xc8] sm:$0xff] }
  0x8d   : > { %v11178_v39 = vunpack.i.h.bf16 %v11176_v38  ;;  %v11177_v40 = vunpack.i.l.bf16 %v11176_v38  ;;  %v8301_v38 = vld [vmem:[%s15353_s1 + $0xd0] sm:$0xff] }
  0x8e   : > { %v433_v42 = vsel %vm428_vm1, %v11167_v37, %v11168_v36  ;;  %v432_v44 = vsel %vm428_vm1, %v11173_v33, %v11167_v37  ;;  %v8298_v33 = vld [vmem:[%s15353_s1 + $0xb8] sm:$0xff] }
  0x8f   : > { %v11181_v45 = vpop.permute.xlu0 %11180  ;;  %v11830_v46 = vpack.c.bf16 %v433_v42, %v430_v41  ;;  %v431_v47 = vsel %vm428_vm1, %v11163_v31, %v11177_v40  ;;  %v434_v48 = vsel %vm428_vm1, %v11168_v36, %v11178_v39  ;;  %v11834_v49 = vpack.c.bf16 %v432_v44, %v429_v43  ;;  %v8296_v31 = vld [vmem:[%s15353_s1 + $0xa8] sm:$0xff]  ;;  %v8302_v39 = vld [vmem:[%s15353_s1 + $0xd8] sm:$0xff]  ;;  %v8303_v42 = vld [vmem:[%s15353_s1 + $0xe0] sm:$0xff] }
  0x90   : > { %v11183_v50 = vunpack.i.h.bf16 %v11181_v45  ;;  %v11182_v51 = vunpack.i.l.bf16 %v11181_v45  ;;  %v11186_v52 = vpop.permute.xlu1 %11185  ;;  %v11836_v53 = vpack.c.bf16 %v434_v48, %v431_v47 }
  0x91   : > { %v11188_v54 = vunpack.i.h.bf16 %v11186_v52  ;;  %v11187_v55 = vunpack.i.l.bf16 %v11186_v52  ;;  %9980 = vmatprep.subr.bf16.mxu0 %v11830_v46 }
  0x92   : > { %v436_v56 = vsel %vm428_vm1, %v11182_v51, %v11183_v50  ;;  %9991 = vmatpush3.bf16.msra.mxu1 %v11836_v53  ;;  %9982 = vmatpush1.bf16.msra.mxu0 %v11834_v49 }
  0x93   : > { %v439_v57 = vsel %vm428_vm1, %v11187_v55, %v11188_v54  ;;  %v11191_v58 = vpop.permute.xlu0 %11190  ;;  %9992 = vmatprep.subr.bf16.mxu1 %v15362_v0 }
  0x94   : > { %v11193_v60 = vunpack.i.h.bf16 %v11191_v58  ;;  %v11192_v61 = vunpack.i.l.bf16 %v11191_v58  ;;  %v11196_v62 = vpop.permute.xlu1 %11195  ;;  %v11849_v63 = vpack.c.bf16 %v439_v57, %v436_v56  ;;  %v8304_v56 = vld [vmem:[%s15353_s1 + $0xe8] sm:$0xff] }
  0x95   : > { %v11198_v1 = vunpack.i.h.bf16 %v11196_v62  ;;  %v11197_v2 = vunpack.i.l.bf16 %v11196_v62 }
  0x96   : > { %v435_v3 = vsel %vm428_vm1, %v11192_v61, %v11182_v51  ;;  %v438_v4 = vsel %vm428_vm1, %v11193_v60, %v11187_v55  ;;  %9985 = vmatprep.subr.msk.bf16.mxu0 %vm11844_vm4, %v11849_v63 }
  0x97   : > { %v437_v5 = vsel %vm428_vm1, %v11183_v50, %v11197_v2  ;;  %v440_v6 = vsel %vm428_vm1, %v11188_v54, %v11198_v1  ;;  %v11858_v7 = vpack.c.bf16 %v438_v4, %v435_v3  ;;  %v11860_v8 = vpop.permute.xlu0 %11200 }
  0x98   : > { %v11862_v9 = vpack.c.bf16 %v440_v6, %v437_v5  ;;  %v11203_v10 = vunpack.i.h.bf16 %v11860_v8  ;;  %v11202_v11 = vunpack.i.l.bf16 %v11860_v8  ;;  %v11866_v12 = vpop.permute.xlu1 %11205 }
  0x99   : > { %9988 = vmatpush1.bf16.msk.msra.mxu0 %vm11844_vm4, %v11858_v7  ;;  %v11208_v18 = vunpack.i.h.bf16 %v11866_v12  ;;  %v11207_v21 = vunpack.i.l.bf16 %v11866_v12 }
  0x9a   : > { %9995 = vmatpush3.bf16.msk.msra.mxu1 %vm11844_vm4, %v11862_v9  ;;  %9997 = vmatprep.subr.bf16.mxu0 %v11805_v26  ;;  %v1194_v24 = vsel %vm1192_vm6, %v11202_v11, %v11203_v10 }
  0x9b   : > { %10006 = vmatprep.subr.bf16.mxu1 %v15362_v0  ;;  %v1197_v25 = vsel %vm1192_vm6, %v11207_v21, %v11208_v18  ;;  %v11211_v36 = vpop.permute.xlu0 %11210 }
  0x9c   : > { %8307 = vmatmul.mubr.msk.f32.vlgmr.msra.gmra.mrb[0].mxu0 %vm450_vm5, %v8290_v17  ;;  %v11916_v30 = vpack.c.bf16 %v1197_v25, %v1194_v24  ;;  %v11216_v37 = vpop.permute.xlu1 %11215  ;;  %v11213_v43 = vunpack.i.h.bf16 %v11211_v36  ;;  %v11212_v44 = vunpack.i.l.bf16 %v11211_v36  ;;  %v351_v36 = vld [vmem:[%s15353_s1 + $0x10] sm:$0xff] }
  0x9d   : > { %9277 = vmatmul.mubr.msk.f32.vlgmr.msra.gmra.mrb[0].mxu1 %vm450_vm5, %v8290_v17  ;;  %573 = vmatprep.mubr.f32.mxu0 %v15364_v23  ;;  %v11218_v45 = vunpack.i.h.bf16 %v11216_v37  ;;  %v11217_v47 = vunpack.i.l.bf16 %v11216_v37  ;;  %v352_v37 = vld [vmem:[%s15353_s1 + $0x18] sm:$0xff] }
  0x9e   : > { %9279 = vmatprep.mubr.msk.f32.mxu1 %vm11703_vm0, %v15364_v23  ;;  %9999 = vmatpush1.bf16.msra.mxu0 %v11807_v27  ;;  %v1193_v57 = vsel %vm1192_vm6, %v11212_v44, %v11202_v11  ;;  %v1196_v58 = vsel %vm1192_vm6, %v11213_v43, %v11207_v21  ;;  %v358_v43 = vld [vmem:[%s15353_s1 + $0x48] sm:$0xff]  ;;  %v359_v44 = vld [vmem:[%s15353_s1 + $0x50] sm:$0xff] }
  0x9f   : > { %10008 = vmatpush3.bf16.msra.mxu1 %v11816_v28  ;;  %10002 = vmatprep.subr.msk.bf16.mxu0 %vm11844_vm4, %v11883_v22  ;;  %v11221_v40 = vpop.permute.xlu0 %11220  ;;  %v1195_v60 = vsel %vm1192_vm6, %v11203_v10, %v11217_v47  ;;  %v1198_v61 = vsel %vm1192_vm6, %v11208_v18, %v11218_v45  ;;  %v349_v18 = vld [vmem:[%s15353_s1] sm:$0xff]  ;;  %v12061_v21 = vpack.c.bf16 %v1196_v58, %v1193_v57 }
  0xa0   : > { %8308 = vmatmul.mubr.msk.f32.gmra.mrb[2].mxu0 %vm450_vm5, %v8291_v13  ;;  %10009 = vmatprep.subr.bf16.mxu1 %v15362_v0  ;;  %v11226_v41 = vpop.permute.xlu1 %11225  ;;  %v11223_v48 = vunpack.i.h.bf16 %v11221_v40  ;;  %v11222_v50 = vunpack.i.l.bf16 %v11221_v40  ;;  %v12063_v24 = vpack.c.bf16 %v1198_v61, %v1195_v60  ;;  %v355_v40 = vld [vmem:[%s15353_s1 + $0x30] sm:$0xff] }
  0xa1   : > { %9280 = vmatmul.mubr.msk.f32.gmra.mrb[2].mxu1 %vm450_vm5, %v8291_v13  ;;  %579 = vmatprep.mubr.f32.mxu0 %v15364_v23  ;;  %v11228_v51 = vunpack.i.h.bf16 %v11226_v41  ;;  %v11227_v52 = vunpack.i.l.bf16 %v11226_v41  ;;  %v356_v41 = vld [vmem:[%s15353_s1 + $0x38] sm:$0xff] }
  0xa2   : > { %9282 = vmatprep.mubr.msk.f32.mxu1 %vm11703_vm0, %v15364_v23  ;;  %10005 = vmatpush1.bf16.msk.msra.mxu0 %vm11844_vm4, %v11906_v15  ;;  %v1200_v62 = vsel %vm1192_vm6, %v11222_v50, %v11223_v48 }
  0xa3   : > { %10012 = vmatpush3.bf16.msk.msra.mxu1 %vm11844_vm4, %v11914_v29  ;;  %10014 = vmatprep.subr.bf16.mxu0 %v11916_v30  ;;  %v11231_v54 = vpop.permute.xlu0 %11230  ;;  %v1203_v1 = vsel %vm1192_vm6, %v11227_v52, %v11228_v51 }
  0xa4   : > { %8309 = vmatmul.mubr.msk.f32.gmra.mrb[4].mxu0 %vm450_vm5, %v8292_v19  ;;  %10023 = vmatprep.subr.bf16.mxu1 %v15362_v0  ;;  %v11236_v55 = vpop.permute.xlu1 %11235  ;;  %v11233_v2 = vunpack.i.h.bf16 %v11231_v54  ;;  %v11232_v3 = vunpack.i.l.bf16 %v11231_v54  ;;  %v362_v54 = vld [vmem:[%s15353_s1 + $0x68] sm:$0xff] }
  0xa5   : > { %9283 = vmatmul.mubr.msk.f32.gmra.mrb[4].mxu1 %vm450_vm5, %v8292_v19  ;;  %585 = vmatprep.mubr.f32.mxu0 %v15364_v23  ;;  %v11238_v4 = vunpack.i.h.bf16 %v11236_v55  ;;  %v11237_v5 = vunpack.i.l.bf16 %v11236_v55  ;;  %v12067_v19 = vpack.c.bf16 %v1203_v1, %v1200_v62 }
  0xa6   : > { %9285 = vmatprep.mubr.msk.f32.mxu1 %vm11703_vm0, %v15364_v23  ;;  %v1199_v25 = vsel %vm1192_vm6, %v11232_v3, %v11222_v50  ;;  %v1202_v13 = vsel %vm1192_vm6, %v11233_v2, %v11227_v52  ;;  %v361_v52 = vld [vmem:[%s15353_s1 + $0x60] sm:$0xff] }
  0xa7   : > { %v12045_v6 = vpop.permute.xlu0 %11240 }
  0xa8   : > { %8310 = vmatmul.mubr.msk.f32.gmra.mrb[6].mxu0 %vm450_vm5, %v8293_v14  ;;  %v12047_v11 = vpop.permute.xlu1 %11245  ;;  %v11243_v8 = vunpack.i.h.bf16 %v12045_v6  ;;  %v11242_v10 = vunpack.i.l.bf16 %v12045_v6 }
  0xa9   : > { %9286 = vmatmul.mubr.msk.f32.gmra.mrb[6].mxu1 %vm450_vm5, %v8293_v14  ;;  %591 = vmatprep.mubr.f32.mxu0 %v15364_v23  ;;  %v11248_v12 = vunpack.i.h.bf16 %v12047_v11  ;;  %v11247_v17 = vunpack.i.l.bf16 %v12047_v11  ;;  %v1201_v14 = vsel %vm1192_vm6, %v11223_v48, %v11237_v5  ;;  %v360_v48 = vld [vmem:[%s15353_s1 + $0x58] sm:$0xff] }
  0xaa   : > { %9288 = vmatprep.mubr.msk.f32.mxu1 %vm11703_vm0, %v15364_v23 }
  0xab   : > { %v11251_v45 = vpop.permute.xlu0 %11250 }
  0xac   : > { %8311 = vmatmul.mubr.msk.f32.gmra.mrb[8].mxu0 %vm450_vm5, %v8294_v16  ;;  %v11256_v47 = vpop.permute.xlu1 %11255  ;;  %v11253_v55 = vunpack.i.h.bf16 %v11251_v45 }
  0xad   : > { %9289 = vmatmul.mubr.msk.f32.gmra.mrb[8].mxu1 %vm450_vm5, %v8294_v16  ;;  %597 = vmatprep.mubr.f32.mxu0 %v15364_v23  ;;  %v1204_v16 = vsel %vm1192_vm6, %v11228_v51, %v11238_v4  ;;  %v11258_v57 = vunpack.i.h.bf16 %v11256_v47  ;;  %v11257_v58 = vunpack.i.l.bf16 %v11256_v47  ;;  %v363_v4 = vld [vmem:[%s15353_s1 + $0x70] sm:$0xff] }
  0xae   : > { %9291 = vmatprep.mubr.msk.f32.mxu1 %vm11703_vm0, %v15364_v23 }
  0xaf   : > { %v11261_v50 = vpop.permute.xlu0 %11260 }
  0xb0   : > { %8312 = vmatmul.mubr.msk.f32.gmra.mrb[10].mxu0 %vm450_vm5, %v8295_v20  ;;  %v11266_v51 = vpop.permute.xlu1 %11265  ;;  %v11263_v62 = vunpack.i.h.bf16 %v11261_v50  ;;  %v11262_v1 = vunpack.i.l.bf16 %v11261_v50 }
  0xb1   : > { %9292 = vmatmul.mubr.msk.f32.gmra.mrb[10].mxu1 %vm450_vm5, %v8295_v20  ;;  %603 = vmatprep.mubr.f32.mxu0 %v15364_v23  ;;  %v1655_v20 = vsel %vm1653_vm7, %v11242_v10, %v11243_v8  ;;  %v11268_v2 = vunpack.i.h.bf16 %v11266_v51  ;;  %v11267_v3 = vunpack.i.l.bf16 %v11266_v51 }
  0xb2   : > { %9294 = vmatprep.mubr.msk.f32.mxu1 %vm11703_vm0, %v15364_v23 }
  0xb3   : > { %v11271_v60 = vpop.permute.xlu0 %11270 }
  0xb4   : > { %8313 = vmatmul.mubr.msk.f32.gmra.mrb[12].mxu0 %vm450_vm5, %v8296_v31  ;;  %v11276_v61 = vpop.permute.xlu1 %11275 }
  0xb5   : > { %9295 = vmatmul.mubr.msk.f32.gmra.mrb[12].mxu1 %vm450_vm5, %v8296_v31  ;;  %609 = vmatprep.mubr.f32.mxu0 %v15364_v23  ;;  %v1658_v31 = vsel %vm1653_vm7, %v11247_v17, %v11248_v12 }
  0xb6   : > { %9297 = vmatprep.mubr.msk.f32.mxu1 %vm11703_vm0, %v15364_v23 }
  0xb8   : > { %8314 = vmatmul.mubr.msk.f32.gmra.mrb[14].mxu0 %vm450_vm5, %v8297_v32 }
  0xb9   : > { %9298 = vmatmul.mubr.msk.f32.gmra.mrb[14].mxu1 %vm450_vm5, %v8297_v32  ;;  %615 = vmatprep.mubr.f32.mxu0 %v15364_v23  ;;  %v350_v32 = vld [vmem:[%s15353_s1 + $0x8] sm:$0xff] }
  0xba   : > { %9300 = vmatprep.mubr.msk.f32.mxu1 %vm11703_vm0, %v15364_v23 }
  0xbc   : > { %8315 = vmatmul.mubr.msk.f32.gmra.mrb[16].mxu0 %vm450_vm5, %v8298_v33 }
  0xbd   : > { %9301 = vmatmul.mubr.msk.f32.gmra.mrb[16].mxu1 %vm450_vm5, %v8298_v33  ;;  %621 = vmatprep.mubr.f32.mxu0 %v15364_v23  ;;  %v12090_v33 = vpack.c.bf16 %v1202_v13, %v1199_v25  ;;  %v1656_v25 = vsel %vm1653_vm7, %v11243_v8, %v11257_v58  ;;  %v1659_v13 = vsel %vm1653_vm7, %v11248_v12, %v11258_v57  ;;  %v8376_v57 = vld [vmem:[%s15353_s1 + $0x118] sm:$0xff]  ;;  %v8377_v58 = vld [vmem:[%s15353_s1 + $0x120] sm:$0xff] }
  0xbe   : > { %9303 = vmatprep.mubr.msk.f32.mxu1 %vm11703_vm0, %v15364_v23 }
  0xc0   : > { %8316 = vmatmul.mubr.msk.f32.gmra.mrb[18].mxu0 %vm450_vm5, %v8299_v34 }
  0xc1   : > { %9304 = vmatmul.mubr.msk.f32.gmra.mrb[18].mxu1 %vm450_vm5, %v8299_v34  ;;  %627 = vmatprep.mubr.f32.mxu0 %v15364_v23  ;;  %v12093_v34 = vpack.c.bf16 %v1204_v16, %v1201_v14  ;;  %v1661_v14 = vsel %vm1653_vm7, %v11262_v1, %v11263_v62  ;;  %v1664_v16 = vsel %vm1653_vm7, %v11267_v3, %v11268_v2 }
  0xc2   : > { %9306 = vmatprep.mubr.msk.f32.mxu1 %vm11703_vm0, %v15364_v23 }
  0xc4   : > { %8317 = vmatmul.mubr.msk.f32.gmra.mrb[20].mxu0 %vm450_vm5, %v8300_v35 }
  0xc5   : > { %9307 = vmatmul.mubr.msk.f32.gmra.mrb[20].mxu1 %vm450_vm5, %v8300_v35  ;;  %633 = vmatprep.mubr.f32.mxu0 %v15364_v23  ;;  %v12098_v35 = vpack.c.bf16 %v1658_v31, %v1655_v20  ;;  %v11272_v20 = vunpack.i.l.bf16 %v11271_v60  ;;  %v11278_v31 = vunpack.i.h.bf16 %v11276_v61 }
  0xc6   : > { %9309 = vmatprep.mubr.msk.f32.mxu1 %vm11703_vm0, %v15364_v23 }
  0xc8   : > { %8318 = vmatmul.mubr.msk.f32.gmra.mrb[22].mxu0 %vm450_vm5, %v8301_v38 }
  0xc9   : > { %9310 = vmatmul.mubr.msk.f32.gmra.mrb[22].mxu1 %vm450_vm5, %v8301_v38  ;;  %639 = vmatprep.mubr.f32.mxu0 %v15364_v23  ;;  %v353_v38 = vld [vmem:[%s15353_s1 + $0x20] sm:$0xff] }
  0xca   : > { %9312 = vmatprep.mubr.msk.f32.mxu1 %vm11703_vm0, %v15364_v23 }
  0xcc   : > { %8319 = vmatmul.mubr.msk.f32.gmra.mrb[24].mxu0 %vm450_vm5, %v8302_v39 }
  0xcd   : > { %9313 = vmatmul.mubr.msk.f32.gmra.mrb[24].mxu1 %vm450_vm5, %v8302_v39  ;;  %645 = vmatprep.mubr.f32.mxu0 %v15364_v23  ;;  %v354_v39 = vld [vmem:[%s15353_s1 + $0x28] sm:$0xff] }
  0xce   : > { %9315 = vmatprep.mubr.msk.f32.mxu1 %vm11703_vm0, %v15364_v23 }
  0xd0   : > { %8320 = vmatmul.mubr.msk.f32.gmra.mrb[26].mxu0 %vm450_vm5, %v8303_v42 }
  0xd1   : > { %9316 = vmatmul.mubr.msk.f32.gmra.mrb[26].mxu1 %vm450_vm5, %v8303_v42  ;;  %651 = vmatprep.mubr.f32.mxu0 %v15364_v23  ;;  %v357_v42 = vld [vmem:[%s15353_s1 + $0x40] sm:$0xff] }
  0xd2   : > { %9318 = vmatprep.mubr.msk.f32.mxu1 %vm11703_vm0, %v15364_v23 }
  0xd4   : > { %8321 = vmatmul.mubr.msk.f32.gmra.mrb[28].mxu0 %vm450_vm5, %v8304_v56 }
  0xd5   : > { %9319 = vmatmul.mubr.msk.f32.gmra.mrb[28].mxu1 %vm450_vm5, %v8304_v56  ;;  %913 = vmatprep.mubr.f32.mxu0 %v15364_v23  ;;  %v11252_v56 = vunpack.i.l.bf16 %v11251_v45 }
  0xd6   : > { %9329 = vmatprep.mubr.msk.f32.mxu1 %vm11703_vm0, %v15364_v23 }
  0xd7   : > { %v1654_v5 = vsel %vm1653_vm7, %v11252_v56, %v11242_v10  ;;  %v11273_v10 = vunpack.i.h.bf16 %v11271_v60  ;;  %v8375_v56 = vld [vmem:[%s15353_s1 + $0x110] sm:$0xff]  ;;  %v8378_v60 = vld [vmem:[%s15353_s1 + $0x128] sm:$0xff] }
  0xd8   : > { %8340 = vmatmul.mubr.msk.f32.vlgmr.msra.gmra.mrb[0].mxu0 %vm450_vm5, %v349_v18 }
  0xd9   : > { %9330 = vmatmul.mubr.msk.f32.vlgmr.msra.gmra.mrb[0].mxu1 %vm450_vm5, %v349_v18  ;;  %919 = vmatprep.mubr.f32.mxu0 %v15364_v23  ;;  %v1657_v18 = vsel %vm1653_vm7, %v11253_v55, %v11247_v17  ;;  %v12227_v17 = vpop.permute.xlu0 %11280  ;;  %v8374_v55 = vld [vmem:[%s15353_s1 + $0x108] sm:$0xff] }
  0xda   : > { %9332 = vmatprep.mubr.msk.f32.mxu1 %vm11703_vm0, %v15364_v23  ;;  %10016 = vmatpush1.bf16.msra.mxu0 %v12061_v21  ;;  %v11283_v6 = vunpack.i.h.bf16 %v12227_v17  ;;  %v11282_v11 = vunpack.i.l.bf16 %v12227_v17  ;;  %v8419_v17 = vld [vmem:[%s15353_s1 + $0x168] sm:$0xff] }
  0xdb   : > { %10025 = vmatpush3.bf16.msra.mxu1 %v12063_v24  ;;  %10019 = vmatprep.subr.msk.bf16.mxu0 %vm11844_vm4, %v12067_v19 }
  0xdc   : > { %8341 = vmatmul.mubr.msk.f32.gmra.mrb[2].mxu0 %vm450_vm5, %v350_v32  ;;  %10026 = vmatprep.subr.bf16.mxu1 %v15362_v0  ;;  %v2116_v45 = vsel %vm2114_vm8, %v11282_v11, %v11283_v6 }
  0xdd   : > { %9333 = vmatmul.mubr.msk.f32.gmra.mrb[2].mxu1 %vm450_vm5, %v350_v32  ;;  %925 = vmatprep.mubr.f32.mxu0 %v15364_v23  ;;  %v11277_v32 = vunpack.i.l.bf16 %v11276_v61  ;;  %v8379_v61 = vld [vmem:[%s15353_s1 + $0x130] sm:$0xff] }
  0xde   : > { %9335 = vmatprep.mubr.msk.f32.mxu1 %vm11703_vm0, %v15364_v23  ;;  %10022 = vmatpush1.bf16.msk.msra.mxu0 %vm11844_vm4, %v12090_v33 }
  0xdf   : > { %10029 = vmatpush3.bf16.msk.msra.mxu1 %vm11844_vm4, %v12093_v34  ;;  %10031 = vmatprep.subr.bf16.mxu0 %v12098_v35 }
  0xe0   : > { %8342 = vmatmul.mubr.msk.f32.gmra.mrb[4].mxu0 %vm450_vm5, %v351_v36  ;;  %10040 = vmatprep.subr.bf16.mxu1 %v15362_v0 }
  0xe1   : > { %9336 = vmatmul.mubr.msk.f32.gmra.mrb[4].mxu1 %vm450_vm5, %v351_v36  ;;  %931 = vmatprep.mubr.f32.mxu0 %v15364_v23  ;;  %v12229_v36 = vpop.permute.xlu1 %11285 }
  0xe2   : > { %9338 = vmatprep.mubr.msk.f32.mxu1 %vm11703_vm0, %v15364_v23  ;;  %v11288_v8 = vunpack.i.h.bf16 %v12229_v36  ;;  %v11287_v12 = vunpack.i.l.bf16 %v12229_v36 }
  0xe4   : > { %8343 = vmatmul.mubr.msk.f32.gmra.mrb[6].mxu0 %vm450_vm5, %v352_v37  ;;  %v2119_v47 = vsel %vm2114_vm8, %v11287_v12, %v11288_v8 }
  0xe5   : > { %9339 = vmatmul.mubr.msk.f32.gmra.mrb[6].mxu1 %vm450_vm5, %v352_v37  ;;  %937 = vmatprep.mubr.f32.mxu0 %v15364_v23  ;;  %v8371_v37 = vld [vmem:[%s15353_s1 + $0xf0] sm:$0xff] }
  0xe6   : > { %9341 = vmatprep.mubr.msk.f32.mxu1 %vm11703_vm0, %v15364_v23 }
  0xe8   : > { %8344 = vmatmul.mubr.msk.f32.gmra.mrb[8].mxu0 %vm450_vm5, %v353_v38 }
  0xe9   : > { %9342 = vmatmul.mubr.msk.f32.gmra.mrb[8].mxu1 %vm450_vm5, %v353_v38  ;;  %943 = vmatprep.mubr.f32.mxu0 %v15364_v23  ;;  %v12243_v38 = vpack.c.bf16 %v1657_v18, %v1654_v5  ;;  %v8383_v5 = vld [vmem:[%s15353_s1 + $0x150] sm:$0xff] }
  0xea   : > { %9344 = vmatprep.mubr.msk.f32.mxu1 %vm11703_vm0, %v15364_v23 }
  0xec   : > { %8345 = vmatmul.mubr.msk.f32.gmra.mrb[10].mxu0 %vm450_vm5, %v354_v39 }
  0xed   : > { %9345 = vmatmul.mubr.msk.f32.gmra.mrb[10].mxu1 %vm450_vm5, %v354_v39  ;;  %949 = vmatprep.mubr.f32.mxu0 %v15364_v23  ;;  %v12245_v39 = vpack.c.bf16 %v1659_v13, %v1656_v25  ;;  %v8384_v25 = vld [vmem:[%s15353_s1 + $0x158] sm:$0xff] }
  0xee   : > { %9347 = vmatprep.mubr.msk.f32.mxu1 %vm11703_vm0, %v15364_v23 }
  0xf0   : > { %8346 = vmatmul.mubr.msk.f32.gmra.mrb[12].mxu0 %vm450_vm5, %v355_v40 }
  0xf1   : > { %9348 = vmatmul.mubr.msk.f32.gmra.mrb[12].mxu1 %vm450_vm5, %v355_v40  ;;  %955 = vmatprep.mubr.f32.mxu0 %v15364_v23  ;;  %v1660_v40 = vsel %vm1653_vm7, %v11272_v20, %v11262_v1  ;;  %v8381_v1 = vld [vmem:[%s15353_s1 + $0x140] sm:$0xff] }
  0xf2   : > { %9350 = vmatprep.mubr.msk.f32.mxu1 %vm11703_vm0, %v15364_v23 }
  0xf4   : > { %8347 = vmatmul.mubr.msk.f32.gmra.mrb[14].mxu0 %vm450_vm5, %v356_v41 }
  0xf5   : > { %9351 = vmatmul.mubr.msk.f32.gmra.mrb[14].mxu1 %vm450_vm5, %v356_v41  ;;  %961 = vmatprep.mubr.f32.mxu0 %v15364_v23  ;;  %v1663_v41 = vsel %vm1653_vm7, %v11273_v10, %v11267_v3  ;;  %v8382_v3 = vld [vmem:[%s15353_s1 + $0x148] sm:$0xff] }
  0xf6   : > { %9353 = vmatprep.mubr.msk.f32.mxu1 %vm11703_vm0, %v15364_v23  ;;  %v12272_v50 = vpack.c.bf16 %v1663_v41, %v1660_v40 }
  0xf8   : > { %8348 = vmatmul.mubr.msk.f32.gmra.mrb[16].mxu0 %vm450_vm5, %v357_v42 }
  0xf9   : > { %9354 = vmatmul.mubr.msk.f32.gmra.mrb[16].mxu1 %vm450_vm5, %v357_v42  ;;  %967 = vmatprep.mubr.f32.mxu0 %v15364_v23  ;;  %v12249_v42 = vpack.c.bf16 %v1664_v16, %v1661_v14 }
  0xfa   : > { %9356 = vmatprep.mubr.msk.f32.mxu1 %vm11703_vm0, %v15364_v23 }
  0xfc   : > { %8349 = vmatmul.mubr.msk.f32.gmra.mrb[18].mxu0 %vm450_vm5, %v358_v43 }
  0xfd   : > { %9357 = vmatmul.mubr.msk.f32.gmra.mrb[18].mxu1 %vm450_vm5, %v358_v43  ;;  %973 = vmatprep.mubr.f32.mxu0 %v15364_v23  ;;  %v1662_v43 = vsel %vm1653_vm7, %v11263_v62, %v11277_v32  ;;  %v8380_v62 = vld [vmem:[%s15353_s1 + $0x138] sm:$0xff] }
  0xfe   : > { %9359 = vmatprep.mubr.msk.f32.mxu1 %vm11703_vm0, %v15364_v23 }
 0x100   : > { %8350 = vmatmul.mubr.msk.f32.gmra.mrb[20].mxu0 %vm450_vm5, %v359_v44 }
 0x101   : > { %9360 = vmatmul.mubr.msk.f32.gmra.mrb[20].mxu1 %vm450_vm5, %v359_v44  ;;  %979 = vmatprep.mubr.f32.mxu0 %v15364_v23  ;;  %v1665_v44 = vsel %vm1653_vm7, %v11268_v2, %v11278_v31  ;;  %v11291_v2 = vpop.permute.xlu0 %11290 }
 0x102   : > { %9362 = vmatprep.mubr.msk.f32.mxu1 %vm11703_vm0, %v15364_v23  ;;  %v12275_v51 = vpack.c.bf16 %v1665_v44, %v1662_v43  ;;  %v11293_v14 = vunpack.i.h.bf16 %v11291_v2  ;;  %v11292_v16 = vunpack.i.l.bf16 %v11291_v2  ;;  %v8385_v43 = vld [vmem:[%s15353_s1 + $0x160] sm:$0xff] }
 0x104   : > { %8351 = vmatmul.mubr.msk.f32.gmra.mrb[22].mxu0 %vm450_vm5, %v360_v48 }
 0x105   : > { %9363 = vmatmul.mubr.msk.f32.gmra.mrb[22].mxu1 %vm450_vm5, %v360_v48  ;;  %985 = vmatprep.mubr.f32.mxu0 %v15364_v23  ;;  %v8372_v48 = vld [vmem:[%s15353_s1 + $0xf8] sm:$0xff]  ;;  %v11301_v18 = vpop.permute.xlu0 %11300 }
 0x106   : > { %9365 = vmatprep.mubr.msk.f32.mxu1 %vm11703_vm0, %v15364_v23  ;;  %v11303_v32 = vunpack.i.h.bf16 %v11301_v18 }
 0x108   : > { %8352 = vmatmul.mubr.msk.f32.gmra.mrb[24].mxu0 %vm450_vm5, %v361_v52 }
 0x109   : > { %9366 = vmatmul.mubr.msk.f32.gmra.mrb[24].mxu1 %vm450_vm5, %v361_v52  ;;  %991 = vmatprep.mubr.f32.mxu0 %v15364_v23  ;;  %v12280_v52 = vpack.c.bf16 %v2119_v47, %v2116_v45  ;;  %v11311_v31 = vpop.permute.xlu0 %11310  ;;  %v2115_v45 = vsel %vm2114_vm8, %v11292_v16, %v11282_v11  ;;  %v2118_v47 = vsel %vm2114_vm8, %v11293_v14, %v11287_v12  ;;  %v8426_v14 = vld [vmem:[%s15353_s1 + $0x1a0] sm:$0xff]  ;;  %v8427_v16 = vld [vmem:[%s15353_s1 + $0x1a8] sm:$0xff] }
 0x10a   : > { %9368 = vmatprep.mubr.msk.f32.mxu1 %vm11703_vm0, %v15364_v23 }
 0x10c   : > { %8353 = vmatmul.mubr.msk.f32.gmra.mrb[26].mxu0 %vm450_vm5, %v362_v54 }
 0x10d   : > { %9369 = vmatmul.mubr.msk.f32.gmra.mrb[26].mxu1 %vm450_vm5, %v362_v54  ;;  %997 = vmatprep.mubr.f32.mxu0 %v15364_v23  ;;  %v8373_v54 = vld [vmem:[%s15353_s1 + $0x100] sm:$0xff] }
 0x10e   : > { %9371 = vmatprep.mubr.msk.f32.mxu1 %vm11703_vm0, %v15364_v23 }
 0x110   : > { %8354 = vmatmul.mubr.msk.f32.gmra.mrb[28].mxu0 %vm450_vm5, %v363_v4 }
 0x111   : > { %9372 = vmatmul.mubr.msk.f32.gmra.mrb[28].mxu1 %vm450_vm5, %v363_v4  ;;  %1329 = vmatprep.mubr.f32.mxu0 %v15364_v23  ;;  %v11296_v4 = vpop.permute.xlu1 %11295 }
 0x112   : > { %9382 = vmatprep.mubr.msk.f32.mxu1 %vm11703_vm0, %v15364_v23  ;;  %v11298_v10 = vunpack.i.h.bf16 %v11296_v4  ;;  %v11297_v20 = vunpack.i.l.bf16 %v11296_v4 }
 0x114   : > { %8388 = vmatmul.mubr.msk.f32.vlgmr.msra.gmra.mrb[0].mxu0 %vm450_vm5, %v8371_v37 }
 0x115   : > { %9383 = vmatmul.mubr.msk.f32.vlgmr.msra.gmra.mrb[0].mxu1 %vm450_vm5, %v8371_v37  ;;  %1335 = vmatprep.mubr.f32.mxu0 %v15364_v23  ;;  %v11306_v13 = vpop.permute.xlu1 %11305  ;;  %v11302_v37 = vunpack.i.l.bf16 %v11301_v18  ;;  %v8423_v18 = vld [vmem:[%s15353_s1 + $0x188] sm:$0xff] }
 0x116   : > { %9385 = vmatprep.mubr.msk.f32.mxu1 %vm11703_vm0, %v15364_v23  ;;  %10033 = vmatpush1.bf16.msra.mxu0 %v12243_v38  ;;  %v11308_v40 = vunpack.i.h.bf16 %v11306_v13  ;;  %v11307_v41 = vunpack.i.l.bf16 %v11306_v13  ;;  %v8425_v13 = vld [vmem:[%s15353_s1 + $0x198] sm:$0xff] }
 0x117   : > { %10042 = vmatpush3.bf16.msra.mxu1 %v12245_v39  ;;  %10036 = vmatprep.subr.msk.bf16.mxu0 %vm11844_vm4, %v12249_v42 }
 0x118   : > { %8389 = vmatmul.mubr.msk.f32.gmra.mrb[2].mxu0 %vm450_vm5, %v8372_v48  ;;  %10043 = vmatprep.subr.bf16.mxu1 %v15362_v0  ;;  %v2125_v11 = vsel %vm2114_vm8, %v11307_v41, %v11308_v40 }
 0x119   : > { %9386 = vmatmul.mubr.msk.f32.gmra.mrb[2].mxu1 %vm450_vm5, %v8372_v48  ;;  %1341 = vmatprep.mubr.f32.mxu0 %v15364_v23  ;;  %v11316_v44 = vpop.permute.xlu1 %11315  ;;  %v11313_v48 = vunpack.i.h.bf16 %v11311_v31 }
 0x11a   : > { %9388 = vmatprep.mubr.msk.f32.mxu1 %vm11703_vm0, %v15364_v23  ;;  %10039 = vmatpush1.bf16.msk.msra.mxu0 %vm11844_vm4, %v12272_v50  ;;  %v11318_v12 = vunpack.i.h.bf16 %v11316_v44 }
 0x11b   : > { %10046 = vmatpush3.bf16.msk.msra.mxu1 %vm11844_vm4, %v12275_v51  ;;  %10048 = vmatprep.subr.bf16.mxu0 %v12280_v52 }
 0x11c   : > { %8390 = vmatmul.mubr.msk.f32.gmra.mrb[4].mxu0 %vm450_vm5, %v8373_v54  ;;  %10057 = vmatprep.subr.bf16.mxu1 %v15362_v0 }
 0x11d   : > { %9389 = vmatmul.mubr.msk.f32.gmra.mrb[4].mxu1 %vm450_vm5, %v8373_v54  ;;  %1347 = vmatprep.mubr.f32.mxu0 %v15364_v23  ;;  %v11312_v54 = vunpack.i.l.bf16 %v11311_v31  ;;  %v8430_v31 = vld [vmem:[%s15353_s1 + $0x1c0] sm:$0xff] }
 0x11e   : > { %9391 = vmatprep.mubr.msk.f32.mxu1 %vm11703_vm0, %v15364_v23 }
 0x11f   : > { %v2121_v36 = vsel %vm2114_vm8, %v11312_v54, %v11302_v37  ;;  %v8479_v54 = vld [vmem:[%s15353_s1 + $0x240] sm:$0xff] }
 0x120   : > { %8391 = vmatmul.mubr.msk.f32.gmra.mrb[6].mxu0 %vm450_vm5, %v8374_v55 }
 0x121   : > { %9392 = vmatmul.mubr.msk.f32.gmra.mrb[6].mxu1 %vm450_vm5, %v8374_v55  ;;  %1353 = vmatprep.mubr.f32.mxu0 %v15364_v23  ;;  %v2117_v55 = vsel %vm2114_vm8, %v11283_v6, %v11297_v20  ;;  %v12415_v6 = vpack.c.bf16 %v2118_v47, %v2115_v45  ;;  %v8429_v20 = vld [vmem:[%s15353_s1 + $0x1b8] sm:$0xff]  ;;  %v8476_v45 = vld [vmem:[%s15353_s1 + $0x228] sm:$0xff]  ;;  %v8477_v47 = vld [vmem:[%s15353_s1 + $0x230] sm:$0xff] }
 0x122   : > { %9394 = vmatprep.mubr.msk.f32.mxu1 %vm11703_vm0, %v15364_v23 }
 0x124   : > { %8392 = vmatmul.mubr.msk.f32.gmra.mrb[8].mxu0 %vm450_vm5, %v8375_v56 }
 0x125   : > { %9395 = vmatmul.mubr.msk.f32.gmra.mrb[8].mxu1 %vm450_vm5, %v8375_v56  ;;  %1359 = vmatprep.mubr.f32.mxu0 %v15364_v23  ;;  %v2120_v56 = vsel %vm2114_vm8, %v11288_v8, %v11298_v10  ;;  %v2124_v8 = vsel %vm2114_vm8, %v11313_v48, %v11307_v41  ;;  %v8428_v10 = vld [vmem:[%s15353_s1 + $0x1b0] sm:$0xff]  ;;  %v8467_v41 = vld [vmem:[%s15353_s1 + $0x1e0] sm:$0xff]  ;;  %v8478_v48 = vld [vmem:[%s15353_s1 + $0x238] sm:$0xff] }
 0x126   : > { %9397 = vmatprep.mubr.msk.f32.mxu1 %vm11703_vm0, %v15364_v23  ;;  %v12428_v2 = vpack.c.bf16 %v2124_v8, %v2121_v36  ;;  %v8541_v36 = vld [vmem:[%s15353_s1 + $0x328] sm:$0xff]  ;;  %v8542_v8 = vld [vmem:[%s15353_s1 + $0x330] sm:$0xff] }
 0x128   : > { %8393 = vmatmul.mubr.msk.f32.gmra.mrb[10].mxu0 %vm450_vm5, %v8376_v57 }
 0x129   : > { %9398 = vmatmul.mubr.msk.f32.gmra.mrb[10].mxu1 %vm450_vm5, %v8376_v57  ;;  %1365 = vmatprep.mubr.f32.mxu0 %v15364_v23  ;;  %v2122_v57 = vsel %vm2114_vm8, %v11302_v37, %v11303_v32  ;;  %v8432_v37 = vld [vmem:[%s15353_s1 + $0x1d0] sm:$0xff] }
 0x12a   : > { %9400 = vmatprep.mubr.msk.f32.mxu1 %vm11703_vm0, %v15364_v23 }
 0x12c   : > { %8394 = vmatmul.mubr.msk.f32.gmra.mrb[12].mxu0 %vm450_vm5, %v8377_v58 }
 0x12d   : > { %9401 = vmatmul.mubr.msk.f32.gmra.mrb[12].mxu1 %vm450_vm5, %v8377_v58  ;;  %1371 = vmatprep.mubr.f32.mxu0 %v15364_v23  ;;  %v11317_v58 = vunpack.i.l.bf16 %v11316_v44  ;;  %v8475_v44 = vld [vmem:[%s15353_s1 + $0x220] sm:$0xff] }
 0x12e   : > { %9403 = vmatprep.mubr.msk.f32.mxu1 %vm11703_vm0, %v15364_v23 }
 0x130   : > { %8395 = vmatmul.mubr.msk.f32.gmra.mrb[14].mxu0 %vm450_vm5, %v8378_v60 }
 0x131   : > { %9404 = vmatmul.mubr.msk.f32.gmra.mrb[14].mxu1 %vm450_vm5, %v8378_v60  ;;  %1377 = vmatprep.mubr.f32.mxu0 %v15364_v23  ;;  %v12421_v60 = vpack.c.bf16 %v2125_v11, %v2122_v57  ;;  %v8530_v57 = vld [vmem:[%s15353_s1 + $0x2d0] sm:$0xff]  ;;  %v8531_v11 = vld [vmem:[%s15353_s1 + $0x2d8] sm:$0xff] }
 0x132   : > { %9406 = vmatprep.mubr.msk.f32.mxu1 %vm11703_vm0, %v15364_v23 }
 0x134   : > { %8396 = vmatmul.mubr.msk.f32.gmra.mrb[16].mxu0 %vm450_vm5, %v8379_v61 }
 0x135   : > { %9407 = vmatmul.mubr.msk.f32.gmra.mrb[16].mxu1 %vm450_vm5, %v8379_v61  ;;  %1383 = vmatprep.mubr.f32.mxu0 %v15364_v23  ;;  %v12423_v61 = vpack.c.bf16 %v2120_v56, %v2117_v55  ;;  %v8480_v55 = vld [vmem:[%s15353_s1 + $0x248] sm:$0xff]  ;;  %v8481_v56 = vld [vmem:[%s15353_s1 + $0x250] sm:$0xff] }
 0x136   : > { %9409 = vmatprep.mubr.msk.f32.mxu1 %vm11703_vm0, %v15364_v23 }
 0x138   : > { %8397 = vmatmul.mubr.msk.f32.gmra.mrb[18].mxu0 %vm450_vm5, %v8380_v62 }
 0x139   : > { %9410 = vmatmul.mubr.msk.f32.gmra.mrb[18].mxu1 %vm450_vm5, %v8380_v62  ;;  %1389 = vmatprep.mubr.f32.mxu0 %v15364_v23  ;;  %v2123_v62 = vsel %vm2114_vm8, %v11303_v32, %v11317_v58  ;;  %v8431_v32 = vld [vmem:[%s15353_s1 + $0x1c8] sm:$0xff]  ;;  %v8539_v58 = vld [vmem:[%s15353_s1 + $0x318] sm:$0xff] }
 0x13a   : > { %9412 = vmatprep.mubr.msk.f32.mxu1 %vm11703_vm0, %v15364_v23 }
 0x13c   : > { %8398 = vmatmul.mubr.msk.f32.gmra.mrb[20].mxu0 %vm450_vm5, %v8381_v1 }
 0x13d   : > { %9413 = vmatmul.mubr.msk.f32.gmra.mrb[20].mxu1 %vm450_vm5, %v8381_v1  ;;  %1395 = vmatprep.mubr.f32.mxu0 %v15364_v23  ;;  %v2126_v1 = vsel %vm2114_vm8, %v11308_v40, %v11318_v12  ;;  %v8433_v40 = vld [vmem:[%s15353_s1 + $0x1d8] sm:$0xff]  ;;  %v8538_v12 = vld [vmem:[%s15353_s1 + $0x310] sm:$0xff] }
 0x13e   : > { %9415 = vmatprep.mubr.msk.f32.mxu1 %vm11703_vm0, %v15364_v23  ;;  %v12442_v4 = vpack.c.bf16 %v2126_v1, %v2123_v62  ;;  %v8543_v62 = vld [vmem:[%s15353_s1 + $0x338] sm:$0xff]  ;;  %v8544_v1 = vld [vmem:[%s15353_s1 + $0x340] sm:$0xff] }
 0x140   : > { %8399 = vmatmul.mubr.msk.f32.gmra.mrb[22].mxu0 %vm450_vm5, %v8382_v3 }
 0x141   : > { %9416 = vmatmul.mubr.msk.f32.gmra.mrb[22].mxu1 %vm450_vm5, %v8382_v3  ;;  %1401 = vmatprep.mubr.f32.mxu0 %v15364_v23  ;;  %v8420_v3 = vld [vmem:[%s15353_s1 + $0x170] sm:$0xff] }
 0x142   : > { %9418 = vmatprep.mubr.msk.f32.mxu1 %vm11703_vm0, %v15364_v23 }
 0x144   : > { %8400 = vmatmul.mubr.msk.f32.gmra.mrb[24].mxu0 %vm450_vm5, %v8383_v5 }
 0x145   : > { %9419 = vmatmul.mubr.msk.f32.gmra.mrb[24].mxu1 %vm450_vm5, %v8383_v5  ;;  %1407 = vmatprep.mubr.f32.mxu0 %v15364_v23  ;;  %v8421_v5 = vld [vmem:[%s15353_s1 + $0x178] sm:$0xff] }
 0x146   : > { %9421 = vmatprep.mubr.msk.f32.mxu1 %vm11703_vm0, %v15364_v23 }
 0x148   : > { %8401 = vmatmul.mubr.msk.f32.gmra.mrb[26].mxu0 %vm450_vm5, %v8384_v25 }
 0x149   : > { %9422 = vmatmul.mubr.msk.f32.gmra.mrb[26].mxu1 %vm450_vm5, %v8384_v25  ;;  %1413 = vmatprep.mubr.f32.mxu0 %v15364_v23  ;;  %v8424_v25 = vld [vmem:[%s15353_s1 + $0x190] sm:$0xff] }
 0x14a   : > { %9424 = vmatprep.mubr.msk.f32.mxu1 %vm11703_vm0, %v15364_v23 }
 0x14c   : > { %8402 = vmatmul.mubr.msk.f32.gmra.mrb[28].mxu0 %vm450_vm5, %v8385_v43 }
 0x14d   : > { %9425 = vmatmul.mubr.msk.f32.gmra.mrb[28].mxu1 %vm450_vm5, %v8385_v43  ;;  %1790 = vmatprep.mubr.f32.mxu0 %v15364_v23  ;;  %v8468_v43 = vld [vmem:[%s15353_s1 + $0x1e8] sm:$0xff] }
 0x14e   : > { %9435 = vmatprep.mubr.msk.f32.mxu1 %vm11703_vm0, %v15364_v23 }
 0x150   : > { %8436 = vmatmul.mubr.msk.f32.vlgmr.msra.gmra.mrb[0].mxu0 %vm450_vm5, %v8419_v17 }
 0x151   : > { %9436 = vmatmul.mubr.msk.f32.vlgmr.msra.gmra.mrb[0].mxu1 %vm450_vm5, %v8419_v17  ;;  %10050 = vmatpush1.bf16.msra.mxu0 %v12415_v6  ;;  %v8540_v17 = vld [vmem:[%s15353_s1 + $0x320] sm:$0xff] }
 0x152   : > { %1796 = vmatprep.mubr.f32.mxu0 %v15364_v23  ;;  %9438 = vmatprep.mubr.msk.f32.mxu1 %vm11703_vm0, %v15364_v23 }
 0x153   : > { %10053 = vmatprep.subr.msk.bf16.mxu0 %vm11844_vm4, %v12421_v60  ;;  %10059 = vmatpush3.bf16.msra.mxu1 %v12423_v61 }
 0x154   : > { %8437 = vmatmul.mubr.msk.f32.gmra.mrb[2].mxu0 %vm450_vm5, %v8420_v3  ;;  %10060 = vmatprep.subr.bf16.mxu1 %v15362_v0 }
 0x155   : > { %9439 = vmatmul.mubr.msk.f32.gmra.mrb[2].mxu1 %vm450_vm5, %v8420_v3  ;;  %10056 = vmatpush1.bf16.msk.msra.mxu0 %vm11844_vm4, %v12428_v2  ;;  %v8515_v3 = vld [vmem:[%s15353_s1 + $0x258] sm:$0xff] }
 0x156   : > { %10065 = vmatprep.subr.bf16.mxu0 %v11830_v46  ;;  %1802 = vmatprep.mubr.f32.mxu0 %v15364_v23  ;;  %v8422_v46 = vld [vmem:[%s15353_s1 + $0x180] sm:$0xff] }
 0x157   : > { %9441 = vmatprep.mubr.msk.f32.mxu1 %vm11703_vm0, %v15364_v23  ;;  %10063 = vmatpush3.bf16.msk.msra.mxu1 %vm11844_vm4, %v12442_v4 }
 0x158   : > { %8438 = vmatmul.mubr.msk.f32.gmra.mrb[4].mxu0 %vm450_vm5, %v8421_v5  ;;  %10074 = vmatprep.subr.bf16.mxu1 %v15362_v0 }
 0x159   : > { %9442 = vmatmul.mubr.msk.f32.gmra.mrb[4].mxu1 %vm450_vm5, %v8421_v5  ;;  %1808 = vmatprep.mubr.f32.mxu0 %v15364_v23  ;;  %v8516_v5 = vld [vmem:[%s15353_s1 + $0x260] sm:$0xff] }
 0x15a   : > { %9444 = vmatprep.mubr.msk.f32.mxu1 %vm11703_vm0, %v15364_v23 }
 0x15c   : > { %8439 = vmatmul.mubr.msk.f32.gmra.mrb[6].mxu0 %vm450_vm5, %v8422_v46 }
 0x15d   : > { %9445 = vmatmul.mubr.msk.f32.gmra.mrb[6].mxu1 %vm450_vm5, %v8422_v46  ;;  %1814 = vmatprep.mubr.f32.mxu0 %v15364_v23  ;;  %v8523_v46 = vld [vmem:[%s15353_s1 + $0x298] sm:$0xff] }
 0x15e   : > { %9447 = vmatprep.mubr.msk.f32.mxu1 %vm11703_vm0, %v15364_v23 }
 0x160   : > { %8440 = vmatmul.mubr.msk.f32.gmra.mrb[8].mxu0 %vm450_vm5, %v8423_v18 }
 0x161   : > { %9448 = vmatmul.mubr.msk.f32.gmra.mrb[8].mxu1 %vm450_vm5, %v8423_v18  ;;  %1820 = vmatprep.mubr.f32.mxu0 %v15364_v23  ;;  %v8524_v18 = vld [vmem:[%s15353_s1 + $0x2a0] sm:$0xff] }
 0x162   : > { %9450 = vmatprep.mubr.msk.f32.mxu1 %vm11703_vm0, %v15364_v23 }
 0x164   : > { %8441 = vmatmul.mubr.msk.f32.gmra.mrb[10].mxu0 %vm450_vm5, %v8424_v25 }
 0x165   : > { %9451 = vmatmul.mubr.msk.f32.gmra.mrb[10].mxu1 %vm450_vm5, %v8424_v25  ;;  %1826 = vmatprep.mubr.f32.mxu0 %v15364_v23  ;;  %v8525_v25 = vld [vmem:[%s15353_s1 + $0x2a8] sm:$0xff] }
 0x166   : > { %9453 = vmatprep.mubr.msk.f32.mxu1 %vm11703_vm0, %v15364_v23 }
 0x168   : > { %8442 = vmatmul.mubr.msk.f32.gmra.mrb[12].mxu0 %vm450_vm5, %v8425_v13 }
 0x169   : > { %9454 = vmatmul.mubr.msk.f32.gmra.mrb[12].mxu1 %vm450_vm5, %v8425_v13  ;;  %1832 = vmatprep.mubr.f32.mxu0 %v15364_v23  ;;  %v8526_v13 = vld [vmem:[%s15353_s1 + $0x2b0] sm:$0xff] }
 0x16a   : > { %9456 = vmatprep.mubr.msk.f32.mxu1 %vm11703_vm0, %v15364_v23 }
 0x16c   : > { %8443 = vmatmul.mubr.msk.f32.gmra.mrb[14].mxu0 %vm450_vm5, %v8426_v14 }
 0x16d   : > { %9457 = vmatmul.mubr.msk.f32.gmra.mrb[14].mxu1 %vm450_vm5, %v8426_v14  ;;  %1838 = vmatprep.mubr.f32.mxu0 %v15364_v23  ;;  %v8527_v14 = vld [vmem:[%s15353_s1 + $0x2b8] sm:$0xff] }
 0x16e   : > { %9459 = vmatprep.mubr.msk.f32.mxu1 %vm11703_vm0, %v15364_v23 }
 0x170   : > { %8444 = vmatmul.mubr.msk.f32.gmra.mrb[16].mxu0 %vm450_vm5, %v8427_v16 }
 0x171   : > { %9460 = vmatmul.mubr.msk.f32.gmra.mrb[16].mxu1 %vm450_vm5, %v8427_v16  ;;  %1844 = vmatprep.mubr.f32.mxu0 %v15364_v23  ;;  %v8528_v16 = vld [vmem:[%s15353_s1 + $0x2c0] sm:$0xff] }
 0x172   : > { %9462 = vmatprep.mubr.msk.f32.mxu1 %vm11703_vm0, %v15364_v23 }
 0x174   : > { %8445 = vmatmul.mubr.msk.f32.gmra.mrb[18].mxu0 %vm450_vm5, %v8428_v10 }
 0x175   : > { %9463 = vmatmul.mubr.msk.f32.gmra.mrb[18].mxu1 %vm450_vm5, %v8428_v10  ;;  %1850 = vmatprep.mubr.f32.mxu0 %v15364_v23  ;;  %v8529_v10 = vld [vmem:[%s15353_s1 + $0x2c8] sm:$0xff] }
 0x176   : > { %9465 = vmatprep.mubr.msk.f32.mxu1 %vm11703_vm0, %v15364_v23 }
 0x178   : > { %8446 = vmatmul.mubr.msk.f32.gmra.mrb[20].mxu0 %vm450_vm5, %v8429_v20 }
 0x179   : > { %9466 = vmatmul.mubr.msk.f32.gmra.mrb[20].mxu1 %vm450_vm5, %v8429_v20  ;;  %1856 = vmatprep.mubr.f32.mxu0 %v15364_v23  ;;  %v8611_v20 = vld [vmem:[%s15353_s1 + $0x348] sm:$0xff] }
 0x17a   : > { %9468 = vmatprep.mubr.msk.f32.mxu1 %vm11703_vm0, %v15364_v23 }
 0x17c   : > { %8447 = vmatmul.mubr.msk.f32.gmra.mrb[22].mxu0 %vm450_vm5, %v8430_v31 }
 0x17d   : > { %9469 = vmatmul.mubr.msk.f32.gmra.mrb[22].mxu1 %vm450_vm5, %v8430_v31  ;;  %1862 = vmatprep.mubr.f32.mxu0 %v15364_v23  ;;  %v8612_v31 = vld [vmem:[%s15353_s1 + $0x350] sm:$0xff] }
 0x17e   : > { %9471 = vmatprep.mubr.msk.f32.mxu1 %vm11703_vm0, %v15364_v23 }
 0x180   : > { %8448 = vmatmul.mubr.msk.f32.gmra.mrb[24].mxu0 %vm450_vm5, %v8431_v32 }
 0x181   : > { %9472 = vmatmul.mubr.msk.f32.gmra.mrb[24].mxu1 %vm450_vm5, %v8431_v32  ;;  %1868 = vmatprep.mubr.f32.mxu0 %v15364_v23  ;;  %v8619_v32 = vld [vmem:[%s15353_s1 + $0x388] sm:$0xff] }
 0x182   : > { %9474 = vmatprep.mubr.msk.f32.mxu1 %vm11703_vm0, %v15364_v23 }
 0x184   : > { %8449 = vmatmul.mubr.msk.f32.gmra.mrb[26].mxu0 %vm450_vm5, %v8432_v37 }
 0x185   : > { %9475 = vmatmul.mubr.msk.f32.gmra.mrb[26].mxu1 %vm450_vm5, %v8432_v37  ;;  %1874 = vmatprep.mubr.f32.mxu0 %v15364_v23 }
 0x186   : > { %9477 = vmatprep.mubr.msk.f32.mxu1 %vm11703_vm0, %v15364_v23 }
 0x188   : > { %8450 = vmatmul.mubr.msk.f32.gmra.mrb[28].mxu0 %vm450_vm5, %v8433_v40 }
 0x189   : > { %9478 = vmatmul.mubr.msk.f32.gmra.mrb[28].mxu1 %vm450_vm5, %v8433_v40  ;;  %2251 = vmatprep.mubr.f32.mxu0 %v15364_v23 }
 0x18a   : > { %9488 = vmatprep.mubr.msk.f32.mxu1 %vm11703_vm0, %v15364_v23 }
 0x18c   : > { %8484 = vmatmul.mubr.msk.f32.vlgmr.msra.gmra.mrb[0].mxu0 %vm450_vm5, %v8467_v41 }
 0x18d   : > { %9489 = vmatmul.mubr.msk.f32.vlgmr.msra.gmra.mrb[0].mxu1 %vm450_vm5, %v8467_v41  ;;  %10067 = vmatpush1.bf16.msra.mxu0 %v11834_v49  ;;  %v8469_v49 = vld [vmem:[%s15353_s1 + $0x1f0] sm:$0xff] }
 0x18e   : > { %10076 = vmatpush3.bf16.msra.mxu1 %v11836_v53  ;;  %10070 = vmatprep.subr.msk.bf16.mxu0 %vm11844_vm4, %v11849_v63  ;;  %v8470_v53 = vld [vmem:[%s15353_s1 + $0x1f8] sm:$0xff]  ;;  %v8472_v63 = vld [vmem:[%s15353_s1 + $0x208] sm:$0xff] }
 0x18f   : > { %2257 = vmatprep.mubr.f32.mxu0 %v15364_v23  ;;  %9491 = vmatprep.mubr.msk.f32.mxu1 %vm11703_vm0, %v15364_v23 }
 0x190   : > { %10077 = vmatprep.subr.bf16.mxu1 %v15362_v0  ;;  %8485 = vmatmul.mubr.msk.f32.gmra.mrb[2].mxu0 %vm450_vm5, %v8468_v43 }
 0x191   : > { %9492 = vmatmul.mubr.msk.f32.gmra.mrb[2].mxu1 %vm450_vm5, %v8468_v43  ;;  %10073 = vmatpush1.bf16.msk.msra.mxu0 %vm11844_vm4, %v11858_v7  ;;  %v8473_v7 = vld [vmem:[%s15353_s1 + $0x210] sm:$0xff] }
 0x192   : > { %10080 = vmatpush3.bf16.msk.msra.mxu1 %vm11844_vm4, %v11862_v9  ;;  %2263 = vmatprep.mubr.f32.mxu0 %v15364_v23  ;;  %v8474_v9 = vld [vmem:[%s15353_s1 + $0x218] sm:$0xff] }
 0x193   : > { %9494 = vmatprep.mubr.msk.f32.mxu1 %vm11703_vm0, %v15364_v23  ;;  %10082 = vmatprep.subr.bf16.mxu0 %v11805_v26  ;;  %v8471_v26 = vld [vmem:[%s15353_s1 + $0x200] sm:$0xff] }
 0x194   : > { %8486 = vmatmul.mubr.msk.f32.gmra.mrb[4].mxu0 %vm450_vm5, %v8469_v49  ;;  %10091 = vmatprep.subr.bf16.mxu1 %v15362_v0 }
 0x195   : > { %9495 = vmatmul.mubr.msk.f32.gmra.mrb[4].mxu1 %vm450_vm5, %v8469_v49  ;;  %2269 = vmatprep.mubr.f32.mxu0 %v15364_v23  ;;  %v8620_v49 = vld [vmem:[%s15353_s1 + $0x390] sm:$0xff] }
 0x196   : > { %9497 = vmatprep.mubr.msk.f32.mxu1 %vm11703_vm0, %v15364_v23 }
 0x198   : > { %8487 = vmatmul.mubr.msk.f32.gmra.mrb[6].mxu0 %vm450_vm5, %v8470_v53 }
 0x199   : > { %9498 = vmatmul.mubr.msk.f32.gmra.mrb[6].mxu1 %vm450_vm5, %v8470_v53  ;;  %2275 = vmatprep.mubr.f32.mxu0 %v15364_v23 }
 0x19a   : > { %9500 = vmatprep.mubr.msk.f32.mxu1 %vm11703_vm0, %v15364_v23 }
 0x19c   : > { %8488 = vmatmul.mubr.msk.f32.gmra.mrb[8].mxu0 %vm450_vm5, %v8471_v26 }
 0x19d   : > { %9501 = vmatmul.mubr.msk.f32.gmra.mrb[8].mxu1 %vm450_vm5, %v8471_v26  ;;  %2281 = vmatprep.mubr.f32.mxu0 %v15364_v23 }
 0x19e   : > { %9503 = vmatprep.mubr.msk.f32.mxu1 %vm11703_vm0, %v15364_v23 }
 0x1a0   : > { %8489 = vmatmul.mubr.msk.f32.gmra.mrb[10].mxu0 %vm450_vm5, %v8472_v63 }
 0x1a1   : > { %9504 = vmatmul.mubr.msk.f32.gmra.mrb[10].mxu1 %vm450_vm5, %v8472_v63  ;;  %2287 = vmatprep.mubr.f32.mxu0 %v15364_v23 }
 0x1a2   : > { %9506 = vmatprep.mubr.msk.f32.mxu1 %vm11703_vm0, %v15364_v23 }
 0x1a4   : > { %8490 = vmatmul.mubr.msk.f32.gmra.mrb[12].mxu0 %vm450_vm5, %v8473_v7 }
 0x1a5   : > { %9507 = vmatmul.mubr.msk.f32.gmra.mrb[12].mxu1 %vm450_vm5, %v8473_v7  ;;  %2293 = vmatprep.mubr.f32.mxu0 %v15364_v23 }
 0x1a6   : > { %9509 = vmatprep.mubr.msk.f32.mxu1 %vm11703_vm0, %v15364_v23 }
 0x1a8   : > { %8491 = vmatmul.mubr.msk.f32.gmra.mrb[14].mxu0 %vm450_vm5, %v8474_v9 }
 0x1a9   : > { %9510 = vmatmul.mubr.msk.f32.gmra.mrb[14].mxu1 %vm450_vm5, %v8474_v9  ;;  %2299 = vmatprep.mubr.f32.mxu0 %v15364_v23  ;;  %v8621_v9 = vld [vmem:[%s15353_s1 + $0x398] sm:$0xff] }
 0x1aa   : > { %9512 = vmatprep.mubr.msk.f32.mxu1 %vm11703_vm0, %v15364_v23 }
 0x1ac   : > { %8492 = vmatmul.mubr.msk.f32.gmra.mrb[16].mxu0 %vm450_vm5, %v8475_v44 }
 0x1ad   : > { %9513 = vmatmul.mubr.msk.f32.gmra.mrb[16].mxu1 %vm450_vm5, %v8475_v44  ;;  %2305 = vmatprep.mubr.f32.mxu0 %v15364_v23 }
 0x1ae   : > { %9515 = vmatprep.mubr.msk.f32.mxu1 %vm11703_vm0, %v15364_v23 }
 0x1b0   : > { %8493 = vmatmul.mubr.msk.f32.gmra.mrb[18].mxu0 %vm450_vm5, %v8476_v45 }
 0x1b1   : > { %9516 = vmatmul.mubr.msk.f32.gmra.mrb[18].mxu1 %vm450_vm5, %v8476_v45  ;;  %2311 = vmatprep.mubr.f32.mxu0 %v15364_v23 }
 0x1b2   : > { %9518 = vmatprep.mubr.msk.f32.mxu1 %vm11703_vm0, %v15364_v23 }
 0x1b4   : > { %8494 = vmatmul.mubr.msk.f32.gmra.mrb[20].mxu0 %vm450_vm5, %v8477_v47 }
 0x1b5   : > { %9519 = vmatmul.mubr.msk.f32.gmra.mrb[20].mxu1 %vm450_vm5, %v8477_v47  ;;  %2317 = vmatprep.mubr.f32.mxu0 %v15364_v23 }
 0x1b6   : > { %9521 = vmatprep.mubr.msk.f32.mxu1 %vm11703_vm0, %v15364_v23 }
 0x1b8   : > { %8495 = vmatmul.mubr.msk.f32.gmra.mrb[22].mxu0 %vm450_vm5, %v8478_v48 }
 0x1b9   : > { %9522 = vmatmul.mubr.msk.f32.gmra.mrb[22].mxu1 %vm450_vm5, %v8478_v48  ;;  %2323 = vmatprep.mubr.f32.mxu0 %v15364_v23 }
 0x1ba   : > { %9524 = vmatprep.mubr.msk.f32.mxu1 %vm11703_vm0, %v15364_v23 }
 0x1bc   : > { %8496 = vmatmul.mubr.msk.f32.gmra.mrb[24].mxu0 %vm450_vm5, %v8479_v54 }
 0x1bd   : > { %9525 = vmatmul.mubr.msk.f32.gmra.mrb[24].mxu1 %vm450_vm5, %v8479_v54  ;;  %2329 = vmatprep.mubr.f32.mxu0 %v15364_v23  ;;  %v8622_v54 = vld [vmem:[%s15353_s1 + $0x3a0] sm:$0xff] }
 0x1be   : > { %9527 = vmatprep.mubr.msk.f32.mxu1 %vm11703_vm0, %v15364_v23 }
 0x1c0   : > { %8497 = vmatmul.mubr.msk.f32.gmra.mrb[26].mxu0 %vm450_vm5, %v8480_v55 }
 0x1c1   : > { %9528 = vmatmul.mubr.msk.f32.gmra.mrb[26].mxu1 %vm450_vm5, %v8480_v55  ;;  %2335 = vmatprep.mubr.f32.mxu0 %v15364_v23 }
 0x1c2   : > { %9530 = vmatprep.mubr.msk.f32.mxu1 %vm11703_vm0, %v15364_v23 }
 0x1c4   : > { %8498 = vmatmul.mubr.msk.f32.gmra.mrb[28].mxu0 %vm450_vm5, %v8481_v56 }
 0x1c5   : > { %9531 = vmatmul.mubr.msk.f32.gmra.mrb[28].mxu1 %vm450_vm5, %v8481_v56  ;;  %2668 = vmatprep.mubr.f32.mxu0 %v15364_v23 }
 0x1c6   : > { %9541 = vmatprep.mubr.msk.f32.mxu1 %vm11703_vm0, %v15364_v23 }
 0x1c8   : > { %8547 = vmatmul.mubr.msk.f32.vlgmr.msra.gmra.mrb[30].mxu0 %vm450_vm5, %v8530_v57 }
 0x1c9   : > { %9542 = vmatmul.mubr.msk.f32.vlgmr.msra.gmra.mrb[30].mxu1 %vm450_vm5, %v8530_v57  ;;  %10084 = vmatpush1.bf16.msra.mxu0 %v11807_v27  ;;  %v8532_v27 = vld [vmem:[%s15353_s1 + $0x2e0] sm:$0xff] }
 0x1ca   : > { %2674 = vmatprep.mubr.f32.mxu0 %v15364_v23  ;;  %9544 = vmatprep.mubr.msk.f32.mxu1 %vm11703_vm0, %v15364_v23 }
 0x1cb   : > { %10087 = vmatprep.subr.msk.bf16.mxu0 %vm11844_vm4, %v11883_v22  ;;  %10093 = vmatpush3.bf16.msra.mxu1 %v11816_v28  ;;  %v8533_v28 = vld [vmem:[%s15353_s1 + $0x2e8] sm:$0xff]  ;;  %v8534_v22 = vld [vmem:[%s15353_s1 + $0x2f0] sm:$0xff] }
 0x1cc   : > { %8548 = vmatmul.mubr.msk.f32.gmra.mrb[32].mxu0 %vm450_vm5, %v8531_v11  ;;  %10094 = vmatprep.subr.bf16.mxu1 %v15362_v0 }
 0x1cd   : > { %9545 = vmatmul.mubr.msk.f32.gmra.mrb[32].mxu1 %vm450_vm5, %v8531_v11  ;;  %10090 = vmatpush1.bf16.msk.msra.mxu0 %vm11844_vm4, %v11906_v15  ;;  %v8535_v15 = vld [vmem:[%s15353_s1 + $0x2f8] sm:$0xff] }
 0x1ce   : > { %10099 = vmatprep.subr.bf16.mxu0 %v11916_v30  ;;  %2680 = vmatprep.mubr.f32.mxu0 %v15364_v23  ;;  %v8537_v30 = vld [vmem:[%s15353_s1 + $0x308] sm:$0xff] }
 0x1cf   : > { %9547 = vmatprep.mubr.msk.f32.mxu1 %vm11703_vm0, %v15364_v23  ;;  %10097 = vmatpush3.bf16.msk.msra.mxu1 %vm11844_vm4, %v11914_v29  ;;  %v8536_v29 = vld [vmem:[%s15353_s1 + $0x300] sm:$0xff] }
 0x1d0   : > { %8549 = vmatmul.mubr.msk.f32.gmra.mrb[34].mxu0 %vm450_vm5, %v8532_v27  ;;  %10108 = vmatprep.subr.bf16.mxu1 %v15362_v0 }
 0x1d1   : > { %9548 = vmatmul.mubr.msk.f32.gmra.mrb[34].mxu1 %vm450_vm5, %v8532_v27  ;;  %2686 = vmatprep.mubr.f32.mxu0 %v15364_v23  ;;  %v8623_v27 = vld [vmem:[%s15353_s1 + $0x3a8] sm:$0xff] }
 0x1d2   : > { %9550 = vmatprep.mubr.msk.f32.mxu1 %vm11703_vm0, %v15364_v23 }
 0x1d4   : > { %8550 = vmatmul.mubr.msk.f32.gmra.mrb[36].mxu0 %vm450_vm5, %v8533_v28 }
 0x1d5   : > { %9551 = vmatmul.mubr.msk.f32.gmra.mrb[36].mxu1 %vm450_vm5, %v8533_v28  ;;  %2692 = vmatprep.mubr.f32.mxu0 %v15364_v23 }
 0x1d6   : > { %9553 = vmatprep.mubr.msk.f32.mxu1 %vm11703_vm0, %v15364_v23 }
 0x1d8   : > { %8551 = vmatmul.mubr.msk.f32.gmra.mrb[38].mxu0 %vm450_vm5, %v8534_v22 }
 0x1d9   : > { %9554 = vmatmul.mubr.msk.f32.gmra.mrb[38].mxu1 %vm450_vm5, %v8534_v22  ;;  %2698 = vmatprep.mubr.f32.mxu0 %v15364_v23 }
 0x1da   : > { %9556 = vmatprep.mubr.msk.f32.mxu1 %vm11703_vm0, %v15364_v23 }
 0x1dc   : > { %8552 = vmatmul.mubr.msk.f32.gmra.mrb[40].mxu0 %vm450_vm5, %v8535_v15 }
 0x1dd   : > { %9557 = vmatmul.mubr.msk.f32.gmra.mrb[40].mxu1 %vm450_vm5, %v8535_v15  ;;  %2704 = vmatprep.mubr.f32.mxu0 %v15364_v23 }
 0x1de   : > { %9559 = vmatprep.mubr.msk.f32.mxu1 %vm11703_vm0, %v15364_v23 }
 0x1e0   : > { %8553 = vmatmul.mubr.msk.f32.gmra.mrb[42].mxu0 %vm450_vm5, %v8536_v29 }
 0x1e1   : > { %9560 = vmatmul.mubr.msk.f32.gmra.mrb[42].mxu1 %vm450_vm5, %v8536_v29  ;;  %2710 = vmatprep.mubr.f32.mxu0 %v15364_v23 }
 0x1e2   : > { %9562 = vmatprep.mubr.msk.f32.mxu1 %vm11703_vm0, %v15364_v23 }
 0x1e4   : > { %8554 = vmatmul.mubr.msk.f32.gmra.mrb[44].mxu0 %vm450_vm5, %v8537_v30 }
 0x1e5   : > { %9563 = vmatmul.mubr.msk.f32.gmra.mrb[44].mxu1 %vm450_vm5, %v8537_v30  ;;  %2716 = vmatprep.mubr.f32.mxu0 %v15364_v23  ;;  %v8624_v30 = vld [vmem:[%s15353_s1 + $0x3b0] sm:$0xff] }
 0x1e6   : > { %9565 = vmatprep.mubr.msk.f32.mxu1 %vm11703_vm0, %v15364_v23 }
 0x1e8   : > { %8555 = vmatmul.mubr.msk.f32.gmra.mrb[46].mxu0 %vm450_vm5, %v8538_v12 }
 0x1e9   : > { %9566 = vmatmul.mubr.msk.f32.gmra.mrb[46].mxu1 %vm450_vm5, %v8538_v12  ;;  %2722 = vmatprep.mubr.f32.mxu0 %v15364_v23  ;;  %v4743_v12 = vld [vmem:[%s15354_s2 + $0x8] sm:$0xff] }
 0x1ea   : > { %9568 = vmatprep.mubr.msk.f32.mxu1 %vm11703_vm0, %v15364_v23 }
 0x1ec   : > { %8556 = vmatmul.mubr.msk.f32.gmra.mrb[48].mxu0 %vm450_vm5, %v8539_v58 }
 0x1ed   : > { %9569 = vmatmul.mubr.msk.f32.gmra.mrb[48].mxu1 %vm450_vm5, %v8539_v58  ;;  %2728 = vmatprep.mubr.f32.mxu0 %v15364_v23  ;;  %v4742_v58 = vld [vmem:[%s15354_s2] sm:$0xff] }
 0x1ee   : > { %9571 = vmatprep.mubr.msk.f32.mxu1 %vm11703_vm0, %v15364_v23 }
 0x1f0   : > { %8557 = vmatmul.mubr.msk.f32.gmra.mrb[50].mxu0 %vm450_vm5, %v8540_v17 }
 0x1f1   : > { %9572 = vmatmul.mubr.msk.f32.gmra.mrb[50].mxu1 %vm450_vm5, %v8540_v17  ;;  %2734 = vmatprep.mubr.f32.mxu0 %v15364_v23  ;;  %v11708_v17 = vmov 0  }
 0x1f2   : > { %9574 = vmatprep.mubr.msk.f32.mxu1 %vm11703_vm0, %v15364_v23  ;;  %11320 = vset.pattern.permute.xlu1 %v11708_v17 }
 0x1f3   : > { %11319 = vset.pattern.permute.xlu0 %v11708_v17  ;;  %4764 = vperm.xlu1 %11320, %v4743_v12   ;;  %v4755_v17 = vld [vmem:[%s15354_s2 + $0x68] sm:$0xff] }
 0x1f4   : > { %8558 = vmatmul.mubr.msk.f32.gmra.mrb[52].mxu0 %vm450_vm5, %v8541_v36  ;;  %4759 = vperm.xlu0 %11319, %v4742_v58   ;;  %v8664_v58 = vld [vmem:[%s15353_s1 + $0x3e8] sm:$0xff] }
 0x1f5   : > { %9575 = vmatmul.mubr.msk.f32.gmra.mrb[52].mxu1 %vm450_vm5, %v8541_v36  ;;  %2740 = vmatprep.mubr.f32.mxu0 %v15364_v23 }
 0x1f6   : > { %9577 = vmatprep.mubr.msk.f32.mxu1 %vm11703_vm0, %v15364_v23 }
 0x1f8   : > { %8559 = vmatmul.mubr.msk.f32.gmra.mrb[54].mxu0 %vm450_vm5, %v8542_v8 }
 0x1f9   : > { %9578 = vmatmul.mubr.msk.f32.gmra.mrb[54].mxu1 %vm450_vm5, %v8542_v8  ;;  %2746 = vmatprep.mubr.f32.mxu0 %v15364_v23 }
 0x1fa   : > { %9580 = vmatprep.mubr.msk.f32.mxu1 %vm11703_vm0, %v15364_v23 }
 0x1fc   : > { %8560 = vmatmul.mubr.msk.f32.gmra.mrb[56].mxu0 %vm450_vm5, %v8543_v62 }
 0x1fd   : > { %9581 = vmatmul.mubr.msk.f32.gmra.mrb[56].mxu1 %vm450_vm5, %v8543_v62  ;;  %2752 = vmatprep.mubr.f32.mxu0 %v15364_v23 }
 0x1fe   : > { %9583 = vmatprep.mubr.msk.f32.mxu1 %vm11703_vm0, %v15364_v23 }
 0x200   : > { %8561 = vmatmul.mubr.msk.f32.gmra.mrb[58].mxu0 %vm450_vm5, %v8544_v1 }
 0x201   : > { %9584 = vmatmul.mubr.msk.f32.gmra.mrb[58].mxu1 %vm450_vm5, %v8544_v1  ;;  %3008 = vmatprep.mubr.f32.mxu0 %v15364_v23  ;;  %v4744_v1 = vld [vmem:[%s15354_s2 + $0x10] sm:$0xff] }
 0x202   : > { %9594 = vmatprep.mubr.msk.f32.mxu1 %vm11703_vm0, %v15364_v23  ;;  %4769 = vperm.xlu1 %11320, %v4744_v1  }
 0x204   : > { %8580 = vmatmul.mubr.msk.f32.vlgmr.msra.gmra.mrb[30].mxu0 %vm450_vm5, %v8515_v3 }
 0x205   : > { %9595 = vmatmul.mubr.msk.f32.vlgmr.msra.gmra.mrb[30].mxu1 %vm450_vm5, %v8515_v3  ;;  %10101 = vmatpush1.bf16.msra.mxu0 %v12061_v21  ;;  %v8517_v21 = vld [vmem:[%s15353_s1 + $0x268] sm:$0xff] }
 0x206   : > { %10110 = vmatpush3.bf16.msra.mxu1 %v12063_v24  ;;  %10104 = vmatprep.subr.msk.bf16.mxu0 %vm11844_vm4, %v12067_v19  ;;  %v8518_v24 = vld [vmem:[%s15353_s1 + $0x270] sm:$0xff]  ;;  %v8519_v19 = vld [vmem:[%s15353_s1 + $0x278] sm:$0xff] }
 0x207   : > { %3014 = vmatprep.mubr.f32.mxu0 %v15364_v23  ;;  %9597 = vmatprep.mubr.msk.f32.mxu1 %vm11703_vm0, %v15364_v23 }
 0x208   : > { %10111 = vmatprep.subr.bf16.mxu1 %v15362_v0  ;;  %8581 = vmatmul.mubr.msk.f32.gmra.mrb[32].mxu0 %vm450_vm5, %v8516_v5 }
 0x209   : > { %9598 = vmatmul.mubr.msk.f32.gmra.mrb[32].mxu1 %vm450_vm5, %v8516_v5  ;;  %10107 = vmatpush1.bf16.msk.msra.mxu0 %vm11844_vm4, %v12090_v33  ;;  %v8520_v33 = vld [vmem:[%s15353_s1 + $0x280] sm:$0xff]  ;;  %v8625_v5 = vld [vmem:[%s15353_s1 + $0x3b8] sm:$0xff] }
 0x20a   : > { %10114 = vmatpush3.bf16.msk.msra.mxu1 %vm11844_vm4, %v12093_v34  ;;  %10116 = vmatprep.subr.bf16.mxu0 %v12098_v35  ;;  %v8521_v34 = vld [vmem:[%s15353_s1 + $0x288] sm:$0xff]  ;;  %v8522_v35 = vld [vmem:[%s15353_s1 + $0x290] sm:$0xff] }
 0x20b   : > { %3020 = vmatprep.mubr.f32.mxu0 %v15364_v23  ;;  %9600 = vmatprep.mubr.msk.f32.mxu1 %vm11703_vm0, %v15364_v23 }
 0x20c   : > { %8582 = vmatmul.mubr.msk.f32.gmra.mrb[34].mxu0 %vm450_vm5, %v8517_v21  ;;  %10125 = vmatprep.subr.bf16.mxu1 %v15362_v0 }
 0x20d   : > { %9601 = vmatmul.mubr.msk.f32.gmra.mrb[34].mxu1 %vm450_vm5, %v8517_v21  ;;  %3026 = vmatprep.mubr.f32.mxu0 %v15364_v23  ;;  %v4745_v21 = vld [vmem:[%s15354_s2 + $0x18] sm:$0xff] }
 0x20e   : > { %9603 = vmatprep.mubr.msk.f32.mxu1 %vm11703_vm0, %v15364_v23  ;;  %4774 = vperm.xlu0 %11319, %v4745_v21  }
 0x210   : > { %8583 = vmatmul.mubr.msk.f32.gmra.mrb[36].mxu0 %vm450_vm5, %v8518_v24 }
 0x211   : > { %9604 = vmatmul.mubr.msk.f32.gmra.mrb[36].mxu1 %vm450_vm5, %v8518_v24  ;;  %3032 = vmatprep.mubr.f32.mxu0 %v15364_v23 }
 0x212   : > { %9606 = vmatprep.mubr.msk.f32.mxu1 %vm11703_vm0, %v15364_v23 }
 0x214   : > { %8584 = vmatmul.mubr.msk.f32.gmra.mrb[38].mxu0 %vm450_vm5, %v8519_v19 }
 0x215   : > { %9607 = vmatmul.mubr.msk.f32.gmra.mrb[38].mxu1 %vm450_vm5, %v8519_v19  ;;  %3038 = vmatprep.mubr.f32.mxu0 %v15364_v23 }
 0x216   : > { %9609 = vmatprep.mubr.msk.f32.mxu1 %vm11703_vm0, %v15364_v23 }
 0x218   : > { %8585 = vmatmul.mubr.msk.f32.gmra.mrb[40].mxu0 %vm450_vm5, %v8520_v33 }
 0x219   : > { %9610 = vmatmul.mubr.msk.f32.gmra.mrb[40].mxu1 %vm450_vm5, %v8520_v33  ;;  %3044 = vmatprep.mubr.f32.mxu0 %v15364_v23 }
 0x21a   : > { %9612 = vmatprep.mubr.msk.f32.mxu1 %vm11703_vm0, %v15364_v23 }
 0x21c   : > { %8586 = vmatmul.mubr.msk.f32.gmra.mrb[42].mxu0 %vm450_vm5, %v8521_v34 }
 0x21d   : > { %9613 = vmatmul.mubr.msk.f32.gmra.mrb[42].mxu1 %vm450_vm5, %v8521_v34  ;;  %3050 = vmatprep.mubr.f32.mxu0 %v15364_v23  ;;  %v4746_v34 = vld [vmem:[%s15354_s2 + $0x20] sm:$0xff] }
 0x21e   : > { %9615 = vmatprep.mubr.msk.f32.mxu1 %vm11703_vm0, %v15364_v23  ;;  %4779 = vperm.xlu1 %11320, %v4746_v34   ;;  %v8665_v34 = vld [vmem:[%s15353_s1 + $0x3f0] sm:$0xff] }
 0x220   : > { %8587 = vmatmul.mubr.msk.f32.gmra.mrb[44].mxu0 %vm450_vm5, %v8522_v35 }
 0x221   : > { %9616 = vmatmul.mubr.msk.f32.gmra.mrb[44].mxu1 %vm450_vm5, %v8522_v35  ;;  %3056 = vmatprep.mubr.f32.mxu0 %v15364_v23 }
 0x222   : > { %9618 = vmatprep.mubr.msk.f32.mxu1 %vm11703_vm0, %v15364_v23 }
 0x224   : > { %8588 = vmatmul.mubr.msk.f32.gmra.mrb[46].mxu0 %vm450_vm5, %v8523_v46 }
 0x225   : > { %9619 = vmatmul.mubr.msk.f32.gmra.mrb[46].mxu1 %vm450_vm5, %v8523_v46  ;;  %3062 = vmatprep.mubr.f32.mxu0 %v15364_v23  ;;  %v8659_v46 = vld [vmem:[%s15353_s1 + $0x3c0] sm:$0xff] }
 0x226   : > { %9621 = vmatprep.mubr.msk.f32.mxu1 %vm11703_vm0, %v15364_v23 }
 0x228   : > { %8589 = vmatmul.mubr.msk.f32.gmra.mrb[48].mxu0 %vm450_vm5, %v8524_v18 }
 0x229   : > { %9622 = vmatmul.mubr.msk.f32.gmra.mrb[48].mxu1 %vm450_vm5, %v8524_v18  ;;  %3068 = vmatprep.mubr.f32.mxu0 %v15364_v23  ;;  %v4747_v18 = vld [vmem:[%s15354_s2 + $0x28] sm:$0xff] }
 0x22a   : > { %9624 = vmatprep.mubr.msk.f32.mxu1 %vm11703_vm0, %v15364_v23  ;;  %4784 = vperm.xlu0 %11319, %v4747_v18  }
 0x22c   : > { %8590 = vmatmul.mubr.msk.f32.gmra.mrb[50].mxu0 %vm450_vm5, %v8525_v25 }
 0x22d   : > { %9625 = vmatmul.mubr.msk.f32.gmra.mrb[50].mxu1 %vm450_vm5, %v8525_v25  ;;  %3074 = vmatprep.mubr.f32.mxu0 %v15364_v23 }
 0x22e   : > { %9627 = vmatprep.mubr.msk.f32.mxu1 %vm11703_vm0, %v15364_v23 }
 0x230   : > { %8591 = vmatmul.mubr.msk.f32.gmra.mrb[52].mxu0 %vm450_vm5, %v8526_v13 }
 0x231   : > { %9628 = vmatmul.mubr.msk.f32.gmra.mrb[52].mxu1 %vm450_vm5, %v8526_v13  ;;  %3080 = vmatprep.mubr.f32.mxu0 %v15364_v23 }
 0x232   : > { %9630 = vmatprep.mubr.msk.f32.mxu1 %vm11703_vm0, %v15364_v23 }
 0x234   : > { %8592 = vmatmul.mubr.msk.f32.gmra.mrb[54].mxu0 %vm450_vm5, %v8527_v14 }
 0x235   : > { %9631 = vmatmul.mubr.msk.f32.gmra.mrb[54].mxu1 %vm450_vm5, %v8527_v14  ;;  %3086 = vmatprep.mubr.f32.mxu0 %v15364_v23 }
 0x236   : > { %9633 = vmatprep.mubr.msk.f32.mxu1 %vm11703_vm0, %v15364_v23 }
 0x238   : > { %8593 = vmatmul.mubr.msk.f32.gmra.mrb[56].mxu0 %vm450_vm5, %v8528_v16 }
 0x239   : > { %9634 = vmatmul.mubr.msk.f32.gmra.mrb[56].mxu1 %vm450_vm5, %v8528_v16  ;;  %3092 = vmatprep.mubr.f32.mxu0 %v15364_v23 }
 0x23a   : > { %9636 = vmatprep.mubr.msk.f32.mxu1 %vm11703_vm0, %v15364_v23 }
 0x23c   : > { %8594 = vmatmul.mubr.msk.f32.gmra.mrb[58].mxu0 %vm450_vm5, %v8529_v10 }
 0x23d   : > { %9637 = vmatmul.mubr.msk.f32.gmra.mrb[58].mxu1 %vm450_vm5, %v8529_v10  ;;  %3364 = vmatprep.mubr.f32.mxu0 %v15364_v23  ;;  %v8660_v10 = vld [vmem:[%s15353_s1 + $0x3c8] sm:$0xff] }
 0x23e   : > { %9647 = vmatprep.mubr.msk.f32.mxu1 %vm11703_vm0, %v15364_v23 }
 0x240   : > { %8628 = vmatmul.mubr.msk.f32.vlgmr.msra.gmra.mrb[30].mxu0 %vm450_vm5, %v8611_v20 }
 0x241   : > { %9648 = vmatmul.mubr.msk.f32.vlgmr.msra.gmra.mrb[30].mxu1 %vm450_vm5, %v8611_v20  ;;  %10118 = vmatpush1.bf16.msra.mxu0 %v12243_v38  ;;  %v8613_v38 = vld [vmem:[%s15353_s1 + $0x358] sm:$0xff] }
 0x242   : > { %10127 = vmatpush3.bf16.msra.mxu1 %v12245_v39  ;;  %10121 = vmatprep.subr.msk.bf16.mxu0 %vm11844_vm4, %v12249_v42  ;;  %v8614_v39 = vld [vmem:[%s15353_s1 + $0x360] sm:$0xff]  ;;  %v8615_v42 = vld [vmem:[%s15353_s1 + $0x368] sm:$0xff] }
 0x243   : > { %3370 = vmatprep.mubr.f32.mxu0 %v15364_v23  ;;  %9650 = vmatprep.mubr.msk.f32.mxu1 %vm11703_vm0, %v15364_v23 }
 0x244   : > { %10128 = vmatprep.subr.bf16.mxu1 %v15362_v0  ;;  %8629 = vmatmul.mubr.msk.f32.gmra.mrb[32].mxu0 %vm450_vm5, %v8612_v31 }
 0x245   : > { %9651 = vmatmul.mubr.msk.f32.gmra.mrb[32].mxu1 %vm450_vm5, %v8612_v31  ;;  %10124 = vmatpush1.bf16.msk.msra.mxu0 %vm11844_vm4, %v12272_v50  ;;  %v8616_v50 = vld [vmem:[%s15353_s1 + $0x370] sm:$0xff] }
 0x246   : > { %10131 = vmatpush3.bf16.msk.msra.mxu1 %vm11844_vm4, %v12275_v51  ;;  %10133 = vmatprep.subr.bf16.mxu0 %v12280_v52  ;;  %v8617_v51 = vld [vmem:[%s15353_s1 + $0x378] sm:$0xff]  ;;  %v8618_v52 = vld [vmem:[%s15353_s1 + $0x380] sm:$0xff] }
 0x247   : > { %3376 = vmatprep.mubr.f32.mxu0 %v15364_v23  ;;  %9653 = vmatprep.mubr.msk.f32.mxu1 %vm11703_vm0, %v15364_v23 }
 0x248   : > { %8630 = vmatmul.mubr.msk.f32.gmra.mrb[34].mxu0 %vm450_vm5, %v8613_v38  ;;  %10142 = vmatprep.subr.bf16.mxu1 %v15362_v0 }
 0x249   : > { %9654 = vmatmul.mubr.msk.f32.gmra.mrb[34].mxu1 %vm450_vm5, %v8613_v38  ;;  %3382 = vmatprep.mubr.f32.mxu0 %v15364_v23  ;;  %v8661_v38 = vld [vmem:[%s15353_s1 + $0x3d0] sm:$0xff] }
 0x24a   : > { %9656 = vmatprep.mubr.msk.f32.mxu1 %vm11703_vm0, %v15364_v23 }
 0x24c   : > { %8631 = vmatmul.mubr.msk.f32.gmra.mrb[36].mxu0 %vm450_vm5, %v8614_v39 }
 0x24d   : > { %9657 = vmatmul.mubr.msk.f32.gmra.mrb[36].mxu1 %vm450_vm5, %v8614_v39  ;;  %3388 = vmatprep.mubr.f32.mxu0 %v15364_v23  ;;  %v4749_v39 = vld [vmem:[%s15354_s2 + $0x38] sm:$0xff] }
 0x24e   : > { %9659 = vmatprep.mubr.msk.f32.mxu1 %vm11703_vm0, %v15364_v23  ;;  %4794 = vperm.xlu0 %11319, %v4749_v39  }
 0x250   : > { %8632 = vmatmul.mubr.msk.f32.gmra.mrb[38].mxu0 %vm450_vm5, %v8615_v42 }
 0x251   : > { %9660 = vmatmul.mubr.msk.f32.gmra.mrb[38].mxu1 %vm450_vm5, %v8615_v42  ;;  %3394 = vmatprep.mubr.f32.mxu0 %v15364_v23 }
 0x252   : > { %9662 = vmatprep.mubr.msk.f32.mxu1 %vm11703_vm0, %v15364_v23 }
 0x254   : > { %8633 = vmatmul.mubr.msk.f32.gmra.mrb[40].mxu0 %vm450_vm5, %v8616_v50 }
 0x255   : > { %9663 = vmatmul.mubr.msk.f32.gmra.mrb[40].mxu1 %vm450_vm5, %v8616_v50  ;;  %3400 = vmatprep.mubr.f32.mxu0 %v15364_v23 }
 0x256   : > { %9665 = vmatprep.mubr.msk.f32.mxu1 %vm11703_vm0, %v15364_v23 }
 0x258   : > { %8634 = vmatmul.mubr.msk.f32.gmra.mrb[42].mxu0 %vm450_vm5, %v8617_v51 }
 0x259   : > { %9666 = vmatmul.mubr.msk.f32.gmra.mrb[42].mxu1 %vm450_vm5, %v8617_v51  ;;  %3406 = vmatprep.mubr.f32.mxu0 %v15364_v23  ;;  %v8662_v51 = vld [vmem:[%s15353_s1 + $0x3d8] sm:$0xff] }
 0x25a   : > { %9668 = vmatprep.mubr.msk.f32.mxu1 %vm11703_vm0, %v15364_v23 }
 0x25c   : > { %8635 = vmatmul.mubr.msk.f32.gmra.mrb[44].mxu0 %vm450_vm5, %v8618_v52 }
 0x25d   : > { %9669 = vmatmul.mubr.msk.f32.gmra.mrb[44].mxu1 %vm450_vm5, %v8618_v52  ;;  %3412 = vmatprep.mubr.f32.mxu0 %v15364_v23  ;;  %v4751_v52 = vld [vmem:[%s15354_s2 + $0x48] sm:$0xff] }
 0x25e   : > { %9671 = vmatprep.mubr.msk.f32.mxu1 %vm11703_vm0, %v15364_v23  ;;  %4804 = vperm.xlu0 %11319, %v4751_v52   ;;  %v8670_v52 = vld [vmem:[%s15353_s1 + $0x418] sm:$0xff] }
 0x25f   : > { %v13045_v37 = vpop.f32.mrb[0].mxu0 }
 0x260   : > { %v13047_v40 = vpop.f32.mrb[0].mxu1  ;;  %v13049_v41 = vpop.f32.mrb[1].mxu0  ;;  %8636 = vmatmul.mubr.msk.f32.gmra.mrb[46].mxu0 %vm450_vm5, %v8619_v32 }
 0x261   : > { %v9490_v43 = vpop.f32.mrb[1].mxu1  ;;  %9672 = vmatmul.mubr.msk.f32.gmra.mrb[46].mxu1 %vm450_vm5, %v8619_v32  ;;  %3418 = vmatprep.mubr.f32.mxu0 %v15364_v23 }
 0x262   : > { %9674 = vmatprep.mubr.msk.f32.mxu1 %vm11703_vm0, %v15364_v23 }
 0x263   : > { %v13059_v53 = vpop.f32.mrb[2].mxu0 }
 0x264   : > { %v13061_v26 = vpop.f32.mrb[2].mxu1  ;;  %v13063_v63 = vpop.f32.mrb[3].mxu0  ;;  %8637 = vmatmul.mubr.msk.f32.gmra.mrb[48].mxu0 %vm450_vm5, %v8620_v49 }
 0x265   : > { %v9493_v7 = vpop.f32.mrb[3].mxu1  ;;  %9675 = vmatmul.mubr.msk.f32.gmra.mrb[48].mxu1 %vm450_vm5, %v8620_v49  ;;  %3424 = vmatprep.mubr.f32.mxu0 %v15364_v23 }
 0x266   : > { %9677 = vmatprep.mubr.msk.f32.mxu1 %vm11703_vm0, %v15364_v23  ;;  %v4752_v7 = vld [vmem:[%s15354_s2 + $0x50] sm:$0xff] }
 0x267   : > { %v13073_v44 = vpop.f32.mrb[4].mxu0 }
 0x268   : > { %v13075_v45 = vpop.f32.mrb[4].mxu1  ;;  %v13077_v47 = vpop.f32.mrb[5].mxu0  ;;  %8638 = vmatmul.mubr.msk.f32.gmra.mrb[50].mxu0 %vm450_vm5, %v8621_v9 }
 0x269   : > { %v9496_v48 = vpop.f32.mrb[5].mxu1  ;;  %9678 = vmatmul.mubr.msk.f32.gmra.mrb[50].mxu1 %vm450_vm5, %v8621_v9  ;;  %3430 = vmatprep.mubr.f32.mxu0 %v15364_v23 }
 0x26a   : > { %9680 = vmatprep.mubr.msk.f32.mxu1 %vm11703_vm0, %v15364_v23  ;;  %v8663_v48 = vld [vmem:[%s15353_s1 + $0x3e0] sm:$0xff] }
 0x26b   : > { %v13087_v55 = vpop.f32.mrb[6].mxu0 }
 0x26c   : > { %v13089_v56 = vpop.f32.mrb[6].mxu1  ;;  %v13091_v57 = vpop.f32.mrb[7].mxu0  ;;  %8639 = vmatmul.mubr.msk.f32.gmra.mrb[52].mxu0 %vm450_vm5, %v8622_v54 }
 0x26d   : > { %v9499_v11 = vpop.f32.mrb[7].mxu1  ;;  %9681 = vmatmul.mubr.msk.f32.gmra.mrb[52].mxu1 %vm450_vm5, %v8622_v54  ;;  %3436 = vmatprep.mubr.f32.mxu0 %v15364_v23  ;;  %v4753_v54 = vld [vmem:[%s15354_s2 + $0x58] sm:$0xff] }
 0x26e   : > { %9683 = vmatprep.mubr.msk.f32.mxu1 %vm11703_vm0, %v15364_v23  ;;  %4814 = vperm.xlu0 %11319, %v4753_v54   ;;  %v8707_v54 = vld [vmem:[%s15353_s1 + $0x438] sm:$0xff] }
 0x26f   : > { %v13101_v28 = vpop.f32.mrb[8].mxu0 }
 0x270   : > { %v13103_v22 = vpop.f32.mrb[8].mxu1  ;;  %v13105_v15 = vpop.f32.mrb[9].mxu0  ;;  %8640 = vmatmul.mubr.msk.f32.gmra.mrb[54].mxu0 %vm450_vm5, %v8623_v27 }
 0x271   : > { %v9502_v29 = vpop.f32.mrb[9].mxu1  ;;  %9684 = vmatmul.mubr.msk.f32.gmra.mrb[54].mxu1 %vm450_vm5, %v8623_v27  ;;  %3442 = vmatprep.mubr.f32.mxu0 %v15364_v23 }
 0x272   : > { %9686 = vmatprep.mubr.msk.f32.mxu1 %vm11703_vm0, %v15364_v23  ;;  %4824 = vperm.xlu0 %11319, %v4755_v17   ;;  %v8711_v17 = vld [vmem:[%s15353_s1 + $0x458] sm:$0xff] }
 0x273   : > { %v13121_v36 = vpop.f32.mrb[10].mxu0 }
 0x274   : > { %v13123_v8 = vpop.f32.mrb[10].mxu1  ;;  %v13125_v62 = vpop.f32.mrb[11].mxu0  ;;  %8641 = vmatmul.mubr.msk.f32.gmra.mrb[56].mxu0 %vm450_vm5, %v8624_v30 }
 0x275   : > { %v9505_v3 = vpop.f32.mrb[11].mxu1  ;;  %9687 = vmatmul.mubr.msk.f32.gmra.mrb[56].mxu1 %vm450_vm5, %v8624_v30  ;;  %3448 = vmatprep.mubr.f32.mxu0 %v15364_v23  ;;  %v4754_v30 = vld [vmem:[%s15354_s2 + $0x60] sm:$0xff] }
 0x276   : > { %9689 = vmatprep.mubr.msk.f32.mxu1 %vm11703_vm0, %v15364_v23 }
 0x277   : > { %v13141_v24 = vpop.f32.mrb[12].mxu0 }
 0x278   : > { %v13143_v19 = vpop.f32.mrb[12].mxu1  ;;  %v13145_v33 = vpop.f32.mrb[13].mxu0  ;;  %8642 = vmatmul.mubr.msk.f32.gmra.mrb[58].mxu0 %vm450_vm5, %v8625_v5 }
 0x279   : > { %v9508_v35 = vpop.f32.mrb[13].mxu1  ;;  %9690 = vmatmul.mubr.msk.f32.gmra.mrb[58].mxu1 %vm450_vm5, %v8625_v5  ;;  %3765 = vmatprep.mubr.f32.mxu0 %v15364_v23 }
 0x27a   : > { %9700 = vmatprep.mubr.msk.f32.mxu1 %vm11703_vm0, %v15364_v23 }
 0x27b   : > { %v13161_v25 = vpop.f32.mrb[14].mxu0 }
 0x27c   : > { %v13163_v13 = vpop.f32.mrb[14].mxu1  ;;  %v13165_v14 = vpop.f32.mrb[15].mxu0  ;;  %8676 = vmatmul.mubr.msk.f32.vlgmr.msra.gmra.mrb[30].mxu0 %vm450_vm5, %v8659_v46 }
 0x27d   : > { %v9511_v16 = vpop.f32.mrb[15].mxu1  ;;  %9701 = vmatmul.mubr.msk.f32.vlgmr.msra.gmra.mrb[30].mxu1 %vm450_vm5, %v8659_v46  ;;  %10135 = vmatpush1.bf16.msra.mxu0 %v12415_v6 }
 0x27e   : > { %10144 = vmatpush3.bf16.msra.mxu1 %v12423_v61  ;;  %10138 = vmatprep.subr.msk.bf16.mxu0 %vm11844_vm4, %v12421_v60  ;;  %v4748_v61 = vld [vmem:[%s15354_s2 + $0x30] sm:$0xff] }
 0x27f   : > { %v13177_v20 = vpop.f32.mrb[16].mxu0  ;;  %3771 = vmatprep.mubr.f32.mxu0 %v15364_v23  ;;  %9703 = vmatprep.mubr.msk.f32.mxu1 %vm11703_vm0, %v15364_v23 }
 0x280   : > { %v13182_v31 = vpop.f32.mrb[16].mxu1  ;;  %10145 = vmatprep.subr.bf16.mxu1 %v15362_v0  ;;  %v13185_v6 = vpop.f32.mrb[17].mxu0  ;;  %8677 = vmatmul.mubr.msk.f32.gmra.mrb[32].mxu0 %vm450_vm5, %v8660_v10 }
 0x281   : > { %v9514_v60 = vpop.f32.mrb[17].mxu1  ;;  %9704 = vmatmul.mubr.msk.f32.gmra.mrb[32].mxu1 %vm450_vm5, %v8660_v10  ;;  %10141 = vmatpush1.bf16.msk.msra.mxu0 %vm11844_vm4, %v12428_v2  ;;  %v8666_v10 = vld [vmem:[%s15353_s1 + $0x3f8] sm:$0xff] }
 0x282   : > { %10148 = vmatpush3.bf16.msk.msra.mxu1 %vm11844_vm4, %v12442_v4  ;;  %3777 = vmatprep.mubr.f32.mxu0 %v15364_v23 }
 0x283   : > { %v13205_v42 = vpop.f32.mrb[18].mxu0  ;;  %9706 = vmatprep.mubr.msk.f32.mxu1 %vm11703_vm0, %v15364_v23  ;;  %4789 = vperm.xlu1 %11320, %v4748_v61  }
 0x284   : > { %v13209_v2 = vpop.f32.mrb[18].mxu1  ;;  %v13211_v50 = vpop.f32.mrb[19].mxu0  ;;  %8678 = vmatmul.mubr.msk.f32.gmra.mrb[34].mxu0 %vm450_vm5, %v8661_v38 }
 0x285   : > { %v9517_v4 = vpop.f32.mrb[19].mxu1  ;;  %9707 = vmatmul.mubr.msk.f32.gmra.mrb[34].mxu1 %vm450_vm5, %v8661_v38  ;;  %3783 = vmatprep.mubr.f32.mxu0 %v15364_v23 }
 0x286   : > { %9709 = vmatprep.mubr.msk.f32.mxu1 %vm11703_vm0, %v15364_v23  ;;  %v8668_v4 = vld [vmem:[%s15353_s1 + $0x408] sm:$0xff] }
 0x287   : > { %v13227_v32 = vpop.f32.mrb[20].mxu0  ;;  %4799 = vperm.xlu1 %11320, %v4750_v59   ;;  %v8667_v59 = vld [vmem:[%s15353_s1 + $0x400] sm:$0xff] }
 0x288   : > { %v13229_v43 = vpop.f32.mrb[20].mxu1  ;;  %v13231_v49 = vpop.f32.mrb[21].mxu0  ;;  %8679 = vmatmul.mubr.msk.f32.gmra.mrb[36].mxu0 %vm450_vm5, %v8662_v51 }
 0x289   : > { %v9520_v9 = vpop.f32.mrb[21].mxu1  ;;  %9710 = vmatmul.mubr.msk.f32.gmra.mrb[36].mxu1 %vm450_vm5, %v8662_v51  ;;  %3789 = vmatprep.mubr.f32.mxu0 %v15364_v23  ;;  %v8669_v51 = vld [vmem:[%s15353_s1 + $0x410] sm:$0xff] }
 0x28a   : > { %9712 = vmatprep.mubr.msk.f32.mxu1 %vm11703_vm0, %v15364_v23  ;;  %v8672_v9 = vld [vmem:[%s15353_s1 + $0x428] sm:$0xff] }
 0x28b   : > { %v13247_v11 = vpop.f32.mrb[22].mxu0  ;;  %4809 = vperm.xlu1 %11320, %v4752_v7   ;;  %v8671_v7 = vld [vmem:[%s15353_s1 + $0x420] sm:$0xff] }
 0x28c   : > { %v13249_v27 = vpop.f32.mrb[22].mxu1  ;;  %v13251_v29 = vpop.f32.mrb[23].mxu0  ;;  %8680 = vmatmul.mubr.msk.f32.gmra.mrb[38].mxu0 %vm450_vm5, %v8663_v48 }
 0x28d   : > { %v9523_v12 = vpop.f32.mrb[23].mxu1  ;;  %9713 = vmatmul.mubr.msk.f32.gmra.mrb[38].mxu1 %vm450_vm5, %v8663_v48  ;;  %3795 = vmatprep.mubr.f32.mxu0 %v15364_v23  ;;  %v8673_v48 = vld [vmem:[%s15353_s1 + $0x430] sm:$0xff] }
 0x28e   : > { %9715 = vmatprep.mubr.msk.f32.mxu1 %vm11703_vm0, %v15364_v23  ;;  %v8709_v12 = vld [vmem:[%s15353_s1 + $0x448] sm:$0xff] }
 0x28f   : > { %v13267_v1 = vpop.f32.mrb[24].mxu0  ;;  %4819 = vperm.xlu1 %11320, %v4754_v30   ;;  %v8708_v30 = vld [vmem:[%s15353_s1 + $0x440] sm:$0xff] }
 0x290   : > { %v13269_v3 = vpop.f32.mrb[24].mxu1  ;;  %v13271_v5 = vpop.f32.mrb[25].mxu0  ;;  %8681 = vmatmul.mubr.msk.f32.gmra.mrb[40].mxu0 %vm450_vm5, %v8664_v58 }
 0x291   : > { %v9526_v21 = vpop.f32.mrb[25].mxu1  ;;  %9716 = vmatmul.mubr.msk.f32.gmra.mrb[40].mxu1 %vm450_vm5, %v8664_v58  ;;  %3801 = vmatprep.mubr.f32.mxu0 %v15364_v23  ;;  %v8710_v58 = vld [vmem:[%s15353_s1 + $0x450] sm:$0xff] }
 0x292   : > { %9718 = vmatprep.mubr.msk.f32.mxu1 %vm11703_vm0, %v15364_v23  ;;  %v8712_v21 = vld [vmem:[%s15353_s1 + $0x460] sm:$0xff] }
 0x293   : > { %v13281_v35 = vpop.f32.mrb[26].mxu0 }
 0x294   : > { %v13283_v46 = vpop.f32.mrb[26].mxu1  ;;  %v13285_v18 = vpop.f32.mrb[27].mxu0  ;;  %8682 = vmatmul.mubr.msk.f32.gmra.mrb[42].mxu0 %vm450_vm5, %v8665_v34 }
 0x295   : > { %v9529_v16 = vpop.f32.mrb[27].mxu1  ;;  %9719 = vmatmul.mubr.msk.f32.gmra.mrb[42].mxu1 %vm450_vm5, %v8665_v34  ;;  %3807 = vmatprep.mubr.f32.mxu0 %v15364_v23  ;;  %v8713_v34 = vld [vmem:[%s15353_s1 + $0x468] sm:$0xff] }
 0x296   : > { %9721 = vmatprep.mubr.msk.f32.mxu1 %vm11703_vm0, %v15364_v23  ;;  %v8714_v16 = vld [vmem:[%s15353_s1 + $0x470] sm:$0xff] }
 0x297   : > { %v13295_v61 = vpop.f32.mrb[28].mxu0 }
 0x298   : > { %v13297_v60 = vpop.f32.mrb[28].mxu1  ;;  %v13299_v38 = vpop.f32.mrb[29].mxu0  ;;  %8683 = vmatmul.mubr.msk.f32.gmra.mrb[44].mxu0 %vm450_vm5, %v8666_v10 }
 0x299   : > { %v9532_v39 = vpop.f32.mrb[29].mxu1  ;;  %9722 = vmatmul.mubr.msk.f32.gmra.mrb[44].mxu1 %vm450_vm5, %v8666_v10  ;;  %3813 = vmatprep.mubr.f32.mxu0 %v15364_v23  ;;  %v8715_v10 = vld [vmem:[%s15353_s1 + $0x478] sm:$0xff] }
 0x29a   : > { %9724 = vmatprep.mubr.msk.f32.mxu1 %vm11703_vm0, %v15364_v23  ;;  %v8716_v39 = vld [vmem:[%s15353_s1 + $0x480] sm:$0xff] }
 0x29c   : > { %8684 = vmatmul.mubr.msk.f32.gmra.mrb[46].mxu0 %vm450_vm5, %v8667_v59 }
 0x29d   : > { %9725 = vmatmul.mubr.msk.f32.gmra.mrb[46].mxu1 %vm450_vm5, %v8667_v59  ;;  %3819 = vmatprep.mubr.f32.mxu0 %v15364_v23  ;;  %v8717_v59 = vld [vmem:[%s15353_s1 + $0x488] sm:$0xff] }
 0x29e   : > { %9727 = vmatprep.mubr.msk.f32.mxu1 %vm11703_vm0, %v15364_v23 }
 0x2a0   : > { %8685 = vmatmul.mubr.msk.f32.gmra.mrb[48].mxu0 %vm450_vm5, %v8668_v4 }
 0x2a1   : > { %9728 = vmatmul.mubr.msk.f32.gmra.mrb[48].mxu1 %vm450_vm5, %v8668_v4  ;;  %3825 = vmatprep.mubr.f32.mxu0 %v15364_v23  ;;  %v8718_v4 = vld [vmem:[%s15353_s1 + $0x490] sm:$0xff] }
 0x2a2   : > { %9730 = vmatprep.mubr.msk.f32.mxu1 %vm11703_vm0, %v15364_v23 }
 0x2a4   : > { %8686 = vmatmul.mubr.msk.f32.gmra.mrb[50].mxu0 %vm450_vm5, %v8669_v51 }
 0x2a5   : > { %9731 = vmatmul.mubr.msk.f32.gmra.mrb[50].mxu1 %vm450_vm5, %v8669_v51  ;;  %3831 = vmatprep.mubr.f32.mxu0 %v15364_v23  ;;  %v8719_v51 = vld [vmem:[%s15353_s1 + $0x498] sm:$0xff] }
 0x2a6   : > { %9733 = vmatprep.mubr.msk.f32.mxu1 %vm11703_vm0, %v15364_v23 }
 0x2a8   : > { %8687 = vmatmul.mubr.msk.f32.gmra.mrb[52].mxu0 %vm450_vm5, %v8670_v52 }
 0x2a9   : > { %9734 = vmatmul.mubr.msk.f32.gmra.mrb[52].mxu1 %vm450_vm5, %v8670_v52  ;;  %3837 = vmatprep.mubr.f32.mxu0 %v15364_v23  ;;  %v8720_v52 = vld [vmem:[%s15353_s1 + $0x4a0] sm:$0xff] }
 0x2aa   : > { %9736 = vmatprep.mubr.msk.f32.mxu1 %vm11703_vm0, %v15364_v23 }
 0x2ac   : > { %8688 = vmatmul.mubr.msk.f32.gmra.mrb[54].mxu0 %vm450_vm5, %v8671_v7 }
 0x2ad   : > { %9737 = vmatmul.mubr.msk.f32.gmra.mrb[54].mxu1 %vm450_vm5, %v8671_v7  ;;  %3843 = vmatprep.mubr.f32.mxu0 %v15364_v23  ;;  %v8721_v7 = vld [vmem:[%s15353_s1 + $0x4a8] sm:$0xff] }
 0x2ae   : > { %9739 = vmatprep.mubr.msk.f32.mxu1 %vm11703_vm0, %v15364_v23 }
 0x2b0   : > { %8689 = vmatmul.mubr.msk.f32.gmra.mrb[56].mxu0 %vm450_vm5, %v8672_v9 }
 0x2b1   : > { %9740 = vmatmul.mubr.msk.f32.gmra.mrb[56].mxu1 %vm450_vm5, %v8672_v9  ;;  %3849 = vmatprep.mubr.f32.mxu0 %v15364_v23 }
 0x2b2   : > { %9742 = vmatprep.mubr.msk.f32.mxu1 %vm11703_vm0, %v15364_v23 }
 0x2b4   : > { %8690 = vmatmul.mubr.msk.f32.gmra.mrb[58].mxu0 %vm450_vm5, %v8673_v48 }
 0x2b5   : > { %9743 = vmatmul.mubr.msk.f32.gmra.mrb[58].mxu1 %vm450_vm5, %v8673_v48  ;;  %4166 = vmatprep.mubr.f32.mxu0 %v15364_v23 }
 0x2b6   : > { %9753 = vmatprep.mubr.msk.f32.mxu1 %vm11703_vm0, %v15364_v23 }
 0x2b8   : > { %8724 = vmatmul.mubr.msk.f32.vlgmr.msra.gmra.mrb[30].mxu0 %vm450_vm5, %v8707_v54 }
 0x2b9   : > { %9754 = vmatmul.mubr.msk.f32.vlgmr.msra.gmra.mrb[30].mxu1 %vm450_vm5, %v8707_v54  ;;  %4172 = vmatprep.mubr.f32.mxu0 %v15364_v23 }
 0x2ba   : > { %9756 = vmatprep.mubr.msk.f32.mxu1 %vm11703_vm0, %v15364_v23 }
 0x2bc   : > { %8725 = vmatmul.mubr.msk.f32.gmra.mrb[32].mxu0 %vm450_vm5, %v8708_v30 }
 0x2bd   : > { %9757 = vmatmul.mubr.msk.f32.gmra.mrb[32].mxu1 %vm450_vm5, %v8708_v30  ;;  %4178 = vmatprep.mubr.f32.mxu0 %v15364_v23 }
 0x2be   : > { %9759 = vmatprep.mubr.msk.f32.mxu1 %vm11703_vm0, %v15364_v23 }
 0x2c0   : > { %8726 = vmatmul.mubr.msk.f32.gmra.mrb[34].mxu0 %vm450_vm5, %v8709_v12 }
 0x2c1   : > { %9760 = vmatmul.mubr.msk.f32.gmra.mrb[34].mxu1 %vm450_vm5, %v8709_v12  ;;  %4184 = vmatprep.mubr.f32.mxu0 %v15364_v23 }
 0x2c2   : > { %9762 = vmatprep.mubr.msk.f32.mxu1 %vm11703_vm0, %v15364_v23 }
 0x2c4   : > { %8727 = vmatmul.mubr.msk.f32.gmra.mrb[36].mxu0 %vm450_vm5, %v8710_v58 }
 0x2c5   : > { %9763 = vmatmul.mubr.msk.f32.gmra.mrb[36].mxu1 %vm450_vm5, %v8710_v58  ;;  %4190 = vmatprep.mubr.f32.mxu0 %v15364_v23 }
 0x2c6   : > { %9765 = vmatprep.mubr.msk.f32.mxu1 %vm11703_vm0, %v15364_v23 }
 0x2c8   : > { %8728 = vmatmul.mubr.msk.f32.gmra.mrb[38].mxu0 %vm450_vm5, %v8711_v17 }
 0x2c9   : > { %9766 = vmatmul.mubr.msk.f32.gmra.mrb[38].mxu1 %vm450_vm5, %v8711_v17  ;;  %4196 = vmatprep.mubr.f32.mxu0 %v15364_v23 }
 0x2ca   : > { %9768 = vmatprep.mubr.msk.f32.mxu1 %vm11703_vm0, %v15364_v23 }
 0x2cc   : > { %8729 = vmatmul.mubr.msk.f32.gmra.mrb[40].mxu0 %vm450_vm5, %v8712_v21 }
 0x2cd   : > { %9769 = vmatmul.mubr.msk.f32.gmra.mrb[40].mxu1 %vm450_vm5, %v8712_v21  ;;  %4202 = vmatprep.mubr.f32.mxu0 %v15364_v23 }
 0x2ce   : > { %9771 = vmatprep.mubr.msk.f32.mxu1 %vm11703_vm0, %v15364_v23 }
 0x2d0   : > { %8730 = vmatmul.mubr.msk.f32.gmra.mrb[42].mxu0 %vm450_vm5, %v8713_v34 }
 0x2d1   : > { %9772 = vmatmul.mubr.msk.f32.gmra.mrb[42].mxu1 %vm450_vm5, %v8713_v34  ;;  %4208 = vmatprep.mubr.f32.mxu0 %v15364_v23 }
 0x2d2   : > { %9774 = vmatprep.mubr.msk.f32.mxu1 %vm11703_vm0, %v15364_v23 }
 0x2d4   : > { %8731 = vmatmul.mubr.msk.f32.gmra.mrb[44].mxu0 %vm450_vm5, %v8714_v16 }
 0x2d5   : > { %9775 = vmatmul.mubr.msk.f32.gmra.mrb[44].mxu1 %vm450_vm5, %v8714_v16  ;;  %4214 = vmatprep.mubr.f32.mxu0 %v15364_v23 }
 0x2d6   : > { %9777 = vmatprep.mubr.msk.f32.mxu1 %vm11703_vm0, %v15364_v23 }
 0x2d8   : > { %8732 = vmatmul.mubr.msk.f32.gmra.mrb[46].mxu0 %vm450_vm5, %v8715_v10 }
 0x2d9   : > { %9778 = vmatmul.mubr.msk.f32.gmra.mrb[46].mxu1 %vm450_vm5, %v8715_v10  ;;  %4220 = vmatprep.mubr.f32.mxu0 %v15364_v23 }
 0x2da   : > { %9780 = vmatprep.mubr.msk.f32.mxu1 %vm11703_vm0, %v15364_v23 }
 0x2dc   : > { %8733 = vmatmul.mubr.msk.f32.gmra.mrb[48].mxu0 %vm450_vm5, %v8716_v39 }
 0x2dd   : > { %9781 = vmatmul.mubr.msk.f32.gmra.mrb[48].mxu1 %vm450_vm5, %v8716_v39  ;;  %4226 = vmatprep.mubr.f32.mxu0 %v15364_v23 }
 0x2de   : > { %9783 = vmatprep.mubr.msk.f32.mxu1 %vm11703_vm0, %v15364_v23 }
 0x2e0   : > { %8734 = vmatmul.mubr.msk.f32.gmra.mrb[50].mxu0 %vm450_vm5, %v8717_v59 }
 0x2e1   : > { %9784 = vmatmul.mubr.msk.f32.gmra.mrb[50].mxu1 %vm450_vm5, %v8717_v59  ;;  %4232 = vmatprep.mubr.f32.mxu0 %v15364_v23 }
 0x2e2   : > { %9786 = vmatprep.mubr.msk.f32.mxu1 %vm11703_vm0, %v15364_v23 }
 0x2e4   : > { %8735 = vmatmul.mubr.msk.f32.gmra.mrb[52].mxu0 %vm450_vm5, %v8718_v4 }
 0x2e5   : > { %9787 = vmatmul.mubr.msk.f32.gmra.mrb[52].mxu1 %vm450_vm5, %v8718_v4  ;;  %4238 = vmatprep.mubr.f32.mxu0 %v15364_v23 }
 0x2e6   : > { %9789 = vmatprep.mubr.msk.f32.mxu1 %vm11703_vm0, %v15364_v23 }
 0x2e8   : > { %8736 = vmatmul.mubr.msk.f32.gmra.mrb[54].mxu0 %vm450_vm5, %v8719_v51 }
 0x2e9   : > { %9790 = vmatmul.mubr.msk.f32.gmra.mrb[54].mxu1 %vm450_vm5, %v8719_v51  ;;  %4244 = vmatprep.mubr.f32.mxu0 %v15364_v23 }
 0x2ea   : > { %9792 = vmatprep.mubr.msk.f32.mxu1 %vm11703_vm0, %v15364_v23 }
 0x2ec   : > { %8737 = vmatmul.mubr.msk.f32.gmra.mrb[56].mxu0 %vm450_vm5, %v8720_v52 }
 0x2ed   : > { %9793 = vmatmul.mubr.msk.f32.gmra.mrb[56].mxu1 %vm450_vm5, %v8720_v52  ;;  %4250 = vmatprep.mubr.f32.mxu0 %v15364_v23 }
 0x2ee   : > { %9795 = vmatprep.mubr.msk.f32.mxu1 %vm11703_vm0, %v15364_v23 }
 0x2f0   : > { %8738 = vmatmul.mubr.msk.f32.gmra.mrb[58].mxu0 %vm450_vm5, %v8721_v7 }
 0x2f1   : > { %9796 = vmatmul.mubr.msk.f32.gmra.mrb[58].mxu1 %vm450_vm5, %v8721_v7  ;;  %5233 = vmatprep.mubr.f32.mxu0 %v15364_v23 }
 0x2f2   : > { %6424 = vmatprep.mubr.f32.mxu1 %v15364_v23 }
 0x38b   : > { %v4168_v9 = vpop.f32.mrb[30].mxu0 }
 0x38c   : > { %v13482_v48 = vmax.f32 %v13045_v37, %v4168_v9  ;;  %v4323_v54 = vpop.f32.mrb[30].mxu1  ;;  %v4170_v30 = vpop.f32.mrb[31].mxu0 }
 0x38d   : > { %v13485_v12 = vmax.f32 %v13047_v40, %v4323_v54  ;;  %v13488_v58 = vmax.f32 %v13049_v41, %v4170_v30  ;;  %v9755_v17 = vpop.f32.mrb[31].mxu1 }
 0x38e   : > { %4532 = vrot.lane.b32.xlu1 %v13482_v48, %s11701_s15 }
 0x38f   : > { %4536 = vrot.lane.b32.xlu0 %v13485_v12, %s11701_s15  ;;  %v4174_v21 = vpop.f32.mrb[32].mxu0 }
 0x390   : > { %v13495_v34 = vmax.f32 %v13059_v53, %v4174_v21  ;;  %v4328_v37 = vpop.f32.mrb[32].mxu1  ;;  %v4176_v16 = vpop.f32.mrb[33].mxu0 }
 0x391   : > { %v13498_v10 = vmax.f32 %v13061_v26, %v4328_v37  ;;  %v13501_v40 = vmax.f32 %v13063_v63, %v4176_v16  ;;  %v9758_v41 = vpop.f32.mrb[33].mxu1 }
 0x392   : > { %4534 = vrot.lane.b32.xlu1 %v13488_v58, %s11701_s15 }
 0x393   : > { %4542 = vrot.lane.b32.xlu0 %v13498_v10, %s11701_s15  ;;  %v4180_v39 = vpop.f32.mrb[34].mxu0 }
 0x394   : > { %v13508_v59 = vmax.f32 %v13073_v44, %v4180_v39  ;;  %v4333_v53 = vpop.f32.mrb[34].mxu1  ;;  %v4182_v4 = vpop.f32.mrb[35].mxu0 }
 0x395   : > { %v13511_v51 = vmax.f32 %v13075_v45, %v4333_v53  ;;  %v13514_v26 = vmax.f32 %v13077_v47, %v4182_v4  ;;  %v9761_v63 = vpop.f32.mrb[35].mxu1 }
 0x396   : > { %4540 = vrot.lane.b32.xlu1 %v13501_v40, %s11701_s15 }
 0x397   : > { %4538 = vrot.lane.b32.xlu0 %v13495_v34, %s11701_s15  ;;  %v4186_v52 = vpop.f32.mrb[36].mxu0 }
 0x398   : > { %v13521_v7 = vmax.f32 %v13087_v55, %v4186_v52  ;;  %v4338_v44 = vpop.f32.mrb[36].mxu1  ;;  %v4188_v9 = vpop.f32.mrb[37].mxu0 }
 0x399   : > { %v13524_v54 = vmax.f32 %v13089_v56, %v4338_v44  ;;  %v13527_v45 = vmax.f32 %v13091_v57, %v4188_v9  ;;  %v9764_v47 = vpop.f32.mrb[37].mxu1 }
 0x39a   : > { %4544 = vrot.lane.b32.xlu1 %v13508_v59, %s11701_s15 }
 0x39b   : > { %4548 = vrot.lane.b32.xlu0 %v13511_v51, %s11701_s15  ;;  %v4192_v30 = vpop.f32.mrb[38].mxu0 }
 0x39c   : > { %v13534_v17 = vmax.f32 %v13101_v28, %v4192_v30  ;;  %v4343_v55 = vpop.f32.mrb[38].mxu1  ;;  %v4194_v21 = vpop.f32.mrb[39].mxu0 }
 0x39d   : > { %v13537_v37 = vmax.f32 %v13103_v22, %v4343_v55  ;;  %v13540_v56 = vmax.f32 %v13105_v15, %v4194_v21  ;;  %v9767_v57 = vpop.f32.mrb[39].mxu1 }
 0x39e   : > { %4546 = vrot.lane.b32.xlu1 %v13514_v26, %s11701_s15 }
 0x39f   : > { %4554 = vrot.lane.b32.xlu0 %v13524_v54, %s11701_s15  ;;  %v4198_v16 = vpop.f32.mrb[40].mxu0 }
 0x3a0   : > { %v13547_v41 = vmax.f32 %v13121_v36, %v4198_v16  ;;  %v4348_v28 = vpop.f32.mrb[40].mxu1  ;;  %v4200_v39 = vpop.f32.mrb[41].mxu0 }
 0x3a1   : > { %v13550_v53 = vmax.f32 %v13123_v8, %v4348_v28  ;;  %v13553_v22 = vmax.f32 %v13125_v62, %v4200_v39  ;;  %v9770_v15 = vpop.f32.mrb[41].mxu1 }
 0x3a2   : > { %4552 = vrot.lane.b32.xlu1 %v13527_v45, %s11701_s15 }
 0x3a3   : > { %4550 = vrot.lane.b32.xlu0 %v13521_v7, %s11701_s15  ;;  %v4204_v4 = vpop.f32.mrb[42].mxu0 }
 0x3a4   : > { %v13560_v63 = vmax.f32 %v13141_v24, %v4204_v4  ;;  %v4353_v36 = vpop.f32.mrb[42].mxu1  ;;  %v4206_v52 = vpop.f32.mrb[43].mxu0 }
 0x3a5   : > { %v13563_v44 = vmax.f32 %v13143_v19, %v4353_v36  ;;  %v13566_v8 = vmax.f32 %v13145_v33, %v4206_v52  ;;  %v9773_v62 = vpop.f32.mrb[43].mxu1 }
 0x3a6   : > { %4556 = vrot.lane.b32.xlu1 %v13534_v17, %s11701_s15 }
 0x3a7   : > { %4560 = vrot.lane.b32.xlu0 %v13537_v37, %s11701_s15  ;;  %v4210_v9 = vpop.f32.mrb[44].mxu0 }
 0x3a8   : > { %v13573_v47 = vmax.f32 %v13161_v25, %v4210_v9  ;;  %v4358_v24 = vpop.f32.mrb[44].mxu1  ;;  %v4212_v30 = vpop.f32.mrb[45].mxu0 }
 0x3a9   : > { %v13576_v55 = vmax.f32 %v13163_v13, %v4358_v24  ;;  %v13579_v19 = vmax.f32 %v13165_v14, %v4212_v30  ;;  %v9776_v33 = vpop.f32.mrb[45].mxu1 }
 0x3aa   : > { %4558 = vrot.lane.b32.xlu1 %v13540_v56, %s11701_s15 }
 0x3ab   : > { %4566 = vrot.lane.b32.xlu0 %v13550_v53, %s11701_s15  ;;  %v4216_v21 = vpop.f32.mrb[46].mxu0 }
 0x3ac   : > { %v13586_v57 = vmax.f32 %v13177_v20, %v4216_v21  ;;  %v4363_v25 = vpop.f32.mrb[46].mxu1  ;;  %v4218_v16 = vpop.f32.mrb[47].mxu0 }
 0x3ad   : > { %v13589_v28 = vmax.f32 %v13182_v31, %v4363_v25  ;;  %v13592_v13 = vmax.f32 %v13185_v6, %v4218_v16  ;;  %v9779_v14 = vpop.f32.mrb[47].mxu1 }
 0x3ae   : > { %4564 = vrot.lane.b32.xlu1 %v13553_v22, %s11701_s15 }
 0x3af   : > { %4562 = vrot.lane.b32.xlu0 %v13547_v41, %s11701_s15  ;;  %v4222_v39 = vpop.f32.mrb[48].mxu0 }
 0x3b0   : > { %v13599_v15 = vmax.f32 %v13205_v42, %v4222_v39  ;;  %v4368_v20 = vpop.f32.mrb[48].mxu1  ;;  %v4224_v4 = vpop.f32.mrb[49].mxu0 }
 0x3b1   : > { %v13602_v36 = vmax.f32 %v13209_v2, %v4368_v20  ;;  %v13605_v31 = vmax.f32 %v13211_v50, %v4224_v4  ;;  %v9782_v6 = vpop.f32.mrb[49].mxu1 }
 0x3b2   : > { %4568 = vrot.lane.b32.xlu1 %v13560_v63, %s11701_s15 }
 0x3b3   : > { %4572 = vrot.lane.b32.xlu0 %v13563_v44, %s11701_s15  ;;  %v4228_v52 = vpop.f32.mrb[50].mxu0 }
 0x3b4   : > { %v13612_v62 = vmax.f32 %v13227_v32, %v4228_v52  ;;  %v4373_v42 = vpop.f32.mrb[50].mxu1  ;;  %v4230_v9 = vpop.f32.mrb[51].mxu0 }
 0x3b5   : > { %v13615_v24 = vmax.f32 %v13229_v43, %v4373_v42  ;;  %v13618_v2 = vmax.f32 %v13231_v49, %v4230_v9  ;;  %v9785_v50 = vpop.f32.mrb[51].mxu1 }
 0x3b6   : > { %4570 = vrot.lane.b32.xlu1 %v13566_v8, %s11701_s15 }
 0x3b7   : > { %4578 = vrot.lane.b32.xlu0 %v13576_v55, %s11701_s15  ;;  %v4234_v30 = vpop.f32.mrb[52].mxu0 }
 0x3b8   : > { %v13625_v33 = vmax.f32 %v13247_v11, %v4234_v30  ;;  %v4378_v32 = vpop.f32.mrb[52].mxu1  ;;  %v4236_v21 = vpop.f32.mrb[53].mxu0 }
 0x3b9   : > { %v13628_v25 = vmax.f32 %v13249_v27, %v4378_v32  ;;  %v13631_v43 = vmax.f32 %v13251_v29, %v4236_v21  ;;  %v9788_v49 = vpop.f32.mrb[53].mxu1 }
 0x3ba   : > { %15382 = vst [vmem:[#allocation2_spill] sm:$0xff] %v13625_v33  ;;  %4576 = vrot.lane.b32.xlu1 %v13579_v19, %s11701_s15  ;;  %v4756_v49 = vld [vmem:[%s15354_s2 + $0x70] sm:$0xff] }
 0x3bb   : > { %15383 = vst [vmem:[#allocation3_spill] sm:$0xff] %v13631_v43  ;;  %4574 = vrot.lane.b32.xlu0 %v13573_v47, %s11701_s15  ;;  %v4240_v16 = vpop.f32.mrb[54].mxu0 }
 0x3bc   : > { %v13638_v14 = vmax.f32 %v13267_v1, %v4240_v16  ;;  %v4383_v11 = vpop.f32.mrb[54].mxu1  ;;  %v4242_v39 = vpop.f32.mrb[55].mxu0 }
 0x3bd   : > { %v13641_v20 = vmax.f32 %v13269_v3, %v4383_v11  ;;  %v13644_v27 = vmax.f32 %v13271_v5, %v4242_v39  ;;  %v9791_v29 = vpop.f32.mrb[55].mxu1 }
 0x3be   : > { %15384 = vst [vmem:[#allocation4_spill] sm:$0xff] %v13638_v14  ;;  %4580 = vrot.lane.b32.xlu1 %v13586_v57, %s11701_s15 }
 0x3bf   : > { %15385 = vst [vmem:[#allocation5_spill] sm:$0xff] %v13641_v20  ;;  %15386 = vst [vmem:[#allocation6_spill] sm:$0xff] %v13644_v27  ;;  %4584 = vrot.lane.b32.xlu0 %v13589_v28, %s11701_s15  ;;  %v4246_v4 = vpop.f32.mrb[56].mxu0 }
 0x3c0   : > { %v13651_v6 = vmax.f32 %v13281_v35, %v4246_v4  ;;  %v4388_v1 = vpop.f32.mrb[56].mxu1  ;;  %v4248_v52 = vpop.f32.mrb[57].mxu0 }
 0x3c1   : > { %v13654_v42 = vmax.f32 %v13283_v46, %v4388_v1  ;;  %v13657_v3 = vmax.f32 %v13285_v18, %v4248_v52  ;;  %v9794_v5 = vpop.f32.mrb[57].mxu1 }
 0x3c2   : > { %15387 = vst [vmem:[#allocation7_spill] sm:$0xff] %v13651_v6  ;;  %4582 = vrot.lane.b32.xlu1 %v13592_v13, %s11701_s15 }
 0x3c3   : > { %15388 = vst [vmem:[#allocation8_spill] sm:$0xff] %v13654_v42  ;;  %15389 = vst [vmem:[#allocation9_spill] sm:$0xff] %v13657_v3  ;;  %4590 = vrot.lane.b32.xlu0 %v13602_v36, %s11701_s15  ;;  %v4252_v9 = vpop.f32.mrb[58].mxu0 }
 0x3c4   : > { %v13664_v50 = vmax.f32 %v13295_v61, %v4252_v9  ;;  %v4393_v35 = vpop.f32.mrb[58].mxu1  ;;  %v4254_v30 = vpop.f32.mrb[59].mxu0 }
 0x3c5   : > { %v13667_v32 = vmax.f32 %v13297_v60, %v4393_v35  ;;  %v13670_v46 = vmax.f32 %v13299_v38, %v4254_v30  ;;  %v9797_v18 = vpop.f32.mrb[59].mxu1  ;;  %v4765_v61 = vpop.permute.xlu1 %4764 }
 0x3c6   : > { %15390 = vst [vmem:[#allocation10_spill] sm:$0xff] %v13664_v50  ;;  %4588 = vrot.lane.b32.xlu1 %v13605_v31, %s11701_s15  ;;  %v4760_v60 = vpop.permute.xlu0 %4759 }
 0x3c7   : > { %15391 = vst [vmem:[#allocation11_spill] sm:$0xff] %v13667_v32  ;;  %15392 = vst [vmem:[#allocation12_spill] sm:$0xff] %v13670_v46  ;;  %4586 = vrot.lane.b32.xlu0 %v13599_v15, %s11701_s15 }
 0x3c9   : > { %v13696_v38 = vpop.permute.xlu1 %4769 }
 0x3ca   : > { %4592 = vrot.lane.b32.xlu1 %v13612_v62, %s11701_s15  ;;  %v13700_v21 = vpop.permute.xlu0 %4774 }
 0x3cb   : > { %4596 = vrot.lane.b32.xlu0 %v13615_v24, %s11701_s15 }
 0x3cd   : > { %v13709_v16 = vpop.permute.xlu1 %4779 }
 0x3ce   : > { %4594 = vrot.lane.b32.xlu1 %v13618_v2, %s11701_s15  ;;  %v13711_v11 = vpop.permute.xlu0 %4784 }
 0x3cf   : > { %4602 = vrot.lane.b32.xlu0 %v13628_v25, %s11701_s15 }
 0x3d1   : > { %v13717_v39 = vpop.permute.xlu1 %4789 }
 0x3d2   : > { %4600 = vrot.lane.b32.xlu1 %v13631_v43, %s11701_s15  ;;  %v13719_v29 = vpop.permute.xlu0 %4794 }
 0x3d3   : > { %4598 = vrot.lane.b32.xlu0 %v13625_v33, %s11701_s15 }
 0x3d5   : > { %v13721_v4 = vpop.permute.xlu1 %4799 }
 0x3d6   : > { %4604 = vrot.lane.b32.xlu1 %v13638_v14, %s11701_s15  ;;  %v13723_v1 = vpop.permute.xlu0 %4804 }
 0x3d7   : > { %4608 = vrot.lane.b32.xlu0 %v13641_v20, %s11701_s15 }
 0x3d9   : > { %v13725_v52 = vpop.permute.xlu1 %4809 }
 0x3da   : > { %4606 = vrot.lane.b32.xlu1 %v13644_v27, %s11701_s15  ;;  %v13727_v5 = vpop.permute.xlu0 %4814 }
 0x3db   : > { %4614 = vrot.lane.b32.xlu0 %v13654_v42, %s11701_s15  ;;  %15393 = vst [vmem:[#allocation13_spill] sm:$0xff] %v13727_v5 }
 0x3dd   : > { %v13729_v9 = vpop.permute.xlu1 %4819 }
 0x3de   : > { %4612 = vrot.lane.b32.xlu1 %v13657_v3, %s11701_s15  ;;  %15394 = vst [vmem:[#allocation14_spill] sm:$0xff] %v13729_v9  ;;  %v13731_v35 = vpop.permute.xlu0 %4824 }
 0x3df   : > { %4610 = vrot.lane.b32.xlu0 %v13651_v6, %s11701_s15  ;;  %15395 = vst [vmem:[#allocation15_spill] sm:$0xff] %v13731_v35 }
 0x3e2   : > { %4829 = vperm.xlu1 %11320, %v4756_v49  }
 0x3e3   : > { %4618 = vrot.lane.b32.xlu0 %v13670_v46, %s11701_s15 }
 0x3e6   : > { %4620 = vrot.lane.b32.xlu1 %v13667_v32, %s11701_s15 }
 0x3e7   : > { %4616 = vrot.lane.b32.xlu0 %v13664_v50, %s11701_s15  ;;  %s11709_s15 = smov 32  }
 0x400   : > { %v4533_v30 = vpop.permute.xlu1 %4532 }
 0x401   : > { %v4537_v18 = vpop.permute.xlu0 %4536 }
 0x402   : > { %v4699_v49 = vmax.f32 %v13485_v12, %v4537_v18 }
 0x404   : > { %v4535_v0 = vpop.permute.xlu1 %4534  ;;  %v4834_v32 = vadd.f32 %v4760_v60, %v4699_v49 }
 0x405   : > { %v4543_v23 = vpop.permute.xlu0 %4542  ;;  %v4622_v50 = vsel %vm428_vm1, %v4533_v30, %v4535_v0  ;;  %v4623_v46 = vsel %vm428_vm1, %v4535_v0, %v4537_v18 }
 0x406   : > { %v4702_v3 = vmax.f32 %v13498_v10, %v4543_v23  ;;  %v4698_v6 = vmax.f32 %v13488_v58, %v4623_v46  ;;  %v4697_v27 = vmax.f32 %v13482_v48, %v4622_v50  ;;  %v4879_v12 = vmax.f32 %v4834_v32, 0.0 }
 0x408   : > { %v4837_v14 = vadd.f32 %v4765_v61, %v4702_v3  ;;  %v4833_v42 = vadd.f32 %v4760_v60, %v4698_v6  ;;  %v4541_v35 = vpop.permute.xlu1 %4540  ;;  %v4832_v5 = vadd.f32 %v4760_v60, %v4697_v27 }
 0x409   : > { %v4539_v9 = vpop.permute.xlu0 %4538  ;;  %v4625_v20 = vsel %vm428_vm1, %v4541_v35, %v4543_v23 }
 0x40a   : > { %v4882_v43 = vmax.f32 %v4837_v14, 0.0  ;;  %v4878_v33 = vmax.f32 %v4833_v42, 0.0  ;;  %v4624_v30 = vsel %vm428_vm1, %v4539_v9, %v4541_v35  ;;  %v4701_v10 = vmax.f32 %v13501_v40, %v4625_v20 }
 0x40b   : > { %v4700_v0 = vmax.f32 %v13495_v34, %v4624_v30  ;;  %v4877_v14 = vmax.f32 %v4832_v5, 0.0 }
 0x40c   : > { %v4545_v18 = vpop.permute.xlu1 %4544  ;;  %v13743_v58 = vpack.i.bf16 %v4879_v12, %v4878_v33  ;;  %v13745_v48 = vpack.c.bf16 %v4882_v43, %v4879_v12  ;;  %v4836_v3 = vadd.f32 %v4765_v61, %v4701_v10 }
 0x40d   : > { %v4835_v6 = vadd.f32 %v4765_v61, %v4700_v0  ;;  %v4549_v50 = vpop.permute.xlu0 %4548 }
 0x40e   : > { %v4705_v23 = vmax.f32 %v13511_v51, %v4549_v50  ;;  %11322 = vrot.lane.b32.xlu1 %v13743_v58, %s11704_s16  ;;  %v4881_v27 = vmax.f32 %v4836_v3, 0.0 }
 0x40f   : > { %v4880_v42 = vmax.f32 %v4835_v6, 0.0 }
 0x410   : > { %v4547_v32 = vpop.permute.xlu1 %4546  ;;  %v13754_v60 = vpack.i.bf16 %v4882_v43, %v4881_v27  ;;  %v4840_v61 = vadd.f32 %v13696_v38, %v4705_v23  ;;  %v13767_v0 = vpack.c.bf16 %v4881_v27, %v4878_v33 }
 0x411   : > { %v4555_v34 = vpop.permute.xlu0 %4554  ;;  %v4626_v40 = vsel %vm428_vm1, %v4545_v18, %v4547_v32  ;;  %v4627_v20 = vsel %vm428_vm1, %v4547_v32, %v4549_v50  ;;  %v13752_v46 = vpack.i.bf16 %v4880_v42, %v4877_v14 }
 0x412   : > { %v4708_v51 = vmax.f32 %v13524_v54, %v4555_v34  ;;  %v4703_v9 = vmax.f32 %v13508_v59, %v4626_v40  ;;  %v4704_v5 = vmax.f32 %v13514_v26, %v4627_v20  ;;  %11327 = vrot.lane.b32.xlu0 %v13754_v60, %s11704_s16  ;;  %v13769_v54 = vpack.c.bf16 %v4880_v42, %v4877_v14 }
 0x413   : > { %11332 = vrot.lane.b32.xlu1 %v13752_v46, %s11704_s16  ;;  %v4885_v59 = vmax.f32 %v4840_v61, 0.0 }
 0x414   : > { %v4843_v35 = vadd.f32 %v13700_v21, %v4708_v51  ;;  %v4839_v49 = vadd.f32 %v13696_v38, %v4704_v5  ;;  %v4553_v43 = vpop.permute.xlu1 %4552  ;;  %v4838_v6 = vadd.f32 %v13696_v38, %v4703_v9 }
 0x415   : > { %v4551_v12 = vpop.permute.xlu0 %4550  ;;  %v4629_v30 = vsel %vm428_vm1, %v4553_v43, %v4555_v34 }
 0x416   : > { %v4888_v26 = vmax.f32 %v4843_v35, 0.0  ;;  %v4884_v10 = vmax.f32 %v4839_v49, 0.0  ;;  %v4628_v18 = vsel %vm428_vm1, %v4551_v12, %v4553_v43  ;;  %v4707_v50 = vmax.f32 %v13527_v45, %v4629_v30 }
 0x417   : > { %v4706_v3 = vmax.f32 %v13521_v7, %v4628_v18  ;;  %v4883_v38 = vmax.f32 %v4838_v6, 0.0 }
 0x418   : > { %v4557_v23 = vpop.permute.xlu1 %4556  ;;  %v13775_v32 = vpack.i.bf16 %v4885_v59, %v4884_v10  ;;  %v13777_v40 = vpack.c.bf16 %v4888_v26, %v4885_v59  ;;  %v4842_v14 = vadd.f32 %v13700_v21, %v4707_v50 }
 0x419   : > { %v4841_v33 = vadd.f32 %v13700_v21, %v4706_v3  ;;  %v4561_v42 = vpop.permute.xlu0 %4560 }
 0x41a   : > { %v4711_v27 = vmax.f32 %v13537_v37, %v4561_v42  ;;  %11337 = vrot.lane.b32.xlu0 %v13775_v32, %s11704_s16  ;;  %v4887_v7 = vmax.f32 %v4842_v14, 0.0 }
 0x41b   : > { %v4886_v34 = vmax.f32 %v4841_v33, 0.0 }
 0x41c   : > { %v4559_v20 = vpop.permute.xlu1 %4558  ;;  %v13786_v9 = vpack.i.bf16 %v4888_v26, %v4887_v7  ;;  %v4846_v21 = vadd.f32 %v13709_v16, %v4711_v27  ;;  %v13801_v18 = vpack.c.bf16 %v4887_v7, %v4884_v10 }
 0x41d   : > { %v4567_v45 = vpop.permute.xlu0 %4566  ;;  %v4630_v61 = vsel %vm428_vm1, %v4557_v23, %v4559_v20  ;;  %v4631_v51 = vsel %vm428_vm1, %v4559_v20, %v4561_v42  ;;  %v13788_v5 = vpack.i.bf16 %v4886_v34, %v4883_v38 }
 0x41e   : > { %v4714_v37 = vmax.f32 %v13550_v53, %v4567_v45  ;;  %v4709_v35 = vmax.f32 %v13534_v17, %v4630_v61  ;;  %v4710_v49 = vmax.f32 %v13540_v56, %v4631_v51  ;;  %11342 = vrot.lane.b32.xlu1 %v13786_v9, %s11704_s16  ;;  %v13803_v53 = vpack.c.bf16 %v4886_v34, %v4883_v38 }
 0x41f   : > { %11347 = vrot.lane.b32.xlu0 %v13788_v5, %s11704_s16  ;;  %v4891_v17 = vmax.f32 %v4846_v21, 0.0 }
 0x420   : > { %v4849_v43 = vadd.f32 %v13711_v11, %v4714_v37  ;;  %v4845_v12 = vadd.f32 %v13709_v16, %v4710_v49  ;;  %v4565_v30 = vpop.permute.xlu1 %4564  ;;  %v4844_v50 = vadd.f32 %v13709_v16, %v4709_v35 }
 0x421   : > { %v4563_v59 = vpop.permute.xlu0 %4562  ;;  %v4633_v26 = vsel %vm428_vm1, %v4565_v30, %v4567_v45 }
 0x422   : > { %v4894_v56 = vmax.f32 %v4849_v43, 0.0  ;;  %v4890_v6 = vmax.f32 %v4845_v12, 0.0  ;;  %v4632_v3 = vsel %vm428_vm1, %v4563_v59, %v4565_v30  ;;  %v4713_v33 = vmax.f32 %v13553_v22, %v4633_v26 }
 0x423   : > { %v4712_v23 = vmax.f32 %v13547_v41, %v4632_v3  ;;  %v4889_v16 = vmax.f32 %v4844_v50, 0.0 }
 0x424   : > { %v4569_v14 = vpop.permute.xlu1 %4568  ;;  %v13809_v42 = vpack.i.bf16 %v4891_v17, %v4890_v6  ;;  %v13811_v27 = vpack.c.bf16 %v4894_v56, %v4891_v17  ;;  %v4848_v38 = vadd.f32 %v13711_v11, %v4713_v33 }
 0x425   : > { %v4847_v10 = vadd.f32 %v13711_v11, %v4712_v23  ;;  %v4573_v34 = vpop.permute.xlu0 %4572 }
 0x426   : > { %v4717_v7 = vmax.f32 %v13563_v44, %v4573_v34  ;;  %11352 = vrot.lane.b32.xlu1 %v13809_v42, %s11704_s16  ;;  %v4893_v41 = vmax.f32 %v4848_v38, 0.0 }
 0x427   : > { %v4892_v20 = vmax.f32 %v4847_v10, 0.0 }
 0x428   : > { %v4571_v45 = vpop.permute.xlu1 %4570  ;;  %v13822_v37 = vpack.i.bf16 %v4894_v56, %v4893_v41  ;;  %v4852_v11 = vadd.f32 %v13717_v39, %v4717_v7  ;;  %v13835_v17 = vpack.c.bf16 %v4893_v41, %v4890_v6 }
 0x429   : > { %v4579_v22 = vpop.permute.xlu0 %4578  ;;  %v4634_v61 = vsel %vm428_vm1, %v4569_v14, %v4571_v45  ;;  %v4635_v51 = vsel %vm428_vm1, %v4571_v45, %v4573_v34  ;;  %v13820_v21 = vpack.i.bf16 %v4892_v20, %v4889_v16 }
 0x42a   : > { %v4720_v44 = vmax.f32 %v13576_v55, %v4579_v22  ;;  %v4715_v35 = vmax.f32 %v13560_v63, %v4634_v61  ;;  %v4716_v49 = vmax.f32 %v13566_v8, %v4635_v51  ;;  %11357 = vrot.lane.b32.xlu0 %v13822_v37, %s11704_s16  ;;  %v13837_v55 = vpack.c.bf16 %v4892_v20, %v4889_v16 }
 0x42b   : > { %11362 = vrot.lane.b32.xlu1 %v13820_v21, %s11704_s16  ;;  %v4897_v63 = vmax.f32 %v4852_v11, 0.0 }
 0x42c   : > { %v4855_v43 = vadd.f32 %v13719_v29, %v4720_v44  ;;  %v4851_v12 = vadd.f32 %v13717_v39, %v4716_v49  ;;  %v4577_v30 = vpop.permute.xlu1 %4576  ;;  %v4850_v50 = vadd.f32 %v13717_v39, %v4715_v35 }
 0x42d   : > { %v4575_v59 = vpop.permute.xlu0 %4574  ;;  %v4637_v26 = vsel %vm428_vm1, %v4577_v30, %v4579_v22 }
 0x42e   : > { %v4900_v8 = vmax.f32 %v4855_v43, 0.0  ;;  %v4896_v56 = vmax.f32 %v4851_v12, 0.0  ;;  %v4636_v3 = vsel %vm428_vm1, %v4575_v59, %v4577_v30  ;;  %v4719_v33 = vmax.f32 %v13579_v19, %v4637_v26 }
 0x42f   : > { %v4718_v23 = vmax.f32 %v13573_v47, %v4636_v3  ;;  %v4895_v39 = vmax.f32 %v4850_v50, 0.0 }
 0x430   : > { %v4581_v14 = vpop.permute.xlu1 %4580  ;;  %v13843_v10 = vpack.i.bf16 %v4897_v63, %v4896_v56  ;;  %v13845_v38 = vpack.c.bf16 %v4900_v8, %v4897_v63  ;;  %v4854_v34 = vadd.f32 %v13719_v29, %v4719_v33 }
 0x431   : > { %v4853_v6 = vadd.f32 %v13719_v29, %v4718_v23  ;;  %v4585_v7 = vpop.permute.xlu0 %4584 }
 0x432   : > { %v4723_v16 = vmax.f32 %v13589_v28, %v4585_v7  ;;  %11367 = vrot.lane.b32.xlu0 %v13843_v10, %s11704_s16  ;;  %v4899_v47 = vmax.f32 %v4854_v34, 0.0 }
 0x433   : > { %v4898_v20 = vmax.f32 %v4853_v6, 0.0 }
 0x434   : > { %v4583_v41 = vpop.permute.xlu1 %4582  ;;  %v13854_v61 = vpack.i.bf16 %v4900_v8, %v4899_v47  ;;  %v4858_v29 = vadd.f32 %v13721_v4, %v4723_v16  ;;  %v13869_v59 = vpack.c.bf16 %v4899_v47, %v4896_v56 }
 0x435   : > { %v4591_v19 = vpop.permute.xlu0 %4590  ;;  %v4638_v45 = vsel %vm428_vm1, %v4581_v14, %v4583_v41  ;;  %v4639_v22 = vsel %vm428_vm1, %v4583_v41, %v4585_v7  ;;  %v13856_v51 = vpack.i.bf16 %v4898_v20, %v4895_v39 }
 0x436   : > { %v4726_v28 = vmax.f32 %v13602_v36, %v4591_v19  ;;  %v4721_v11 = vmax.f32 %v13586_v57, %v4638_v45  ;;  %v4722_v44 = vmax.f32 %v13592_v13, %v4639_v22  ;;  %11372 = vrot.lane.b32.xlu1 %v13854_v61, %s11704_s16  ;;  %v13871_v36 = vpack.c.bf16 %v4898_v20, %v4895_v39 }
 0x437   : > { %11377 = vrot.lane.b32.xlu0 %v13856_v51, %s11704_s16  ;;  %v4903_v57 = vmax.f32 %v4858_v29, 0.0  ;;  %v15396_v29 = vld [vmem:[#allocation13_spill] sm:$0xff] }
 0x438   : > { %v4861_v35 = vadd.f32 %v13723_v1, %v4726_v28  ;;  %v4857_v49 = vadd.f32 %v13721_v4, %v4722_v44  ;;  %v4589_v43 = vpop.permute.xlu1 %4588  ;;  %v4856_v8 = vadd.f32 %v13721_v4, %v4721_v11 }
 0x439   : > { %v4587_v12 = vpop.permute.xlu0 %4586  ;;  %v4641_v30 = vsel %vm428_vm1, %v4589_v43, %v4591_v19 }
 0x43a   : > { %v4906_v13 = vmax.f32 %v4861_v35, 0.0  ;;  %v4902_v26 = vmax.f32 %v4857_v49, 0.0  ;;  %v4640_v63 = vsel %vm428_vm1, %v4587_v12, %v4589_v43  ;;  %v4725_v50 = vmax.f32 %v13605_v31, %v4641_v30 }
 0x43b   : > { %v4724_v3 = vmax.f32 %v13599_v15, %v4640_v63  ;;  %v4901_v4 = vmax.f32 %v4856_v8, 0.0  ;;  %v15398_v8 = vld [vmem:[#allocation3_spill] sm:$0xff] }
 0x43c   : > { %v4593_v23 = vpop.permute.xlu1 %4592  ;;  %v13877_v33 = vpack.i.bf16 %v4903_v57, %v4902_v26  ;;  %v13879_v14 = vpack.c.bf16 %v4906_v13, %v4903_v57  ;;  %v4860_v6 = vadd.f32 %v13723_v1, %v4725_v50 }
 0x43d   : > { %v4859_v56 = vadd.f32 %v13723_v1, %v4724_v3  ;;  %v4597_v34 = vpop.permute.xlu0 %4596 }
 0x43e   : > { %v4729_v7 = vmax.f32 %v13615_v24, %v4597_v34  ;;  %11382 = vrot.lane.b32.xlu1 %v13877_v33, %s11704_s16  ;;  %v4905_v15 = vmax.f32 %v4860_v6, 0.0 }
 0x43f   : > { %v4904_v16 = vmax.f32 %v4859_v56, 0.0 }
 0x440   : > { %v4595_v39 = vpop.permute.xlu1 %4594  ;;  %v13890_v19 = vpack.i.bf16 %v4906_v13, %v4905_v15  ;;  %v4864_v1 = vadd.f32 %v13725_v52, %v4729_v7  ;;  %v13903_v43 = vpack.c.bf16 %v4905_v15, %v4902_v26  ;;  %v15397_v13 = vld [vmem:[#allocation2_spill] sm:$0xff]  ;;  %v15399_v7 = vld [vmem:[#allocation5_spill] sm:$0xff] }
 0x441   : > { %v4603_v31 = vpop.permute.xlu0 %4602  ;;  %v4642_v20 = vsel %vm428_vm1, %v4593_v23, %v4595_v39  ;;  %v4643_v47 = vsel %vm428_vm1, %v4595_v39, %v4597_v34  ;;  %v13888_v41 = vpack.i.bf16 %v4904_v16, %v4901_v4 }
 0x442   : > { %v4732_v24 = vmax.f32 %v13628_v25, %v4603_v31  ;;  %v4727_v45 = vmax.f32 %v13612_v62, %v4642_v20  ;;  %v4728_v22 = vmax.f32 %v13618_v2, %v4643_v47  ;;  %11387 = vrot.lane.b32.xlu0 %v13890_v19, %s11704_s16  ;;  %v13905_v25 = vpack.c.bf16 %v4904_v16, %v4901_v4 }
 0x443   : > { %11392 = vrot.lane.b32.xlu1 %v13888_v41, %s11704_s16  ;;  %v4909_v62 = vmax.f32 %v4864_v1, 0.0 }
 0x444   : > { %v4867_v28 = vadd.f32 %v15396_v29, %v4732_v24  ;;  %v4863_v11 = vadd.f32 %v13725_v52, %v4728_v22  ;;  %v4601_v44 = vpop.permute.xlu1 %4600  ;;  %v4862_v57 = vadd.f32 %v13725_v52, %v4727_v45  ;;  %v15400_v45 = vld [vmem:[#allocation14_spill] sm:$0xff] }
 0x445   : > { %v4599_v35 = vpop.permute.xlu0 %4598  ;;  %v4645_v49 = vsel %vm428_vm1, %v4601_v44, %v4603_v31 }
 0x446   : > { %v4912_v2 = vmax.f32 %v4867_v28, 0.0  ;;  %v4908_v12 = vmax.f32 %v4863_v11, 0.0  ;;  %v4644_v30 = vsel %vm428_vm1, %v4599_v35, %v4601_v44  ;;  %v4731_v3 = vmax.f32 %v15398_v8, %v4645_v49  ;;  %v15402_v11 = vld [vmem:[#allocation4_spill] sm:$0xff]  ;;  %v15403_v35 = vld [vmem:[#allocation6_spill] sm:$0xff] }
 0x447   : > { %v4730_v63 = vmax.f32 %v15397_v13, %v4644_v30  ;;  %v4907_v52 = vmax.f32 %v4862_v57, 0.0 }
 0x448   : > { %v4605_v50 = vpop.permute.xlu1 %4604  ;;  %v13911_v23 = vpack.i.bf16 %v4909_v62, %v4908_v12  ;;  %v13913_v56 = vpack.c.bf16 %v4912_v2, %v4909_v62  ;;  %v4866_v6 = vadd.f32 %v15396_v29, %v4731_v3  ;;  %v15404_v62 = vld [vmem:[#allocation15_spill] sm:$0xff] }
 0x449   : > { %v4865_v26 = vadd.f32 %v15396_v29, %v4730_v63  ;;  %v4609_v34 = vpop.permute.xlu0 %4608  ;;  %v15401_v29 = vld [vmem:[#allocation8_spill] sm:$0xff] }
 0x44a   : > { %v4735_v4 = vmax.f32 %v15399_v7, %v4609_v34  ;;  %11397 = vrot.lane.b32.xlu0 %v13911_v23, %s11704_s16  ;;  %v4911_v15 = vmax.f32 %v4866_v6, 0.0 }
 0x44b   : > { %v4910_v16 = vmax.f32 %v4865_v26, 0.0 }
 0x44c   : > { %v4607_v39 = vpop.permute.xlu1 %4606  ;;  %v13922_v1 = vpack.i.bf16 %v4912_v2, %v4911_v15  ;;  %v4870_v22 = vadd.f32 %v15400_v45, %v4735_v4  ;;  %v13937_v8 = vpack.c.bf16 %v4911_v15, %v4908_v12  ;;  %v15405_v4 = vld [vmem:[#allocation7_spill] sm:$0xff] }
 0x44d   : > { %v4615_v31 = vpop.permute.xlu0 %4614  ;;  %v4646_v20 = vsel %vm428_vm1, %v4605_v50, %v4607_v39  ;;  %v4647_v47 = vsel %vm428_vm1, %v4607_v39, %v4609_v34  ;;  %v13924_v24 = vpack.i.bf16 %v4910_v16, %v4907_v52  ;;  %v13939_v3 = vpack.c.bf16 %v4910_v16, %v4907_v52 }
 0x44e   : > { %v4738_v28 = vmax.f32 %v15401_v29, %v4615_v31  ;;  %v4733_v44 = vmax.f32 %v15402_v11, %v4646_v20  ;;  %v4734_v49 = vmax.f32 %v15403_v35, %v4647_v47  ;;  %11402 = vrot.lane.b32.xlu1 %v13922_v1, %s11704_s16  ;;  %v4915_v50 = vmax.f32 %v4870_v22, 0.0  ;;  %v15406_v20 = vld [vmem:[#allocation9_spill] sm:$0xff] }
 0x44f   : > { %11407 = vrot.lane.b32.xlu0 %v13924_v24, %s11704_s16 }
 0x450   : > { %v4873_v30 = vadd.f32 %v15404_v62, %v4738_v28  ;;  %v4869_v2 = vadd.f32 %v15400_v45, %v4734_v49  ;;  %v4613_v57 = vpop.permute.xlu1 %4612  ;;  %v4868_v7 = vadd.f32 %v15400_v45, %v4733_v44 }
 0x451   : > { %v4611_v13 = vpop.permute.xlu0 %4610  ;;  %v4649_v63 = vsel %vm428_vm1, %v4613_v57, %v4615_v31 }
 0x452   : > { %v4918_v26 = vmax.f32 %v4873_v30, 0.0  ;;  %v4914_v6 = vmax.f32 %v4869_v2, 0.0  ;;  %v4648_v34 = vsel %vm428_vm1, %v4611_v13, %v4613_v57  ;;  %v4737_v47 = vmax.f32 %v15406_v20, %v4649_v63  ;;  %v15407_v13 = vld [vmem:[#allocation11_spill] sm:$0xff] }
 0x453   : > { %v4736_v39 = vmax.f32 %v15405_v4, %v4648_v34  ;;  %v4913_v16 = vmax.f32 %v4868_v7, 0.0  ;;  %v15409_v34 = vld [vmem:[#allocation10_spill] sm:$0xff] }
 0x454   : > { %v13945_v29 = vpack.i.bf16 %v4915_v50, %v4914_v6  ;;  %v13947_v28 = vpack.c.bf16 %v4918_v26, %v4915_v50  ;;  %v4872_v52 = vadd.f32 %v15404_v62, %v4737_v47  ;;  %v15408_v50 = vld [vmem:[#allocation12_spill] sm:$0xff] }
 0x455   : > { %v4871_v12 = vadd.f32 %v15404_v62, %v4736_v39  ;;  %v4619_v35 = vpop.permute.xlu0 %4618 }
 0x456   : > { %11412 = vrot.lane.b32.xlu1 %v13945_v29, %s11704_s16  ;;  %v4917_v31 = vmax.f32 %v4872_v52, 0.0 }
 0x457   : > { %v4916_v15 = vmax.f32 %v4871_v12, 0.0 }
 0x458   : > { %v13955_v45 = vpack.i.bf16 %v4918_v26, %v4917_v31  ;;  %v13957_v11 = vpack.c.bf16 %v4917_v31, %v4914_v6 }
 0x459   : > { %v13953_v22 = vpack.i.bf16 %v4916_v15, %v4913_v16  ;;  %v13963_v44 = vpack.c.bf16 %v4916_v15, %v4913_v16  ;;  %v4617_v62 = vpop.permute.xlu0 %4616 }
 0x45a   : > { %11417 = vrot.lane.b32.xlu0 %v13955_v45, %s11704_s16  ;;  %v4650_v2 = vsel %vm428_vm1, %v4617_v62, %v4619_v35 }
 0x45b   : > { %11422 = vrot.lane.b32.xlu1 %v13953_v22, %s11704_s16  ;;  %v4739_v7 = vmax.f32 %v15409_v34, %v4650_v2 }
 0x461   : > { %v4830_v49 = vpop.permute.xlu1 %4829 }
 0x462   : > { %v4874_v20 = vadd.f32 %v4830_v49, %v4739_v7 }
 0x464   : > { %v13978_v12 = vmax.f32 %v4874_v20, 0.0 }
 0x465   : > { %v4621_v30 = vpop.permute.xlu1 %4620 }
 0x466   : > { %v4651_v57 = vsel %vm428_vm1, %v4619_v35, %v4621_v30  ;;  %v4741_v63 = vmax.f32 %v15407_v13, %v4621_v30 }
 0x467   : > { %v4740_v26 = vmax.f32 %v15408_v50, %v4651_v57 }
 0x468   : > { %v4876_v6 = vadd.f32 %v4830_v49, %v4741_v63 }
 0x469   : > { %v4875_v4 = vadd.f32 %v4830_v49, %v4740_v26 }
 0x46a   : > { %v13970_v39 = vmax.f32 %v4876_v6, 0.0 }
 0x46b   : > { %v13972_v47 = vmax.f32 %v4875_v4, 0.0 }
 0x46c   : > { %5076 = vrot.lane.b32.xlu1 %v13970_v39, %s11704_s16 }
 0x46d   : > { %5074 = vrot.lane.b32.xlu0 %v13972_v47, %s11704_s16 }
 0x470   : > { %11427 = vrot.lane.b32.xlu1 %v13743_v58, %s11706_s18 }
 0x471   : > { %5072 = vrot.lane.b32.xlu0 %v13978_v12, %s11704_s16 }
 0x474   : > { %11437 = vrot.lane.b32.xlu1 %v13752_v46, %s11706_s18 }
 0x475   : > { %11432 = vrot.lane.b32.xlu0 %v13754_v60, %s11706_s18 }
 0x478   : > { %11447 = vrot.lane.b32.xlu1 %v13786_v9, %s11706_s18 }
 0x479   : > { %11442 = vrot.lane.b32.xlu0 %v13775_v32, %s11706_s18 }
 0x47c   : > { %11457 = vrot.lane.b32.xlu1 %v13809_v42, %s11706_s18 }
 0x47d   : > { %11452 = vrot.lane.b32.xlu0 %v13788_v5, %s11706_s18 }
 0x480   : > { %11467 = vrot.lane.b32.xlu1 %v13820_v21, %s11706_s18  ;;  %v11323_v52 = vpop.permute.xlu1 %11322 }
 0x481   : > { %11462 = vrot.lane.b32.xlu0 %v13822_v37, %s11706_s18  ;;  %v11325_v16 = vunpack.i.h.bf16 %v11323_v52  ;;  %v11324_v15 = vunpack.i.l.bf16 %v11323_v52 }
 0x483   : > { %v5079_v63 = vsel %vm1192_vm6, %v11324_v15, %v11325_v16 }
 0x484   : > { %11477 = vrot.lane.b32.xlu1 %v13854_v61, %s11706_s18  ;;  %v11328_v35 = vpop.permute.xlu0 %11327 }
 0x485   : > { %v11333_v31 = vpop.permute.xlu1 %11332  ;;  %11472 = vrot.lane.b32.xlu0 %v13843_v10, %s11706_s18  ;;  %v11330_v30 = vunpack.i.h.bf16 %v11328_v35  ;;  %v11329_v2 = vunpack.i.l.bf16 %v11328_v35 }
 0x486   : > { %v11335_v49 = vunpack.i.h.bf16 %v11333_v31  ;;  %v11334_v62 = vunpack.i.l.bf16 %v11333_v31 }
 0x487   : > { %v5081_v50 = vsel %vm1192_vm6, %v11329_v2, %v11330_v30 }
 0x488   : > { %v5078_v57 = vsel %vm1192_vm6, %v11334_v62, %v11324_v15  ;;  %v5080_v13 = vsel %vm1192_vm6, %v11335_v49, %v11329_v2  ;;  %11487 = vrot.lane.b32.xlu1 %v13877_v33, %s11706_s18  ;;  %v10149_v26 = vpack.c.bf16 %v5081_v50, %v5079_v63 }
 0x489   : > { %11482 = vrot.lane.b32.xlu0 %v13856_v51, %s11706_s18  ;;  %v10151_v6 = vpack.c.bf16 %v5080_v13, %v5078_v57 }
 0x48a   : > { %10150 = vmatprep.subr.bf16.mxu0 %v10149_v26  ;;  %10290 = vmatprep.subr.bf16.mxu1 %v10149_v26 }
 0x48b   : > { %10152 = vmatpush1.bf16.msra.mxu0 %v10151_v6  ;;  %10292 = vmatpush1.bf16.msra.mxu1 %v10151_v6 }
 0x48c   : > { %v11338_v34 = vpop.permute.xlu0 %11337  ;;  %11497 = vrot.lane.b32.xlu1 %v13888_v41, %s11706_s18 }
 0x48d   : > { %11492 = vrot.lane.b32.xlu0 %v13890_v19, %s11706_s18  ;;  %v11340_v7 = vunpack.i.h.bf16 %v11338_v34  ;;  %v11339_v4 = vunpack.i.l.bf16 %v11338_v34 }
 0x48f   : > { %v5083_v30 = vsel %vm1192_vm6, %v11339_v4, %v11340_v7 }
 0x490   : > { %11507 = vrot.lane.b32.xlu1 %v13922_v1, %s11706_s18  ;;  %v11343_v20 = vpop.permute.xlu1 %11342 }
 0x491   : > { %v11348_v52 = vpop.permute.xlu0 %11347  ;;  %11502 = vrot.lane.b32.xlu0 %v13911_v23, %s11706_s18  ;;  %v11345_v16 = vunpack.i.h.bf16 %v11343_v20  ;;  %v11344_v15 = vunpack.i.l.bf16 %v11343_v20 }
 0x492   : > { %v11350_v31 = vunpack.i.h.bf16 %v11348_v52  ;;  %v11349_v35 = vunpack.i.l.bf16 %v11348_v52 }
 0x493   : > { %v5085_v2 = vsel %vm1192_vm6, %v11344_v15, %v11345_v16 }
 0x494   : > { %v5084_v49 = vsel %vm1192_vm6, %v11350_v31, %v11344_v15  ;;  %v5082_v62 = vsel %vm1192_vm6, %v11349_v35, %v11339_v4  ;;  %11517 = vrot.lane.b32.xlu1 %v13945_v29, %s11706_s18  ;;  %v10153_v57 = vpack.c.bf16 %v5085_v2, %v5083_v30 }
 0x495   : > { %11512 = vrot.lane.b32.xlu0 %v13924_v24, %s11706_s18  ;;  %v10155_v13 = vpack.c.bf16 %v5084_v49, %v5082_v62 }
 0x496   : > { %10154 = vmatprep.subr.bf16.mxu0 %v10153_v57  ;;  %10294 = vmatprep.subr.bf16.mxu1 %v10153_v57 }
 0x497   : > { %10156 = vmatpush1.bf16.msra.mxu0 %v10155_v13  ;;  %10296 = vmatpush1.bf16.msra.mxu1 %v10155_v13 }
 0x498   : > { %v11353_v63 = vpop.permute.xlu1 %11352  ;;  %11527 = vrot.lane.b32.xlu1 %v13953_v22, %s11706_s18 }
 0x499   : > { %11522 = vrot.lane.b32.xlu0 %v13955_v45, %s11706_s18  ;;  %v11355_v50 = vunpack.i.h.bf16 %v11353_v63  ;;  %v11354_v26 = vunpack.i.l.bf16 %v11353_v63 }
 0x49b   : > { %v5087_v31 = vsel %vm1192_vm6, %v11354_v26, %v11355_v50 }
 0x49c   : > { %5548 = vrot.lane.b32.xlu1 %v13970_v39, %s11706_s18  ;;  %v11358_v34 = vpop.permute.xlu0 %11357 }
 0x49d   : > { %v11363_v6 = vpop.permute.xlu1 %11362  ;;  %11537 = vrot.lane.b32.xlu0 %v13754_v60, %s11709_s15  ;;  %v11360_v20 = vunpack.i.h.bf16 %v11358_v34  ;;  %v11359_v52 = vunpack.i.l.bf16 %v11358_v34 }
 0x49e   : > { %v11365_v7 = vunpack.i.h.bf16 %v11363_v6  ;;  %v11364_v4 = vunpack.i.l.bf16 %v11363_v6 }
 0x49f   : > { %v5089_v35 = vsel %vm1192_vm6, %v11359_v52, %v11360_v20 }
 0x4a0   : > { %v5086_v16 = vsel %vm1192_vm6, %v11364_v4, %v11354_v26  ;;  %v5088_v15 = vsel %vm1192_vm6, %v11365_v7, %v11359_v52  ;;  %11532 = vrot.lane.b32.xlu1 %v13743_v58, %s11709_s15  ;;  %v10157_v49 = vpack.c.bf16 %v5089_v35, %v5087_v31 }
 0x4a1   : > { %11547 = vrot.lane.b32.xlu0 %v13775_v32, %s11709_s15  ;;  %v10159_v60 = vpack.c.bf16 %v5088_v15, %v5086_v16 }
 0x4a2   : > { %10158 = vmatprep.subr.bf16.mxu0 %v10157_v49  ;;  %10298 = vmatprep.subr.bf16.mxu1 %v10157_v49 }
 0x4a3   : > { %10160 = vmatpush1.bf16.msra.mxu0 %v10159_v60  ;;  %10300 = vmatpush1.bf16.msra.mxu1 %v10159_v60 }
 0x4a4   : > { %v11368_v62 = vpop.permute.xlu0 %11367  ;;  %11542 = vrot.lane.b32.xlu1 %v13752_v46, %s11709_s15 }
 0x4a5   : > { %5546 = vrot.lane.b32.xlu0 %v13972_v47, %s11706_s18  ;;  %v11370_v30 = vunpack.i.h.bf16 %v11368_v62  ;;  %v11369_v2 = vunpack.i.l.bf16 %v11368_v62 }
 0x4a7   : > { %v5091_v6 = vsel %vm1192_vm6, %v11369_v2, %v11370_v30 }
 0x4a8   : > { %11552 = vrot.lane.b32.xlu1 %v13786_v9, %s11709_s15  ;;  %v11373_v58 = vpop.permute.xlu1 %11372 }
 0x4a9   : > { %v11378_v32 = vpop.permute.xlu0 %11377  ;;  %5544 = vrot.lane.b32.xlu0 %v13978_v12, %s11706_s18  ;;  %v11375_v57 = vunpack.i.h.bf16 %v11373_v58  ;;  %v11374_v13 = vunpack.i.l.bf16 %v11373_v58 }
 0x4aa   : > { %v11380_v63 = vunpack.i.h.bf16 %v11378_v32  ;;  %v11379_v50 = vunpack.i.l.bf16 %v11378_v32 }
 0x4ab   : > { %v5093_v34 = vsel %vm1192_vm6, %v11374_v13, %v11375_v57 }
 0x4ac   : > { %v5092_v26 = vsel %vm1192_vm6, %v11380_v63, %v11374_v13  ;;  %v5090_v46 = vsel %vm1192_vm6, %v11379_v50, %v11369_v2  ;;  %11562 = vrot.lane.b32.xlu1 %v13809_v42, %s11709_s15  ;;  %v10161_v9 = vpack.c.bf16 %v5093_v34, %v5091_v6 }
 0x4ad   : > { %11557 = vrot.lane.b32.xlu0 %v13788_v5, %s11709_s15  ;;  %v10163_v7 = vpack.c.bf16 %v5092_v26, %v5090_v46 }
 0x4ae   : > { %10162 = vmatprep.subr.bf16.mxu0 %v10161_v9  ;;  %10302 = vmatprep.subr.bf16.mxu1 %v10161_v9 }
 0x4af   : > { %10164 = vmatpush1.bf16.msra.mxu0 %v10163_v7  ;;  %10304 = vmatpush1.bf16.msra.mxu1 %v10163_v7 }
 0x4b0   : > { %v11383_v4 = vpop.permute.xlu1 %11382  ;;  %11572 = vrot.lane.b32.xlu1 %v13820_v21, %s11709_s15 }
 0x4b1   : > { %11567 = vrot.lane.b32.xlu0 %v13822_v37, %s11709_s15  ;;  %v11385_v20 = vunpack.i.h.bf16 %v11383_v4  ;;  %v11384_v52 = vunpack.i.l.bf16 %v11383_v4 }
 0x4b3   : > { %v5095_v37 = vsel %vm1192_vm6, %v11384_v52, %v11385_v20 }
 0x4b4   : > { %11582 = vrot.lane.b32.xlu1 %v13854_v61, %s11709_s15  ;;  %v11388_v5 = vpop.permute.xlu0 %11387 }
 0x4b5   : > { %v11393_v42 = vpop.permute.xlu1 %11392  ;;  %11577 = vrot.lane.b32.xlu0 %v13843_v10, %s11709_s15  ;;  %v11390_v31 = vunpack.i.h.bf16 %v11388_v5  ;;  %v11389_v35 = vunpack.i.l.bf16 %v11388_v5 }
 0x4b6   : > { %v11395_v16 = vunpack.i.h.bf16 %v11393_v42  ;;  %v11394_v15 = vunpack.i.l.bf16 %v11393_v42 }
 0x4b7   : > { %v5097_v60 = vsel %vm1192_vm6, %v11389_v35, %v11390_v31  ;;  %v7329_v31 = vld [vmem:[%s15356_s4 + $0x8] sm:$0xff] }
 0x4b8   : > { %v5094_v49 = vsel %vm1192_vm6, %v11394_v15, %v11384_v52  ;;  %v5096_v21 = vsel %vm1192_vm6, %v11395_v16, %v11389_v35  ;;  %11592 = vrot.lane.b32.xlu1 %v13877_v33, %s11709_s15  ;;  %v10165_v61 = vpack.c.bf16 %v5097_v60, %v5095_v37  ;;  %v7330_v15 = vld [vmem:[%s15356_s4 + $0x10] sm:$0xff]  ;;  %v7332_v35 = vld [vmem:[%s15356_s4 + $0x20] sm:$0xff]  ;;  %v7333_v37 = vld [vmem:[%s15356_s4 + $0x28] sm:$0xff] }
 0x4b9   : > { %11587 = vrot.lane.b32.xlu0 %v13856_v51, %s11709_s15  ;;  %v10167_v10 = vpack.c.bf16 %v5096_v21, %v5094_v49  ;;  %v7331_v49 = vld [vmem:[%s15356_s4 + $0x18] sm:$0xff]  ;;  %v7334_v21 = vld [vmem:[%s15356_s4 + $0x30] sm:$0xff] }
 0x4ba   : > { %10166 = vmatprep.subr.bf16.mxu0 %v10165_v61  ;;  %10306 = vmatprep.subr.bf16.mxu1 %v10165_v61  ;;  %v7336_v61 = vld [vmem:[%s15356_s4 + $0x40] sm:$0xff] }
 0x4bb   : > { %10168 = vmatpush1.bf16.msra.mxu0 %v10167_v10  ;;  %10308 = vmatpush1.bf16.msra.mxu1 %v10167_v10  ;;  %v7335_v10 = vld [vmem:[%s15356_s4 + $0x38] sm:$0xff] }
 0x4bc   : > { %v11398_v62 = vpop.permute.xlu0 %11397  ;;  %11602 = vrot.lane.b32.xlu1 %v13888_v41, %s11709_s15 }
 0x4bd   : > { %11597 = vrot.lane.b32.xlu0 %v13890_v19, %s11709_s15  ;;  %v11400_v30 = vunpack.i.h.bf16 %v11398_v62  ;;  %v11399_v2 = vunpack.i.l.bf16 %v11398_v62 }
 0x4bf   : > { %v5099_v19 = vsel %vm1192_vm6, %v11399_v2, %v11400_v30 }
 0x4c0   : > { %11612 = vrot.lane.b32.xlu1 %v13922_v1, %s11709_s15  ;;  %v11403_v33 = vpop.permute.xlu1 %11402 }
 0x4c1   : > { %v11408_v51 = vpop.permute.xlu0 %11407  ;;  %11607 = vrot.lane.b32.xlu0 %v13911_v23, %s11709_s15  ;;  %v11405_v58 = vunpack.i.h.bf16 %v11403_v33  ;;  %v11404_v32 = vunpack.i.l.bf16 %v11403_v33  ;;  %v7337_v33 = vld [vmem:[%s15356_s4 + $0x48] sm:$0xff] }
 0x4c2   : > { %v11410_v57 = vunpack.i.h.bf16 %v11408_v51  ;;  %v11409_v13 = vunpack.i.l.bf16 %v11408_v51 }
 0x4c3   : > { %v5101_v50 = vsel %vm1192_vm6, %v11404_v32, %v11405_v58  ;;  %v8755_v58 = vld [vmem:[%s15355_s3 + $0x50] sm:$0xff] }
 0x4c4   : > { %v5100_v63 = vsel %vm1192_vm6, %v11410_v57, %v11404_v32  ;;  %v5098_v41 = vsel %vm1192_vm6, %v11409_v13, %v11399_v2  ;;  %11622 = vrot.lane.b32.xlu1 %v13945_v29, %s11709_s15  ;;  %v10169_v1 = vpack.c.bf16 %v5101_v50, %v5099_v19  ;;  %v8855_v57 = vld [vmem:[%s15355_s3 + $0x1e0] sm:$0xff]  ;;  %v8856_v19 = vld [vmem:[%s15355_s3 + $0x1e8] sm:$0xff]  ;;  %v15410_v50 = vmov 0.0  }
 0x4c5   : > { %11617 = vrot.lane.b32.xlu0 %v13924_v24, %s11709_s15  ;;  %v10171_v23 = vpack.c.bf16 %v5100_v63, %v5098_v41  ;;  %v8756_v41 = vld [vmem:[%s15355_s3 + $0x58] sm:$0xff] }
 0x4c6   : > { %10170 = vmatprep.subr.bf16.mxu0 %v10169_v1  ;;  %10310 = vmatprep.subr.bf16.mxu1 %v10169_v1 }
 0x4c7   : > { %10172 = vmatpush1.bf16.msra.mxu0 %v10171_v23  ;;  %10312 = vmatpush1.bf16.msra.mxu1 %v10171_v23 }
 0x4c8   : > { %v11413_v26 = vpop.permute.xlu1 %11412  ;;  %11632 = vrot.lane.b32.xlu1 %v13953_v22, %s11709_s15  ;;  %v7328_v22 = vld [vmem:[%s15356_s4] sm:$0xff] }
 0x4c9   : > { %11627 = vrot.lane.b32.xlu0 %v13955_v45, %s11709_s15  ;;  %v11415_v46 = vunpack.i.h.bf16 %v11413_v26  ;;  %v11414_v6 = vunpack.i.l.bf16 %v11413_v26  ;;  %v8857_v26 = vld [vmem:[%s15355_s3 + $0x1f0] sm:$0xff] }
 0x4cb   : > { %v5103_v52 = vsel %vm1192_vm6, %v11414_v6, %v11415_v46 }
 0x4cc   : > { %5884 = vrot.lane.b32.xlu1 %v13970_v39, %s11709_s15  ;;  %v11418_v24 = vpop.permute.xlu0 %11417 }
 0x4cd   : > { %v11423_v29 = vpop.permute.xlu1 %11422  ;;  %5882 = vrot.lane.b32.xlu0 %v13972_v47, %s11709_s15  ;;  %v11420_v7 = vunpack.i.h.bf16 %v11418_v24  ;;  %v11419_v4 = vunpack.i.l.bf16 %v11418_v24 }
 0x4ce   : > { %v11425_v34 = vunpack.i.h.bf16 %v11423_v29  ;;  %v11424_v9 = vunpack.i.l.bf16 %v11423_v29  ;;  %v8858_v29 = vld [vmem:[%s15355_s3 + $0x1f8] sm:$0xff] }
 0x4cf   : > { %v5105_v42 = vsel %vm1192_vm6, %v11419_v4, %v11420_v7 }
 0x4d0   : > { %v5102_v45 = vsel %vm1192_vm6, %v11424_v9, %v11414_v6  ;;  %v5104_v20 = vsel %vm1192_vm6, %v11425_v34, %v11419_v4  ;;  %7340 = vperm.xlu1 %11320, %v7328_v22   ;;  %v10173_v5 = vpack.c.bf16 %v5105_v42, %v5103_v52  ;;  %v8859_v9 = vld [vmem:[%s15355_s3 + $0x200] sm:$0xff]  ;;  %v8860_v22 = vld [vmem:[%s15355_s3 + $0x208] sm:$0xff] }
 0x4d1   : > { %5880 = vrot.lane.b32.xlu0 %v13978_v12, %s11709_s15  ;;  %v10175_v16 = vpack.c.bf16 %v5104_v20, %v5102_v45  ;;  %v8761_v42 = vld [vmem:[%s15355_s3 + $0x80] sm:$0xff] }
 0x4d2   : > { %10174 = vmatprep.subr.bf16.mxu0 %v10173_v5  ;;  %10314 = vmatprep.subr.bf16.mxu1 %v10173_v5  ;;  %v8861_v5 = vld [vmem:[%s15355_s3 + $0x210] sm:$0xff] }
 0x4d3   : > { %10176 = vmatpush1.bf16.msra.mxu0 %v10175_v16  ;;  %10316 = vmatpush1.bf16.msra.mxu1 %v10175_v16 }
 0x4d4   : > { %7350 = vperm.xlu1 %11320, %v7330_v15  }
 0x4d5   : > { %7345 = vperm.xlu0 %11319, %v7329_v31  }
 0x4d8   : > { %7360 = vperm.xlu1 %11320, %v7332_v35   ;;  %v8762_v35 = vld [vmem:[%s15355_s3 + $0x88] sm:$0xff] }
 0x4d9   : > { %7355 = vperm.xlu0 %11319, %v7331_v49  }
 0x4dc   : > { %7370 = vperm.xlu1 %11320, %v7334_v21   ;;  %v8862_v21 = vld [vmem:[%s15355_s3 + $0x218] sm:$0xff] }
 0x4dd   : > { %7365 = vperm.xlu0 %11319, %v7333_v37  }
 0x4de   : > { %v5077_v60 = vpop.permute.xlu1 %5076 }
 0x4df   : > { %v5075_v62 = vpop.permute.xlu0 %5074 }
 0x4e0   : > { %v5107_v30 = vsel %vm1192_vm6, %v5075_v62, %v5077_v60  ;;  %7380 = vperm.xlu1 %11320, %v7336_v61  }
 0x4e1   : > { %7375 = vperm.xlu0 %11319, %v7335_v10   ;;  %5197 = vmatprep.subr.mxu0 %v5107_v30  ;;  %v8763_v10 = vld [vmem:[%s15355_s3 + $0x90] sm:$0xff] }
 0x4e2   : > { %6388 = vmatprep.subr.mxu1 %v5107_v30  ;;  %v14134_v2 = vpop.permute.xlu1 %11427 }
 0x4e3   : > { %v5073_v51 = vpop.permute.xlu0 %5072  ;;  %v11430_v16 = vunpack.i.h.bf16 %v14134_v2  ;;  %v11429_v15 = vunpack.i.l.bf16 %v14134_v2 }
 0x4e4   : > { %v5106_v32 = vsel %vm1192_vm6, %v5073_v51, %v5075_v62  ;;  %v8863_v62 = vld [vmem:[%s15355_s3 + $0x220] sm:$0xff] }
 0x4e5   : > { %7385 = vperm.xlu0 %11319, %v7337_v33   ;;  %5198 = vmatpush1.msra.mxu0 %v5106_v32  ;;  %v5551_v37 = vsel %vm2114_vm8, %v11429_v15, %v11430_v16 }
 0x4e6   : > { %6389 = vmatpush1.msra.mxu1 %v5106_v32  ;;  %v14146_v13 = vpop.permute.xlu1 %11437  ;;  %8765 = vmatmul.mubr.msk.f32.vlgmr.msra.gmra.mrb[60].mxu0 %vm5138_vm9, %v8755_v58 }
 0x4e7   : > { %10178 = vmatprep.subr.bf16.mxu0 %v13767_v0  ;;  %8865 = vmatmul.mubr.msk.f32.vlgmr.msra.gmra.mrb[60].mxu1 %vm5138_vm9, %v8855_v57  ;;  %v14151_v63 = vpop.permute.xlu0 %11432  ;;  %v11440_v30 = vunpack.i.h.bf16 %v14146_v13  ;;  %v11439_v2 = vunpack.i.l.bf16 %v14146_v13 }
 0x4e8   : > { %10318 = vmatprep.subr.bf16.mxu1 %v13767_v0  ;;  %10180 = vmatpush1.bf16.msra.mxu0 %v13769_v54  ;;  %v11434_v52 = vunpack.i.l.bf16 %v14151_v63 }
 0x4e9   : > { %10320 = vmatpush1.bf16.msra.mxu1 %v13769_v54  ;;  %10182 = vmatprep.subr.bf16.mxu0 %v13801_v18  ;;  %v8757_v54 = vld [vmem:[%s15355_s3 + $0x60] sm:$0xff] }
 0x4ea   : > { %10322 = vmatprep.subr.bf16.mxu1 %v13801_v18  ;;  %5239 = vmatprep.mubr.f32.mxu0 %v15410_v50  ;;  %v14165_v1 = vpop.permute.xlu1 %11447 }
 0x4eb   : > { %6430 = vmatprep.mubr.f32.mxu1 %v15410_v50  ;;  %8766 = vmatmul.mubr.msk.f32.gmra.mrb[62].mxu0 %vm5138_vm9, %v8756_v41  ;;  %v14169_v23 = vpop.permute.xlu0 %11442  ;;  %v11450_v33 = vunpack.i.h.bf16 %v14165_v1  ;;  %v11449_v51 = vunpack.i.l.bf16 %v14165_v1  ;;  %v8764_v41 = vld [vmem:[%s15355_s3 + $0x98] sm:$0xff]  ;;  %v5550_v1 = vsel %vm2114_vm8, %v11439_v2, %v11429_v15 }
 0x4ec   : > { %8866 = vmatmul.mubr.msk.f32.gmra.mrb[62].mxu1 %vm5138_vm9, %v8856_v19  ;;  %10184 = vmatpush1.bf16.msra.mxu0 %v13803_v53  ;;  %v11445_v58 = vunpack.i.h.bf16 %v14169_v23  ;;  %v8864_v19 = vld [vmem:[%s15355_s3 + $0x228] sm:$0xff] }
 0x4ed   : > { %10324 = vmatpush1.bf16.msra.mxu1 %v13803_v53  ;;  %10186 = vmatprep.subr.bf16.mxu0 %v13835_v17  ;;  %v8758_v53 = vld [vmem:[%s15355_s3 + $0x68] sm:$0xff] }
 0x4ee   : > { %10326 = vmatprep.subr.bf16.mxu1 %v13835_v17  ;;  %5245 = vmatprep.mubr.f32.mxu0 %v15410_v50  ;;  %v14183_v46 = vpop.permute.xlu1 %11457 }
 0x4ef   : > { %6436 = vmatprep.mubr.f32.mxu1 %v15410_v50  ;;  %8767 = vmatmul.mubr.msk.f32.gmra.mrb[64].mxu0 %vm5138_vm9, %v8757_v54  ;;  %v14187_v6 = vpop.permute.xlu0 %11452  ;;  %v11460_v54 = vunpack.i.h.bf16 %v14183_v46 }
 0x4f0   : > { %8867 = vmatmul.mubr.msk.f32.gmra.mrb[64].mxu1 %vm5138_vm9, %v8857_v26  ;;  %10188 = vmatpush1.bf16.msra.mxu0 %v13837_v55  ;;  %v11455_v13 = vunpack.i.h.bf16 %v14187_v6  ;;  %v11459_v26 = vunpack.i.l.bf16 %v14183_v46  ;;  %v4922_v46 = vld [vmem:[%s15355_s3] sm:$0xff] }
 0x4f1   : > { %10328 = vmatpush1.bf16.msra.mxu1 %v13837_v55  ;;  %10190 = vmatprep.subr.bf16.mxu0 %v13869_v59  ;;  %v8759_v55 = vld [vmem:[%s15355_s3 + $0x70] sm:$0xff] }
 0x4f2   : > { %10330 = vmatprep.subr.bf16.mxu1 %v13869_v59  ;;  %5251 = vmatprep.mubr.f32.mxu0 %v15410_v50  ;;  %v14201_v24 = vpop.permute.xlu1 %11467 }
 0x4f3   : > { %6442 = vmatprep.mubr.f32.mxu1 %v15410_v50  ;;  %8768 = vmatmul.mubr.msk.f32.gmra.mrb[66].mxu0 %vm5138_vm9, %v8758_v53  ;;  %v14205_v34 = vpop.permute.xlu0 %11462 }
 0x4f4   : > { %8868 = vmatmul.mubr.msk.f32.gmra.mrb[66].mxu1 %vm5138_vm9, %v8858_v29  ;;  %10192 = vmatpush1.bf16.msra.mxu0 %v13871_v36 }
 0x4f5   : > { %10332 = vmatpush1.bf16.msra.mxu1 %v13871_v36  ;;  %10194 = vmatprep.subr.bf16.mxu0 %v13903_v43  ;;  %v8760_v36 = vld [vmem:[%s15355_s3 + $0x78] sm:$0xff] }
 0x4f6   : > { %10334 = vmatprep.subr.bf16.mxu1 %v13903_v43  ;;  %5257 = vmatprep.mubr.f32.mxu0 %v15410_v50  ;;  %v14219_v7 = vpop.permute.xlu1 %11477 }
 0x4f7   : > { %6448 = vmatprep.mubr.f32.mxu1 %v15410_v50  ;;  %8769 = vmatmul.mubr.msk.f32.gmra.mrb[68].mxu0 %vm5138_vm9, %v8759_v55  ;;  %v14223_v4 = vpop.permute.xlu0 %11472  ;;  %v5557_v55 = vsel %vm2114_vm8, %v11449_v51, %v11450_v33  ;;  %v11479_v16 = vunpack.i.l.bf16 %v14219_v7  ;;  %v8846_v33 = vld [vmem:[%s15355_s3 + $0x198] sm:$0xff] }
 0x4f8   : > { %8869 = vmatmul.mubr.msk.f32.gmra.mrb[68].mxu1 %vm5138_vm9, %v8859_v9  ;;  %10196 = vmatpush1.bf16.msra.mxu0 %v13905_v25  ;;  %v5556_v9 = vsel %vm2114_vm8, %v11455_v13, %v11449_v51 }
 0x4f9   : > { %10336 = vmatpush1.bf16.msra.mxu1 %v13905_v25  ;;  %10198 = vmatprep.subr.bf16.mxu0 %v13937_v8  ;;  %v11435_v25 = vunpack.i.h.bf16 %v14151_v63  ;;  %v11454_v63 = vunpack.i.l.bf16 %v14187_v6 }
 0x4fa   : > { %10338 = vmatprep.subr.bf16.mxu1 %v13937_v8  ;;  %5263 = vmatprep.mubr.f32.mxu0 %v15410_v50  ;;  %v14237_v45 = vpop.permute.xlu1 %11487 }
 0x4fb   : > { %6454 = vmatprep.mubr.f32.mxu1 %v15410_v50  ;;  %8770 = vmatmul.mubr.msk.f32.gmra.mrb[70].mxu0 %vm5138_vm9, %v8760_v36  ;;  %v14241_v20 = vpop.permute.xlu0 %11482  ;;  %v5553_v49 = vsel %vm2114_vm8, %v11434_v52, %v11435_v25  ;;  %v11464_v25 = vunpack.i.l.bf16 %v14205_v34 }
 0x4fc   : > { %8870 = vmatmul.mubr.msk.f32.gmra.mrb[70].mxu1 %vm5138_vm9, %v8860_v22  ;;  %10200 = vmatpush1.bf16.msra.mxu0 %v13939_v3  ;;  %v11465_v22 = vunpack.i.h.bf16 %v14205_v34  ;;  %v8845_v34 = vld [vmem:[%s15355_s3 + $0x190] sm:$0xff]  ;;  %v11485_v2 = vunpack.i.h.bf16 %v14241_v20 }
 0x4fd   : > { %10340 = vmatpush1.bf16.msra.mxu1 %v13939_v3  ;;  %10202 = vmatprep.subr.bf16.mxu0 %v13957_v11 }
 0x4fe   : > { %10342 = vmatprep.subr.bf16.mxu1 %v13957_v11  ;;  %5269 = vmatprep.mubr.f32.mxu0 %v15410_v50  ;;  %v14260_v31 = vpop.permute.xlu1 %11497 }
 0x4ff   : > { %6460 = vmatprep.mubr.f32.mxu1 %v15410_v50  ;;  %8771 = vmatmul.mubr.msk.f32.gmra.mrb[72].mxu0 %vm5138_vm9, %v8761_v42  ;;  %v14263_v3 = vpop.permute.xlu0 %11492  ;;  %v11469_v42 = vunpack.i.l.bf16 %v14201_v24 }
 0x500   : > { %8871 = vmatmul.mubr.msk.f32.gmra.mrb[72].mxu1 %vm5138_vm9, %v8861_v5  ;;  %10204 = vmatpush1.bf16.msra.mxu0 %v13963_v44  ;;  %v11480_v5 = vunpack.i.h.bf16 %v14219_v7  ;;  %v4923_v7 = vld [vmem:[%s15355_s3 + $0x8] sm:$0xff]  ;;  %v11494_v13 = vunpack.i.l.bf16 %v14263_v3 }
 0x501   : > { %10344 = vmatpush1.bf16.msra.mxu1 %v13963_v44  ;;  %5352 = vmatprep.subr.mxu0 %v13972_v47  ;;  %v10205_v44 = vpack.c.bf16 %v5553_v49, %v5551_v37  ;;  %v11474_v49 = vunpack.i.l.bf16 %v14223_v4 }
 0x502   : > { %6543 = vmatprep.subr.mxu1 %v13972_v47  ;;  %5275 = vmatprep.mubr.f32.mxu0 %v15410_v50  ;;  %v14280_v60 = vpop.permute.xlu1 %11507  ;;  %v5565_v51 = vsel %vm2114_vm8, %v11479_v16, %v11480_v5 }
 0x503   : > { %6466 = vmatprep.mubr.f32.mxu1 %v15410_v50  ;;  %8772 = vmatmul.mubr.msk.f32.gmra.mrb[74].mxu0 %vm5138_vm9, %v8762_v35  ;;  %v14283_v61 = vpop.permute.xlu0 %11502  ;;  %v11475_v35 = vunpack.i.h.bf16 %v14223_v4  ;;  %v5558_v4 = vsel %vm2114_vm8, %v11469_v42, %v11459_v26 }
 0x504   : > { %8872 = vmatmul.mubr.msk.f32.gmra.mrb[74].mxu1 %vm5138_vm9, %v8862_v21  ;;  %5353 = vmatpush1.msra.mxu0 %v13978_v12  ;;  %v11504_v42 = vunpack.i.l.bf16 %v14283_v61 }
 0x505   : > { %6544 = vmatpush1.msra.mxu1 %v13978_v12  ;;  %10206 = vmatprep.subr.bf16.mxu0 %v10205_v44  ;;  %v11444_v12 = vunpack.i.l.bf16 %v14169_v23  ;;  %v5552_v23 = vsel %vm2114_vm8, %v11440_v30, %v11434_v52  ;;  %v11470_v52 = vunpack.i.h.bf16 %v14201_v24 }
 0x506   : > { %10346 = vmatprep.subr.bf16.mxu1 %v10205_v44  ;;  %5281 = vmatprep.mubr.f32.mxu0 %v15410_v50  ;;  %v14302_v32 = vpop.permute.xlu1 %11517  ;;  %v10207_v15 = vpack.c.bf16 %v5552_v23, %v5550_v1 }
 0x507   : > { %6472 = vmatprep.mubr.f32.mxu1 %v15410_v50  ;;  %8773 = vmatmul.mubr.msk.f32.gmra.mrb[76].mxu0 %vm5138_vm9, %v8763_v10  ;;  %v14305_v57 = vpop.permute.xlu0 %11512  ;;  %v5555_v29 = vsel %vm2114_vm8, %v11444_v12, %v11445_v58  ;;  %v5554_v36 = vsel %vm2114_vm8, %v11454_v63, %v11444_v12  ;;  %v5559_v10 = vsel %vm2114_vm8, %v11459_v26, %v11460_v54  ;;  %v11484_v58 = vunpack.i.l.bf16 %v14241_v20  ;;  %v4924_v20 = vld [vmem:[%s15355_s3 + $0x10] sm:$0xff] }
 0x508   : > { %8873 = vmatmul.mubr.msk.f32.gmra.mrb[76].mxu1 %vm5138_vm9, %v8863_v62  ;;  %5287 = vmatprep.mubr.f32.mxu0 %v15410_v50  ;;  %v10209_v37 = vpack.c.bf16 %v5557_v55, %v5555_v29  ;;  %v10211_v44 = vpack.c.bf16 %v5556_v9, %v5554_v36  ;;  %v5561_v62 = vsel %vm2114_vm8, %v11464_v25, %v11465_v22  ;;  %v11495_v12 = vunpack.i.h.bf16 %v14263_v3  ;;  %v8847_v29 = vld [vmem:[%s15355_s3 + $0x1a0] sm:$0xff] }
 0x509   : > { %6478 = vmatprep.mubr.f32.mxu1 %v15410_v50  ;;  %v5560_v30 = vsel %vm2114_vm8, %v11470_v52, %v11464_v25  ;;  %v5563_v63 = vsel %vm2114_vm8, %v11474_v49, %v11475_v35  ;;  %v10213_v1 = vpack.c.bf16 %v5561_v62, %v5559_v10  ;;  %v11490_v3 = vunpack.i.h.bf16 %v14237_v45 }
 0x50a   : > { %v14322_v6 = vpop.permute.xlu1 %11527  ;;  %v10215_v23 = vpack.c.bf16 %v5560_v30, %v5558_v4  ;;  %v11489_v54 = vunpack.i.l.bf16 %v14237_v45  ;;  %v5564_v26 = vsel %vm2114_vm8, %v11485_v2, %v11479_v16  ;;  %v10217_v55 = vpack.c.bf16 %v5565_v51, %v5563_v63  ;;  %v4925_v16 = vld [vmem:[%s15355_s3 + $0x18] sm:$0xff] }
 0x50b   : > { %8774 = vmatmul.mubr.msk.f32.gmra.mrb[78].mxu0 %vm5138_vm9, %v8764_v41  ;;  %v14325_v53 = vpop.permute.xlu0 %11522  ;;  %v5562_v9 = vsel %vm2114_vm8, %v11484_v58, %v11474_v49  ;;  %v11500_v36 = vunpack.i.h.bf16 %v14260_v31  ;;  %v11499_v22 = vunpack.i.l.bf16 %v14260_v31  ;;  %v5569_v45 = vsel %vm2114_vm8, %v11494_v13, %v11495_v12 }
 0x50c   : > { %8874 = vmatmul.mubr.msk.f32.gmra.mrb[78].mxu1 %vm5138_vm9, %v8864_v19  ;;  %5388 = vmatprep.mubr.f32.mxu0 %v15410_v50  ;;  %v11510_v25 = vunpack.i.h.bf16 %v14280_v60  ;;  %v11505_v52 = vunpack.i.h.bf16 %v14283_v61  ;;  %v8848_v61 = vld [vmem:[%s15355_s3 + $0x1a8] sm:$0xff]  ;;  %v11525_v30 = vunpack.i.h.bf16 %v14325_v53  ;;  %v11524_v2 = vunpack.i.l.bf16 %v14325_v53 }
 0x50d   : > { %6579 = vmatprep.mubr.f32.mxu1 %v15410_v50  ;;  %v5568_v35 = vsel %vm2114_vm8, %v11500_v36, %v11494_v13  ;;  %v11520_v58 = vunpack.i.h.bf16 %v14302_v32  ;;  %v11519_v12 = vunpack.i.l.bf16 %v14302_v32  ;;  %v4927_v32 = vld [vmem:[%s15355_s3 + $0x28] sm:$0xff] }
 0x50e   : > { %v14348_v21 = vpop.permute.xlu1 %5548  ;;  %v5571_v62 = vsel %vm2114_vm8, %v11504_v42, %v11505_v52  ;;  %v4928_v52 = vld [vmem:[%s15355_s3 + $0x30] sm:$0xff] }
 0x50f   : > { %8775 = vmatmul.mubr.msk.f32.vlgmr.msra.gmra.mrb[60].mxu0 %vm5138_vm9, %v4922_v46  ;;  %v14351_v24 = vpop.permute.xlu0 %11537  ;;  %v11509_v46 = vunpack.i.l.bf16 %v14280_v60  ;;  %v10219_v60 = vpack.c.bf16 %v5564_v26, %v5562_v9 }
 0x510   : > { %10208 = vmatpush1.bf16.msra.mxu0 %v10207_v15  ;;  %8875 = vmatmul.mubr.msk.f32.vlgmr.msra.gmra.mrb[60].mxu1 %vm5138_vm9, %v8845_v34  ;;  %v5567_v34 = vsel %vm2114_vm8, %v11489_v54, %v11490_v3 }
 0x511   : > { %10348 = vmatpush1.bf16.msra.mxu1 %v10207_v15  ;;  %10210 = vmatprep.subr.bf16.mxu0 %v10209_v37  ;;  %v5566_v15 = vsel %vm2114_vm8, %v11499_v22, %v11489_v54  ;;  %v10221_v49 = vpack.c.bf16 %v5569_v45, %v5567_v34  ;;  %v5573_v4 = vsel %vm2114_vm8, %v11509_v46, %v11510_v25 }
 0x512   : > { %10350 = vmatprep.subr.bf16.mxu1 %v10209_v37  ;;  %5394 = vmatprep.mubr.f32.mxu0 %v15410_v50  ;;  %v14372_v41 = vpop.permute.xlu1 %11532  ;;  %v11515_v37 = vunpack.i.h.bf16 %v14305_v57  ;;  %v10223_v51 = vpack.c.bf16 %v5568_v35, %v5566_v15  ;;  %v10225_v53 = vpack.c.bf16 %v5573_v4, %v5571_v62  ;;  %v5577_v54 = vsel %vm2114_vm8, %v11524_v2, %v11525_v30  ;;  %v4930_v30 = vld [vmem:[%s15355_s3 + $0x40] sm:$0xff] }
 0x513   : > { %6585 = vmatprep.mubr.f32.mxu1 %v15410_v50  ;;  %8776 = vmatmul.mubr.msk.f32.gmra.mrb[62].mxu0 %vm5138_vm9, %v4923_v7  ;;  %v14375_v19 = vpop.permute.xlu0 %11547  ;;  %v11535_v25 = vunpack.i.h.bf16 %v14372_v41 }
 0x514   : > { %10212 = vmatpush1.bf16.msra.mxu0 %v10211_v44  ;;  %8876 = vmatmul.mubr.msk.f32.gmra.mrb[62].mxu1 %vm5138_vm9, %v8846_v33  ;;  %v8849_v33 = vld [vmem:[%s15355_s3 + $0x1b0] sm:$0xff]  ;;  %v5572_v13 = vsel %vm2114_vm8, %v11515_v37, %v11509_v46  ;;  %v11534_v46 = vunpack.i.l.bf16 %v14372_v41 }
 0x515   : > { %10352 = vmatpush1.bf16.msra.mxu1 %v10211_v44  ;;  %10214 = vmatprep.subr.bf16.mxu0 %v10213_v1  ;;  %v11514_v44 = vunpack.i.l.bf16 %v14305_v57  ;;  %v4926_v57 = vld [vmem:[%s15355_s3 + $0x20] sm:$0xff] }
 0x516   : > { %10354 = vmatprep.subr.bf16.mxu1 %v10213_v1  ;;  %5400 = vmatprep.mubr.f32.mxu0 %v15410_v50  ;;  %v14397_v5 = vpop.permute.xlu1 %11542  ;;  %v11530_v1 = vunpack.i.h.bf16 %v14322_v6  ;;  %v5888_v35 = vsel %vm5886_vm10, %v11534_v46, %v11535_v25 }
 0x517   : > { %6591 = vmatprep.mubr.f32.mxu1 %v15410_v50  ;;  %8777 = vmatmul.mubr.msk.f32.gmra.mrb[64].mxu0 %vm5138_vm9, %v4924_v20  ;;  %v14400_v31 = vpop.permute.xlu0 %5546  ;;  %v5570_v63 = vsel %vm2114_vm8, %v11514_v44, %v11504_v42  ;;  %v8851_v42 = vld [vmem:[%s15355_s3 + $0x1c0] sm:$0xff] }
 0x518   : > { %10216 = vmatpush1.bf16.msra.mxu0 %v10215_v23  ;;  %8877 = vmatmul.mubr.msk.f32.gmra.mrb[64].mxu1 %vm5138_vm9, %v8847_v29  ;;  %v10227_v26 = vpack.c.bf16 %v5572_v13, %v5570_v63  ;;  %v5575_v29 = vsel %vm2114_vm8, %v11519_v12, %v11520_v58  ;;  %v5576_v9 = vsel %vm2114_vm8, %v11530_v1, %v11524_v2  ;;  %v11545_v2 = vunpack.i.h.bf16 %v14397_v5 }
 0x519   : > { %10356 = vmatpush1.bf16.msra.mxu1 %v10215_v23  ;;  %10218 = vmatprep.subr.bf16.mxu0 %v10217_v55  ;;  %v11529_v23 = vunpack.i.l.bf16 %v14322_v6  ;;  %v8850_v6 = vld [vmem:[%s15355_s3 + $0x1b8] sm:$0xff]  ;;  %v10229_v45 = vpack.c.bf16 %v5577_v54, %v5575_v29  ;;  %v5579_v15 = vsel %vm2114_vm8, %v14400_v31, %v14348_v21  ;;  %v11549_v13 = vunpack.i.l.bf16 %v14375_v19 }
 0x51a   : > { %10358 = vmatprep.subr.bf16.mxu1 %v10217_v55  ;;  %5406 = vmatprep.mubr.f32.mxu0 %v15410_v50  ;;  %v14416_v7 = vpop.permute.xlu1 %11552 }
 0x51b   : > { %6597 = vmatprep.mubr.f32.mxu1 %v15410_v50  ;;  %8778 = vmatmul.mubr.msk.f32.gmra.mrb[66].mxu0 %vm5138_vm9, %v4925_v16  ;;  %v14419_v10 = vpop.permute.xlu0 %5544  ;;  %v5574_v55 = vsel %vm2114_vm8, %v11529_v23, %v11519_v12 }
 0x51c   : > { %10220 = vmatpush1.bf16.msra.mxu0 %v10219_v60  ;;  %8878 = vmatmul.mubr.msk.f32.gmra.mrb[66].mxu1 %vm5138_vm9, %v8848_v61  ;;  %v10231_v16 = vpack.c.bf16 %v5576_v9, %v5574_v55  ;;  %v11539_v61 = vunpack.i.l.bf16 %v14351_v24  ;;  %v5578_v21 = vsel %vm2114_vm8, %v14419_v10, %v14400_v31  ;;  %v8853_v31 = vld [vmem:[%s15355_s3 + $0x1d0] sm:$0xff]  ;;  %v11544_v10 = vunpack.i.l.bf16 %v14397_v5  ;;  %v4931_v5 = vld [vmem:[%s15355_s3 + $0x48] sm:$0xff] }
 0x51d   : > { %10360 = vmatpush1.bf16.msra.mxu1 %v10219_v60  ;;  %10222 = vmatprep.subr.bf16.mxu0 %v10221_v49  ;;  %v11540_v60 = vunpack.i.h.bf16 %v14351_v24  ;;  %v4929_v24 = vld [vmem:[%s15355_s3 + $0x38] sm:$0xff] }
 0x51e   : > { %10362 = vmatprep.subr.bf16.mxu1 %v10221_v49  ;;  %5412 = vmatprep.mubr.f32.mxu0 %v15410_v50  ;;  %v14440_v20 = vpop.permute.xlu1 %11562  ;;  %v8852_v49 = vld [vmem:[%s15355_s3 + $0x1c8] sm:$0xff]  ;;  %v5887_v63 = vsel %vm5886_vm10, %v11544_v10, %v11534_v46  ;;  %v5889_v23 = vsel %vm5886_vm10, %v11545_v2, %v11539_v61 }
 0x51f   : > { %6603 = vmatprep.mubr.f32.mxu1 %v15410_v50  ;;  %8779 = vmatmul.mubr.msk.f32.gmra.mrb[68].mxu0 %vm5138_vm9, %v4926_v57  ;;  %v14443_v3 = vpop.permute.xlu0 %11557  ;;  %v5890_v37 = vsel %vm5886_vm10, %v11539_v61, %v11540_v60  ;;  %v11555_v57 = vunpack.i.h.bf16 %v14416_v7 }
 0x520   : > { %10224 = vmatpush1.bf16.msra.mxu0 %v10223_v51  ;;  %8879 = vmatmul.mubr.msk.f32.gmra.mrb[68].mxu1 %vm5138_vm9, %v8849_v33  ;;  %v10233_v62 = vpack.c.bf16 %v5890_v37, %v5888_v35  ;;  %v11554_v33 = vunpack.i.l.bf16 %v14416_v7  ;;  %v11560_v58 = vunpack.i.h.bf16 %v14443_v3  ;;  %v11559_v12 = vunpack.i.l.bf16 %v14443_v3  ;;  %v8854_v7 = vld [vmem:[%s15355_s3 + $0x1d8] sm:$0xff] }
 0x521   : > { %10364 = vmatpush1.bf16.msra.mxu1 %v10223_v51  ;;  %10226 = vmatprep.subr.bf16.mxu0 %v10225_v53  ;;  %v11565_v3 = vunpack.i.h.bf16 %v14440_v20 }
 0x522   : > { %10366 = vmatprep.subr.bf16.mxu1 %v10225_v53  ;;  %5418 = vmatprep.mubr.f32.mxu0 %v15410_v50  ;;  %v14458_v36 = vpop.permute.xlu1 %11572  ;;  %v11550_v53 = vunpack.i.h.bf16 %v14375_v19  ;;  %v5894_v54 = vsel %vm5886_vm10, %v11554_v33, %v11555_v57 }
 0x523   : > { %6609 = vmatprep.mubr.f32.mxu1 %v15410_v50  ;;  %8780 = vmatmul.mubr.msk.f32.gmra.mrb[70].mxu0 %vm5138_vm9, %v4927_v32  ;;  %v14461_v22 = vpop.permute.xlu0 %11567  ;;  %v11564_v32 = vunpack.i.l.bf16 %v14440_v20  ;;  %v8785_v20 = vld [vmem:[%s15355_s3 + $0xa0] sm:$0xff]  ;;  %v11575_v55 = vunpack.i.h.bf16 %v14458_v36  ;;  %v11574_v9 = vunpack.i.l.bf16 %v14458_v36 }
 0x524   : > { %10228 = vmatpush1.bf16.msra.mxu0 %v10227_v26  ;;  %8880 = vmatmul.mubr.msk.f32.gmra.mrb[70].mxu1 %vm5138_vm9, %v8850_v6  ;;  %v5893_v6 = vsel %vm5886_vm10, %v11560_v58, %v11554_v33  ;;  %v11570_v19 = vunpack.i.h.bf16 %v14461_v22  ;;  %v11569_v29 = vunpack.i.l.bf16 %v14461_v22  ;;  %v8885_v22 = vld [vmem:[%s15355_s3 + $0x230] sm:$0xff]  ;;  %v5892_v60 = vsel %vm5886_vm10, %v11549_v13, %v11550_v53 }
 0x525   : > { %10368 = vmatpush1.bf16.msra.mxu1 %v10227_v26  ;;  %10230 = vmatprep.subr.bf16.mxu0 %v10229_v45  ;;  %v5891_v26 = vsel %vm5886_vm10, %v11559_v12, %v11549_v13  ;;  %v10237_v36 = vpack.c.bf16 %v5894_v54, %v5892_v60 }
 0x526   : > { %10370 = vmatprep.subr.bf16.mxu1 %v10229_v45  ;;  %5424 = vmatprep.mubr.f32.mxu0 %v15410_v50  ;;  %v14476_v41 = vpop.permute.xlu1 %11582  ;;  %v10239_v61 = vpack.c.bf16 %v5893_v6, %v5891_v26  ;;  %v5898_v35 = vsel %vm5886_vm10, %v11569_v29, %v11570_v19 }
 0x527   : > { %6615 = vmatprep.mubr.f32.mxu1 %v15410_v50  ;;  %8781 = vmatmul.mubr.msk.f32.gmra.mrb[72].mxu0 %vm5138_vm9, %v4928_v52  ;;  %v14479_v34 = vpop.permute.xlu0 %11577  ;;  %v10235_v52 = vpack.c.bf16 %v5889_v23, %v5887_v63 }
 0x528   : > { %10232 = vmatpush1.bf16.msra.mxu0 %v10231_v16  ;;  %8881 = vmatmul.mubr.msk.f32.gmra.mrb[72].mxu1 %vm5138_vm9, %v8851_v42  ;;  %v11580_v45 = vunpack.i.h.bf16 %v14479_v34  ;;  %v11579_v25 = vunpack.i.l.bf16 %v14479_v34  ;;  %v11585_v42 = vunpack.i.h.bf16 %v14476_v41 }
 0x529   : > { %10372 = vmatpush1.bf16.msra.mxu1 %v10231_v16  ;;  %5668 = vmatprep.subr.mxu0 %v5579_v15  ;;  %v11584_v16 = vunpack.i.l.bf16 %v14476_v41  ;;  %v5895_v41 = vsel %vm5886_vm10, %v11574_v9, %v11564_v32 }
 0x52a   : > { %6709 = vmatprep.subr.mxu1 %v5579_v15  ;;  %5430 = vmatprep.mubr.f32.mxu0 %v15410_v50  ;;  %v14501_v4 = vpop.permute.xlu1 %11592  ;;  %v8786_v15 = vld [vmem:[%s15355_s3 + $0xa8] sm:$0xff] }
 0x52b   : > { %6621 = vmatprep.mubr.f32.mxu1 %v15410_v50  ;;  %8782 = vmatmul.mubr.msk.f32.gmra.mrb[74].mxu0 %vm5138_vm9, %v4929_v24  ;;  %v14499_v44 = vpop.permute.xlu0 %11587  ;;  %v5896_v24 = vsel %vm5886_vm10, %v11564_v32, %v11565_v3  ;;  %v5902_v2 = vsel %vm5886_vm10, %v11584_v16, %v11585_v42  ;;  %v11594_v12 = vunpack.i.l.bf16 %v14501_v4 }
 0x52c   : > { %5669 = vmatpush1.msra.mxu0 %v5578_v21  ;;  %8882 = vmatmul.mubr.msk.f32.gmra.mrb[74].mxu1 %vm5138_vm9, %v8852_v49  ;;  %v5897_v49 = vsel %vm5886_vm10, %v11575_v55, %v11569_v29  ;;  %v11590_v37 = vunpack.i.h.bf16 %v14499_v44  ;;  %v10241_v33 = vpack.c.bf16 %v5898_v35, %v5896_v24 }
 0x52d   : > { %6710 = vmatpush1.msra.mxu1 %v5578_v21  ;;  %10234 = vmatprep.subr.bf16.mxu0 %v10233_v62  ;;  %v8886_v21 = vld [vmem:[%s15355_s3 + $0x238] sm:$0xff]  ;;  %v10243_v58 = vpack.c.bf16 %v5897_v49, %v5895_v41 }
 0x52e   : > { %10374 = vmatprep.subr.bf16.mxu1 %v10233_v62  ;;  %5436 = vmatprep.mubr.f32.mxu0 %v15410_v50  ;;  %v14533_v1 = vpop.permute.xlu1 %11602  ;;  %v5900_v62 = vsel %vm5886_vm10, %v11579_v25, %v11580_v45 }
 0x52f   : > { %6627 = vmatprep.mubr.f32.mxu1 %v15410_v50  ;;  %8783 = vmatmul.mubr.msk.f32.gmra.mrb[76].mxu0 %vm5138_vm9, %v4930_v30  ;;  %v14517_v51 = vpop.permute.xlu0 %11597  ;;  %v11589_v30 = vunpack.i.l.bf16 %v14499_v44  ;;  %v8787_v44 = vld [vmem:[%s15355_s3 + $0xb0] sm:$0xff]  ;;  %v10245_v53 = vpack.c.bf16 %v5902_v2, %v5900_v62  ;;  %v11605_v63 = vunpack.i.h.bf16 %v14533_v1  ;;  %v11604_v23 = vunpack.i.l.bf16 %v14533_v1  ;;  %v8788_v1 = vld [vmem:[%s15355_s3 + $0xb8] sm:$0xff] }
 0x530   : > { %8883 = vmatmul.mubr.msk.f32.gmra.mrb[76].mxu1 %vm5138_vm9, %v8853_v31  ;;  %5442 = vmatprep.mubr.f32.mxu0 %v15410_v50  ;;  %v11600_v31 = vunpack.i.h.bf16 %v14517_v51  ;;  %v11599_v10 = vunpack.i.l.bf16 %v14517_v51  ;;  %v11595_v51 = vunpack.i.h.bf16 %v14501_v4 }
 0x531   : > { %6633 = vmatprep.mubr.f32.mxu1 %v15410_v50  ;;  %v5899_v13 = vsel %vm5886_vm10, %v11589_v30, %v11579_v25  ;;  %v5903_v9 = vsel %vm5886_vm10, %v11604_v23, %v11594_v12  ;;  %v8790_v30 = vld [vmem:[%s15355_s3 + $0xc8] sm:$0xff]  ;;  %v8792_v23 = vld [vmem:[%s15355_s3 + $0xd8] sm:$0xff] }
 0x532   : > { %v14563_v34 = vpop.permute.xlu1 %11612  ;;  %v5906_v4 = vsel %vm5886_vm10, %v11599_v10, %v11600_v31  ;;  %v5904_v55 = vsel %vm5886_vm10, %v11594_v12, %v11595_v51  ;;  %v5905_v45 = vsel %vm5886_vm10, %v11605_v63, %v11599_v10  ;;  %v8890_v10 = vld [vmem:[%s15355_s3 + $0x258] sm:$0xff]  ;;  %v8791_v12 = vld [vmem:[%s15355_s3 + $0xd0] sm:$0xff] }
 0x533   : > { %8784 = vmatmul.mubr.msk.f32.gmra.mrb[78].mxu0 %vm5138_vm9, %v4931_v5  ;;  %v14553_v46 = vpop.permute.xlu0 %11607  ;;  %v5901_v5 = vsel %vm5886_vm10, %v11590_v37, %v11584_v16  ;;  %v11615_v32 = vunpack.i.h.bf16 %v14563_v34  ;;  %v11614_v54 = vunpack.i.l.bf16 %v14563_v34  ;;  %v10249_v25 = vpack.c.bf16 %v5906_v4, %v5904_v55  ;;  %v8889_v34 = vld [vmem:[%s15355_s3 + $0x250] sm:$0xff]  ;;  %v8914_v55 = vld [vmem:[%s15355_s3 + $0x2c8] sm:$0xff] }
 0x534   : > { %8884 = vmatmul.mubr.msk.f32.gmra.mrb[78].mxu1 %vm5138_vm9, %v8854_v7  ;;  %5704 = vmatprep.mubr.f32.mxu0 %v15410_v50  ;;  %v8887_v7 = vld [vmem:[%s15355_s3 + $0x240] sm:$0xff]  ;;  %v11610_v6 = vunpack.i.h.bf16 %v14553_v46  ;;  %v11609_v26 = vunpack.i.l.bf16 %v14553_v46  ;;  %v10247_v19 = vpack.c.bf16 %v5901_v5, %v5899_v13 }
 0x535   : > { %6745 = vmatprep.mubr.f32.mxu1 %v15410_v50  ;;  %v5910_v42 = vsel %vm5886_vm10, %v11614_v54, %v11615_v32  ;;  %v8793_v32 = vld [vmem:[%s15355_s3 + $0xe0] sm:$0xff] }
 0x536   : > { %v14600_v3 = vpop.permute.xlu1 %11622 }
 0x537   : > { %8795 = vmatmul.mubr.msk.f32.vlgmr.msra.gmra.mrb[60].mxu0 %vm5138_vm9, %v8785_v20  ;;  %v14583_v57 = vpop.permute.xlu0 %11617  ;;  %v8888_v20 = vld [vmem:[%s15355_s3 + $0x248] sm:$0xff]  ;;  %v11625_v24 = vunpack.i.h.bf16 %v14600_v3  ;;  %v11624_v35 = vunpack.i.l.bf16 %v14600_v3 }
 0x538   : > { %10236 = vmatpush1.bf16.msra.mxu0 %v10235_v52  ;;  %8895 = vmatmul.mubr.msk.f32.vlgmr.msra.gmra.mrb[60].mxu1 %vm5138_vm9, %v8885_v22  ;;  %v11620_v46 = vunpack.i.h.bf16 %v14583_v57  ;;  %v11619_v22 = vunpack.i.l.bf16 %v14583_v57  ;;  %v8892_v3 = vld [vmem:[%s15355_s3 + $0x268] sm:$0xff] }
 0x539   : > { %10376 = vmatpush1.bf16.msra.mxu1 %v10235_v52  ;;  %10238 = vmatprep.subr.bf16.mxu0 %v10237_v36  ;;  %v5908_v52 = vsel %vm5886_vm10, %v11609_v26, %v11610_v6  ;;  %v8794_v6 = vld [vmem:[%s15355_s3 + $0xe8] sm:$0xff] }
 0x53a   : > { %10378 = vmatprep.subr.bf16.mxu1 %v10237_v36  ;;  %5710 = vmatprep.mubr.f32.mxu0 %v15410_v50  ;;  %v11633_v16 = vpop.permute.xlu1 %11632  ;;  %v10253_v41 = vpack.c.bf16 %v5910_v42, %v5908_v52  ;;  %v5909_v49 = vsel %vm5886_vm10, %v11620_v46, %v11614_v54  ;;  %v5907_v37 = vsel %vm5886_vm10, %v11619_v22, %v11609_v26  ;;  %v8893_v54 = vld [vmem:[%s15355_s3 + $0x270] sm:$0xff]  ;;  %v8926_v46 = vld [vmem:[%s15355_s3 + $0x2d8] sm:$0xff]  ;;  %v8927_v52 = vld [vmem:[%s15355_s3 + $0x2e0] sm:$0xff] }
 0x53b   : > { %6751 = vmatprep.mubr.f32.mxu1 %v15410_v50  ;;  %8796 = vmatmul.mubr.msk.f32.gmra.mrb[62].mxu0 %vm5138_vm9, %v8786_v15  ;;  %v11628_v29 = vpop.permute.xlu0 %11627  ;;  %v10251_v15 = vpack.c.bf16 %v5905_v45, %v5903_v9  ;;  %v11634_v62 = vunpack.i.l.bf16 %v11633_v16  ;;  %v10255_v2 = vpack.c.bf16 %v5909_v49, %v5907_v37  ;;  %v8805_v26 = vld [vmem:[%s15355_s3 + $0xf0] sm:$0xff]  ;;  %v8825_v9 = vld [vmem:[%s15355_s3 + $0x140] sm:$0xff]  ;;  %v8828_v42 = vld [vmem:[%s15355_s3 + $0x158] sm:$0xff] }
 0x53c   : > { %10240 = vmatpush1.bf16.msra.mxu0 %v10239_v61  ;;  %8896 = vmatmul.mubr.msk.f32.gmra.mrb[62].mxu1 %vm5138_vm9, %v8886_v21  ;;  %v11630_v60 = vunpack.i.h.bf16 %v11628_v29  ;;  %v11629_v36 = vunpack.i.l.bf16 %v11628_v29  ;;  %v11635_v21 = vunpack.i.h.bf16 %v11633_v16  ;;  %v8906_v29 = vld [vmem:[%s15355_s3 + $0x288] sm:$0xff]  ;;  %v8925_v45 = vld [vmem:[%s15355_s3 + $0x2d0] sm:$0xff]  ;;  %v8833_v49 = vld [vmem:[%s15355_s3 + $0x180] sm:$0xff] }
 0x53d   : > { %10380 = vmatpush1.bf16.msra.mxu1 %v10239_v61  ;;  %10242 = vmatprep.subr.bf16.mxu0 %v10241_v33  ;;  %v8789_v61 = vld [vmem:[%s15355_s3 + $0xc0] sm:$0xff]  ;;  %v8827_v22 = vld [vmem:[%s15355_s3 + $0x150] sm:$0xff]  ;;  %v8928_v16 = vld [vmem:[%s15355_s3 + $0x2e8] sm:$0xff] }
 0x53e   : > { %10382 = vmatprep.subr.bf16.mxu1 %v10241_v33  ;;  %5716 = vmatprep.mubr.f32.mxu0 %v15410_v50  ;;  %v5914_v31 = vsel %vm5886_vm10, %v11629_v36, %v11630_v60  ;;  %v5912_v33 = vsel %vm5886_vm10, %v11624_v35, %v11625_v24  ;;  %v5885_v5 = vpop.permute.xlu1 %5884  ;;  %v8829_v60 = vld [vmem:[%s15355_s3 + $0x160] sm:$0xff]  ;;  %v8933_v37 = vld [vmem:[%s15355_s3 + $0x310] sm:$0xff] }
 0x53f   : > { %6757 = vmatprep.mubr.f32.mxu1 %v15410_v50  ;;  %8797 = vmatmul.mubr.msk.f32.gmra.mrb[64].mxu0 %vm5138_vm9, %v8787_v44  ;;  %v5883_v57 = vpop.permute.xlu0 %5882  ;;  %v5913_v44 = vsel %vm5886_vm10, %v11635_v21, %v11629_v36  ;;  %v10257_v51 = vpack.c.bf16 %v5914_v31, %v5912_v33  ;;  %v8929_v36 = vld [vmem:[%s15355_s3 + $0x2f0] sm:$0xff]  ;;  %v8931_v24 = vld [vmem:[%s15355_s3 + $0x300] sm:$0xff]  ;;  %v8834_v21 = vld [vmem:[%s15355_s3 + $0x188] sm:$0xff] }
 0x540   : > { %10244 = vmatpush1.bf16.msra.mxu0 %v10243_v58  ;;  %8897 = vmatmul.mubr.msk.f32.gmra.mrb[64].mxu1 %vm5138_vm9, %v8887_v7  ;;  %v8891_v7 = vld [vmem:[%s15355_s3 + $0x260] sm:$0xff]  ;;  %v5916_v63 = vsel %vm5886_vm10, %v5883_v57, %v5885_v5 }
 0x541   : > { %10384 = vmatpush1.bf16.msra.mxu1 %v10243_v58  ;;  %10246 = vmatprep.subr.bf16.mxu0 %v10245_v53  ;;  %v5911_v58 = vsel %vm5886_vm10, %v11634_v62, %v11624_v35  ;;  %v8832_v35 = vld [vmem:[%s15355_s3 + $0x178] sm:$0xff] }
 0x542   : > { %10386 = vmatprep.subr.bf16.mxu1 %v10245_v53  ;;  %5722 = vmatprep.mubr.f32.mxu0 %v15410_v50  ;;  %v10259_v53 = vpack.c.bf16 %v5913_v44, %v5911_v58  ;;  %v8934_v62 = vld [vmem:[%s15355_s3 + $0x318] sm:$0xff] }
 0x543   : > { %6763 = vmatprep.mubr.f32.mxu1 %v15410_v50  ;;  %8798 = vmatmul.mubr.msk.f32.gmra.mrb[66].mxu0 %vm5138_vm9, %v8788_v1  ;;  %v5881_v13 = vpop.permute.xlu0 %5880  ;;  %v8905_v1 = vld [vmem:[%s15355_s3 + $0x280] sm:$0xff] }
 0x544   : > { %10248 = vmatpush1.bf16.msra.mxu0 %v10247_v19  ;;  %8898 = vmatmul.mubr.msk.f32.gmra.mrb[66].mxu1 %vm5138_vm9, %v8888_v20  ;;  %v5915_v4 = vsel %vm5886_vm10, %v5881_v13, %v5883_v57  ;;  %v15411_v20 = vmov 0.0|0.0  }
 0x545   : > { %10388 = vmatpush1.bf16.msra.mxu1 %v10247_v19  ;;  %10250 = vmatprep.subr.bf16.mxu0 %v10249_v25  ;;  %v8806_v19 = vld [vmem:[%s15355_s3 + $0xf8] sm:$0xff] }
 0x546   : > { %10390 = vmatprep.subr.bf16.mxu1 %v10249_v25  ;;  %5728 = vmatprep.mubr.f32.mxu0 %v15410_v50  ;;  %v8826_v25 = vld [vmem:[%s15355_s3 + $0x148] sm:$0xff] }
 0x547   : > { %6769 = vmatprep.mubr.f32.mxu1 %v15410_v50  ;;  %8799 = vmatmul.mubr.msk.f32.gmra.mrb[68].mxu0 %vm5138_vm9, %v8789_v61  ;;  %v8830_v61 = vld [vmem:[%s15355_s3 + $0x168] sm:$0xff] }
 0x548   : > { %10252 = vmatpush1.bf16.msra.mxu0 %v10251_v15  ;;  %8899 = vmatmul.mubr.msk.f32.gmra.mrb[68].mxu1 %vm5138_vm9, %v8889_v34  ;;  %v8930_v34 = vld [vmem:[%s15355_s3 + $0x2f8] sm:$0xff] }
 0x549   : > { %10392 = vmatpush1.bf16.msra.mxu1 %v10251_v15  ;;  %10254 = vmatprep.subr.bf16.mxu0 %v10253_v41  ;;  %v8831_v15 = vld [vmem:[%s15355_s3 + $0x170] sm:$0xff] }
 0x54a   : > { %10394 = vmatprep.subr.bf16.mxu1 %v10253_v41  ;;  %5734 = vmatprep.mubr.f32.mxu0 %v15410_v50  ;;  %v8932_v41 = vld [vmem:[%s15355_s3 + $0x308] sm:$0xff] }
 0x54b   : > { %6775 = vmatprep.mubr.f32.mxu1 %v15410_v50  ;;  %8800 = vmatmul.mubr.msk.f32.gmra.mrb[70].mxu0 %vm5138_vm9, %v8790_v30 }
 0x54c   : > { %10256 = vmatpush1.bf16.msra.mxu0 %v10255_v2  ;;  %8900 = vmatmul.mubr.msk.f32.gmra.mrb[70].mxu1 %vm5138_vm9, %v8890_v10 }
 0x54d   : > { %10396 = vmatpush1.bf16.msra.mxu1 %v10255_v2  ;;  %10258 = vmatprep.subr.bf16.mxu0 %v10257_v51 }
 0x54e   : > { %10398 = vmatprep.subr.bf16.mxu1 %v10257_v51  ;;  %5740 = vmatprep.mubr.f32.mxu0 %v15410_v50 }
 0x54f   : > { %6781 = vmatprep.mubr.f32.mxu1 %v15410_v50  ;;  %8801 = vmatmul.mubr.msk.f32.gmra.mrb[72].mxu0 %vm5138_vm9, %v8791_v12 }
 0x550   : > { %10260 = vmatpush1.bf16.msra.mxu0 %v10259_v53  ;;  %8901 = vmatmul.mubr.msk.f32.gmra.mrb[72].mxu1 %vm5138_vm9, %v8891_v7 }
 0x551   : > { %10400 = vmatpush1.bf16.msra.mxu1 %v10259_v53  ;;  %6005 = vmatprep.subr.mxu0 %v5916_v63 }
 0x552   : > { %6895 = vmatprep.subr.mxu1 %v5916_v63  ;;  %5746 = vmatprep.mubr.f32.mxu0 %v15410_v50 }
 0x553   : > { %6787 = vmatprep.mubr.f32.mxu1 %v15410_v50  ;;  %8802 = vmatmul.mubr.msk.f32.gmra.mrb[74].mxu0 %vm5138_vm9, %v8792_v23 }
 0x554   : > { %6006 = vmatpush1.msra.mxu0 %v5915_v4  ;;  %8902 = vmatmul.mubr.msk.f32.gmra.mrb[74].mxu1 %vm5138_vm9, %v8892_v3 }
 0x555   : > { %6896 = vmatpush1.msra.mxu1 %v5915_v4  ;;  %10262 = vmatprep.subr.bf16.mxu0 %v13745_v48 }
 0x556   : > { %10402 = vmatprep.subr.bf16.mxu1 %v13745_v48  ;;  %5752 = vmatprep.mubr.f32.mxu0 %v15410_v50  ;;  %v8894_v48 = vld [vmem:[%s15355_s3 + $0x278] sm:$0xff] }
 0x557   : > { %6793 = vmatprep.mubr.f32.mxu1 %v15410_v50  ;;  %8803 = vmatmul.mubr.msk.f32.gmra.mrb[76].mxu0 %vm5138_vm9, %v8793_v32 }
 0x558   : > { %8903 = vmatmul.mubr.msk.f32.gmra.mrb[76].mxu1 %vm5138_vm9, %v8893_v54  ;;  %5758 = vmatprep.mubr.f32.mxu0 %v15410_v50 }
 0x559   : > { %6799 = vmatprep.mubr.f32.mxu1 %v15410_v50 }
 0x55b   : > { %8804 = vmatmul.mubr.msk.f32.gmra.mrb[78].mxu0 %vm5138_vm9, %v8794_v6 }
 0x55c   : > { %8904 = vmatmul.mubr.msk.f32.gmra.mrb[78].mxu1 %vm5138_vm9, %v8894_v48  ;;  %6041 = vmatprep.mubr.f32.mxu0 %v15410_v50 }
 0x55d   : > { %6931 = vmatprep.mubr.f32.mxu1 %v15410_v50 }
 0x55f   : > { %8815 = vmatmul.mubr.msk.f32.vlgmr.msra.gmra.mrb[60].mxu0 %vm5138_vm9, %v8805_v26 }
 0x560   : > { %10264 = vmatpush1.bf16.msra.mxu0 %v13767_v0  ;;  %8915 = vmatmul.mubr.msk.f32.vlgmr.msra.gmra.mrb[60].mxu1 %vm5138_vm9, %v8905_v1 }
 0x561   : > { %10404 = vmatpush1.bf16.msra.mxu1 %v13767_v0  ;;  %10266 = vmatprep.subr.bf16.mxu0 %v13777_v40  ;;  %v8807_v0 = vld [vmem:[%s15355_s3 + $0x100] sm:$0xff] }
 0x562   : > { %10406 = vmatprep.subr.bf16.mxu1 %v13777_v40  ;;  %6047 = vmatprep.mubr.f32.mxu0 %v15410_v50  ;;  %v8907_v40 = vld [vmem:[%s15355_s3 + $0x290] sm:$0xff] }
 0x563   : > { %6937 = vmatprep.mubr.f32.mxu1 %v15410_v50  ;;  %8816 = vmatmul.mubr.msk.f32.gmra.mrb[62].mxu0 %vm5138_vm9, %v8806_v19 }
 0x564   : > { %10268 = vmatpush1.bf16.msra.mxu0 %v13801_v18  ;;  %8916 = vmatmul.mubr.msk.f32.gmra.mrb[62].mxu1 %vm5138_vm9, %v8906_v29 }
 0x565   : > { %10408 = vmatpush1.bf16.msra.mxu1 %v13801_v18  ;;  %10270 = vmatprep.subr.bf16.mxu0 %v13811_v27  ;;  %v8808_v18 = vld [vmem:[%s15355_s3 + $0x108] sm:$0xff] }
 0x566   : > { %10410 = vmatprep.subr.bf16.mxu1 %v13811_v27  ;;  %6053 = vmatprep.mubr.f32.mxu0 %v15410_v50  ;;  %v8908_v27 = vld [vmem:[%s15355_s3 + $0x298] sm:$0xff] }
 0x567   : > { %6943 = vmatprep.mubr.f32.mxu1 %v15410_v50  ;;  %8817 = vmatmul.mubr.msk.f32.gmra.mrb[64].mxu0 %vm5138_vm9, %v8807_v0 }
 0x568   : > { %10272 = vmatpush1.bf16.msra.mxu0 %v13835_v17  ;;  %8917 = vmatmul.mubr.msk.f32.gmra.mrb[64].mxu1 %vm5138_vm9, %v8907_v40 }
 0x569   : > { %10412 = vmatpush1.bf16.msra.mxu1 %v13835_v17  ;;  %10274 = vmatprep.subr.bf16.mxu0 %v13845_v38  ;;  %v8809_v17 = vld [vmem:[%s15355_s3 + $0x110] sm:$0xff] }
 0x56a   : > { %10414 = vmatprep.subr.bf16.mxu1 %v13845_v38  ;;  %6059 = vmatprep.mubr.f32.mxu0 %v15410_v50  ;;  %v8909_v38 = vld [vmem:[%s15355_s3 + $0x2a0] sm:$0xff] }
 0x56b   : > { %6949 = vmatprep.mubr.f32.mxu1 %v15410_v50  ;;  %8818 = vmatmul.mubr.msk.f32.gmra.mrb[66].mxu0 %vm5138_vm9, %v8808_v18 }
 0x56c   : > { %10276 = vmatpush1.bf16.msra.mxu0 %v13869_v59  ;;  %8918 = vmatmul.mubr.msk.f32.gmra.mrb[66].mxu1 %vm5138_vm9, %v8908_v27 }
 0x56d   : > { %10416 = vmatpush1.bf16.msra.mxu1 %v13869_v59  ;;  %10278 = vmatprep.subr.bf16.mxu0 %v13879_v14  ;;  %v8810_v59 = vld [vmem:[%s15355_s3 + $0x118] sm:$0xff] }
 0x56e   : > { %10418 = vmatprep.subr.bf16.mxu1 %v13879_v14  ;;  %6065 = vmatprep.mubr.f32.mxu0 %v15410_v50  ;;  %v8910_v14 = vld [vmem:[%s15355_s3 + $0x2a8] sm:$0xff] }
 0x56f   : > { %6955 = vmatprep.mubr.f32.mxu1 %v15410_v50  ;;  %8819 = vmatmul.mubr.msk.f32.gmra.mrb[68].mxu0 %vm5138_vm9, %v8809_v17 }
 0x570   : > { %10280 = vmatpush1.bf16.msra.mxu0 %v13903_v43  ;;  %8919 = vmatmul.mubr.msk.f32.gmra.mrb[68].mxu1 %vm5138_vm9, %v8909_v38 }
 0x571   : > { %10420 = vmatpush1.bf16.msra.mxu1 %v13903_v43  ;;  %10282 = vmatprep.subr.bf16.mxu0 %v13913_v56  ;;  %v8811_v43 = vld [vmem:[%s15355_s3 + $0x120] sm:$0xff] }
 0x572   : > { %10422 = vmatprep.subr.bf16.mxu1 %v13913_v56  ;;  %6071 = vmatprep.mubr.f32.mxu0 %v15410_v50  ;;  %v8911_v56 = vld [vmem:[%s15355_s3 + $0x2b0] sm:$0xff] }
 0x573   : > { %6961 = vmatprep.mubr.f32.mxu1 %v15410_v50  ;;  %8820 = vmatmul.mubr.msk.f32.gmra.mrb[70].mxu0 %vm5138_vm9, %v8810_v59 }
 0x574   : > { %10284 = vmatpush1.bf16.msra.mxu0 %v13937_v8  ;;  %8920 = vmatmul.mubr.msk.f32.gmra.mrb[70].mxu1 %vm5138_vm9, %v8910_v14 }
 0x575   : > { %10424 = vmatpush1.bf16.msra.mxu1 %v13937_v8  ;;  %10286 = vmatprep.subr.bf16.mxu0 %v13947_v28  ;;  %v8812_v8 = vld [vmem:[%s15355_s3 + $0x128] sm:$0xff] }
 0x576   : > { %10426 = vmatprep.subr.bf16.mxu1 %v13947_v28  ;;  %6077 = vmatprep.mubr.f32.mxu0 %v15410_v50  ;;  %v8912_v28 = vld [vmem:[%s15355_s3 + $0x2b8] sm:$0xff] }
 0x577   : > { %6967 = vmatprep.mubr.f32.mxu1 %v15410_v50  ;;  %8821 = vmatmul.mubr.msk.f32.gmra.mrb[72].mxu0 %vm5138_vm9, %v8811_v43 }
 0x578   : > { %10288 = vmatpush1.bf16.msra.mxu0 %v13957_v11  ;;  %8921 = vmatmul.mubr.msk.f32.gmra.mrb[72].mxu1 %vm5138_vm9, %v8911_v56 }
 0x579   : > { %10428 = vmatpush1.bf16.msra.mxu1 %v13957_v11  ;;  %6191 = vmatprep.subr.mxu0 %v13970_v39  ;;  %v8813_v11 = vld [vmem:[%s15355_s3 + $0x130] sm:$0xff] }
 0x57a   : > { %7081 = vmatprep.subr.mxu1 %v13970_v39  ;;  %6083 = vmatprep.mubr.f32.mxu0 %v15410_v50  ;;  %v8913_v39 = vld [vmem:[%s15355_s3 + $0x2c0] sm:$0xff] }
 0x57b   : > { %6973 = vmatprep.mubr.f32.mxu1 %v15410_v50  ;;  %8822 = vmatmul.mubr.msk.f32.gmra.mrb[74].mxu0 %vm5138_vm9, %v8812_v8 }
 0x57c   : > { %6192 = vmatpush1.msra.mxu0 %v13972_v47  ;;  %8922 = vmatmul.mubr.msk.f32.gmra.mrb[74].mxu1 %vm5138_vm9, %v8912_v28 }
 0x57d   : > { %7082 = vmatpush1.msra.mxu1 %v13972_v47  ;;  %6089 = vmatprep.mubr.f32.mxu0 %v15410_v50  ;;  %v8814_v47 = vld [vmem:[%s15355_s3 + $0x138] sm:$0xff] }
 0x57e   : > { %6979 = vmatprep.mubr.f32.mxu1 %v15410_v50  ;;  %10444 = vmatprep.subr.bf16.mxu1 %v15411_v20 }
 0x57f   : > { %8823 = vmatmul.mubr.msk.f32.gmra.mrb[76].mxu0 %vm5138_vm9, %v8813_v11  ;;  %10429 = vmatprep.subr.bf16.mxu0 %v15411_v20 }
 0x580   : > { %8923 = vmatmul.mubr.msk.f32.gmra.mrb[76].mxu1 %vm5138_vm9, %v8913_v39  ;;  %6095 = vmatprep.mubr.f32.mxu0 %v15410_v50 }
 0x581   : > { %6985 = vmatprep.mubr.f32.mxu1 %v15410_v50 }
 0x583   : > { %8824 = vmatmul.mubr.msk.f32.gmra.mrb[78].mxu0 %vm5138_vm9, %v8814_v47 }
 0x584   : > { %8924 = vmatmul.mubr.msk.f32.gmra.mrb[78].mxu1 %vm5138_vm9, %v8914_v55  ;;  %6227 = vmatprep.mubr.f32.mxu0 %v15410_v50 }
 0x585   : > { %7117 = vmatprep.mubr.f32.mxu1 %v15410_v50 }
 0x587   : > { %8835 = vmatmul.mubr.msk.f32.vlgmr.msra.gmra.mrb[60].mxu0 %vm5138_vm9, %v8825_v9 }
 0x588   : > { %8935 = vmatmul.mubr.msk.f32.vlgmr.msra.gmra.mrb[60].mxu1 %vm5138_vm9, %v8925_v45  ;;  %6233 = vmatprep.mubr.f32.mxu0 %v15410_v50 }
 0x589   : > { %7123 = vmatprep.mubr.f32.mxu1 %v15410_v50 }
 0x58b   : > { %8836 = vmatmul.mubr.msk.f32.gmra.mrb[62].mxu0 %vm5138_vm9, %v8826_v25 }
 0x58c   : > { %8936 = vmatmul.mubr.msk.f32.gmra.mrb[62].mxu1 %vm5138_vm9, %v8926_v46  ;;  %6239 = vmatprep.mubr.f32.mxu0 %v15410_v50 }
 0x58d   : > { %7129 = vmatprep.mubr.f32.mxu1 %v15410_v50 }
 0x58f   : > { %8837 = vmatmul.mubr.msk.f32.gmra.mrb[64].mxu0 %vm5138_vm9, %v8827_v22 }
 0x590   : > { %8937 = vmatmul.mubr.msk.f32.gmra.mrb[64].mxu1 %vm5138_vm9, %v8927_v52  ;;  %6245 = vmatprep.mubr.f32.mxu0 %v15410_v50 }
 0x591   : > { %7135 = vmatprep.mubr.f32.mxu1 %v15410_v50 }
 0x593   : > { %8838 = vmatmul.mubr.msk.f32.gmra.mrb[66].mxu0 %vm5138_vm9, %v8828_v42 }
 0x594   : > { %8938 = vmatmul.mubr.msk.f32.gmra.mrb[66].mxu1 %vm5138_vm9, %v8928_v16  ;;  %6251 = vmatprep.mubr.f32.mxu0 %v15410_v50 }
 0x595   : > { %7141 = vmatprep.mubr.f32.mxu1 %v15410_v50 }
 0x597   : > { %8839 = vmatmul.mubr.msk.f32.gmra.mrb[68].mxu0 %vm5138_vm9, %v8829_v60 }
 0x598   : > { %8939 = vmatmul.mubr.msk.f32.gmra.mrb[68].mxu1 %vm5138_vm9, %v8929_v36  ;;  %6257 = vmatprep.mubr.f32.mxu0 %v15410_v50 }
 0x599   : > { %7147 = vmatprep.mubr.f32.mxu1 %v15410_v50 }
 0x59b   : > { %8840 = vmatmul.mubr.msk.f32.gmra.mrb[70].mxu0 %vm5138_vm9, %v8830_v61 }
 0x59c   : > { %8940 = vmatmul.mubr.msk.f32.gmra.mrb[70].mxu1 %vm5138_vm9, %v8930_v34  ;;  %6263 = vmatprep.mubr.f32.mxu0 %v15410_v50 }
 0x59d   : > { %7153 = vmatprep.mubr.f32.mxu1 %v15410_v50 }
 0x59f   : > { %8841 = vmatmul.mubr.msk.f32.gmra.mrb[72].mxu0 %vm5138_vm9, %v8831_v15 }
 0x5a0   : > { %8941 = vmatmul.mubr.msk.f32.gmra.mrb[72].mxu1 %vm5138_vm9, %v8931_v24  ;;  %6269 = vmatprep.mubr.f32.mxu0 %v15410_v50 }
 0x5a1   : > { %7159 = vmatprep.mubr.f32.mxu1 %v15410_v50 }
 0x5a3   : > { %8842 = vmatmul.mubr.msk.f32.gmra.mrb[74].mxu0 %vm5138_vm9, %v8832_v35 }
 0x5a4   : > { %8942 = vmatmul.mubr.msk.f32.gmra.mrb[74].mxu1 %vm5138_vm9, %v8932_v41  ;;  %6275 = vmatprep.mubr.f32.mxu0 %v15410_v50 }
 0x5a5   : > { %7165 = vmatprep.mubr.f32.mxu1 %v15410_v50 }
 0x5a7   : > { %8843 = vmatmul.mubr.msk.f32.gmra.mrb[76].mxu0 %vm5138_vm9, %v8833_v49 }
 0x5a8   : > { %8943 = vmatmul.mubr.msk.f32.gmra.mrb[76].mxu1 %vm5138_vm9, %v8933_v37  ;;  %6281 = vmatprep.mubr.f32.mxu0 %v15410_v50 }
 0x5a9   : > { %7171 = vmatprep.mubr.f32.mxu1 %v15410_v50 }
 0x5ab   : > { %8844 = vmatmul.mubr.msk.f32.gmra.mrb[78].mxu0 %vm5138_vm9, %v8834_v21  ;;  %v7341_v21 = vpop.permute.xlu1 %7340 }
 0x5ac   : > { %8944 = vmatmul.mubr.msk.f32.gmra.mrb[78].mxu1 %vm5138_vm9, %v8934_v62  ;;  %9818 = vmatprep.mubr.msk.f32.mxu0 %vm11703_vm0, %v15410_v50  ;;  %v7346_v62 = vpop.permute.xlu0 %7345 }
 0x5ad   : > { %9859 = vmatprep.mubr.msk.f32.mxu1 %vm11703_vm0, %v15410_v50 }
 0x65a   : > { %v6229_v30 = vpop.f32.mrb[60].mxu0 }
 0x65b   : > { %v7119_v31 = vpop.f32.mrb[60].mxu1  ;;  %v6231_v10 = vpop.f32.mrb[61].mxu0 }
 0x65c   : > { %v14936_v2 = vmax.f32 %v6229_v30, %v7119_v31  ;;  %v7121_v57 = vpop.f32.mrb[61].mxu1  ;;  %v7351_v30 = vpop.permute.xlu1 %7350 }
 0x65d   : > { %v14938_v33 = vmax.f32 %v6231_v10, %v7121_v57  ;;  %v7356_v31 = vpop.permute.xlu0 %7355 }
 0x65e   : > { %7238 = vrot.lane.b32.xlu1 %v14936_v2, %s11704_s16  ;;  %v6235_v58 = vpop.f32.mrb[62].mxu0 }
 0x65f   : > { %v7125_v44 = vpop.f32.mrb[62].mxu1  ;;  %7240 = vrot.lane.b32.xlu0 %v14938_v33, %s11704_s16  ;;  %v6237_v51 = vpop.f32.mrb[63].mxu0 }
 0x660   : > { %v14944_v12 = vmax.f32 %v6235_v58, %v7125_v44  ;;  %v7127_v5 = vpop.f32.mrb[63].mxu1  ;;  %v7361_v10 = vpop.permute.xlu1 %7360 }
 0x661   : > { %v14946_v7 = vmax.f32 %v6237_v51, %v7127_v5  ;;  %v15016_v57 = vpop.permute.xlu0 %7365 }
 0x662   : > { %7242 = vrot.lane.b32.xlu1 %v14944_v12, %s11704_s16  ;;  %v6241_v53 = vpop.f32.mrb[64].mxu0 }
 0x663   : > { %v7131_v13 = vpop.f32.mrb[64].mxu1  ;;  %7244 = vrot.lane.b32.xlu0 %v14946_v7, %s11704_s16  ;;  %v6243_v63 = vpop.f32.mrb[65].mxu0 }
 0x664   : > { %v14952_v23 = vmax.f32 %v6241_v53, %v7131_v13  ;;  %v7133_v3 = vpop.f32.mrb[65].mxu1  ;;  %v15018_v58 = vpop.permute.xlu1 %7370 }
 0x665   : > { %v14954_v4 = vmax.f32 %v6243_v63, %v7133_v3  ;;  %v15020_v44 = vpop.permute.xlu0 %7375 }
 0x666   : > { %7246 = vrot.lane.b32.xlu1 %v14952_v23, %s11704_s16  ;;  %v6247_v32 = vpop.f32.mrb[66].mxu0 }
 0x667   : > { %v7137_v54 = vpop.f32.mrb[66].mxu1  ;;  %7248 = vrot.lane.b32.xlu0 %v14954_v4, %s11704_s16  ;;  %v6249_v6 = vpop.f32.mrb[67].mxu0 }
 0x668   : > { %v14960_v48 = vmax.f32 %v6247_v32, %v7137_v54  ;;  %v7139_v26 = vpop.f32.mrb[67].mxu1  ;;  %v15022_v51 = vpop.permute.xlu1 %7380 }
 0x669   : > { %v14962_v1 = vmax.f32 %v6249_v6, %v7139_v26  ;;  %v15024_v5 = vpop.permute.xlu0 %7385 }
 0x66a   : > { %7250 = vrot.lane.b32.xlu1 %v14960_v48, %s11704_s16  ;;  %v6253_v19 = vpop.f32.mrb[68].mxu0 }
 0x66b   : > { %v7143_v29 = vpop.f32.mrb[68].mxu1  ;;  %7252 = vrot.lane.b32.xlu0 %v14962_v1, %s11704_s16  ;;  %v6255_v0 = vpop.f32.mrb[69].mxu0 }
 0x66c   : > { %v14968_v40 = vmax.f32 %v6253_v19, %v7143_v29  ;;  %v7145_v18 = vpop.f32.mrb[69].mxu1 }
 0x66d   : > { %v14970_v27 = vmax.f32 %v6255_v0, %v7145_v18 }
 0x66e   : > { %7254 = vrot.lane.b32.xlu1 %v14968_v40, %s11704_s16  ;;  %v6259_v17 = vpop.f32.mrb[70].mxu0 }
 0x66f   : > { %v7149_v38 = vpop.f32.mrb[70].mxu1  ;;  %7256 = vrot.lane.b32.xlu0 %v14970_v27, %s11704_s16  ;;  %v6261_v59 = vpop.f32.mrb[71].mxu0 }
 0x670   : > { %v14976_v14 = vmax.f32 %v6259_v17, %v7149_v38  ;;  %v7151_v43 = vpop.f32.mrb[71].mxu1 }
 0x671   : > { %v14978_v56 = vmax.f32 %v6261_v59, %v7151_v43 }
 0x672   : > { %7258 = vrot.lane.b32.xlu1 %v14976_v14, %s11704_s16  ;;  %v6265_v8 = vpop.f32.mrb[72].mxu0 }
 0x673   : > { %v7155_v28 = vpop.f32.mrb[72].mxu1  ;;  %7260 = vrot.lane.b32.xlu0 %v14978_v56, %s11704_s16  ;;  %v6267_v11 = vpop.f32.mrb[73].mxu0 }
 0x674   : > { %v14984_v39 = vmax.f32 %v6265_v8, %v7155_v28  ;;  %v7157_v47 = vpop.f32.mrb[73].mxu1 }
 0x675   : > { %v14986_v55 = vmax.f32 %v6267_v11, %v7157_v47 }
 0x676   : > { %7262 = vrot.lane.b32.xlu1 %v14984_v39, %s11704_s16  ;;  %v6271_v9 = vpop.f32.mrb[74].mxu0 }
 0x677   : > { %v7161_v45 = vpop.f32.mrb[74].mxu1  ;;  %7264 = vrot.lane.b32.xlu0 %v14986_v55, %s11704_s16  ;;  %v6273_v25 = vpop.f32.mrb[75].mxu0 }
 0x678   : > { %v14992_v46 = vmax.f32 %v6271_v9, %v7161_v45  ;;  %v7163_v22 = vpop.f32.mrb[75].mxu1 }
 0x679   : > { %v14994_v52 = vmax.f32 %v6273_v25, %v7163_v22 }
 0x67a   : > { %7266 = vrot.lane.b32.xlu1 %v14992_v46, %s11704_s16  ;;  %v6277_v42 = vpop.f32.mrb[76].mxu0 }
 0x67b   : > { %v7167_v16 = vpop.f32.mrb[76].mxu1  ;;  %7268 = vrot.lane.b32.xlu0 %v14994_v52, %s11704_s16  ;;  %v6279_v60 = vpop.f32.mrb[77].mxu0 }
 0x67c   : > { %v15000_v36 = vmax.f32 %v6277_v42, %v7167_v16  ;;  %v7169_v61 = vpop.f32.mrb[77].mxu1 }
 0x67d   : > { %v15002_v34 = vmax.f32 %v6279_v60, %v7169_v61 }
 0x67e   : > { %7270 = vrot.lane.b32.xlu1 %v15000_v36, %s11704_s16  ;;  %v6283_v15 = vpop.f32.mrb[78].mxu0 }
 0x67f   : > { %v7173_v24 = vpop.f32.mrb[78].mxu1  ;;  %7272 = vrot.lane.b32.xlu0 %v15002_v34, %s11704_s16  ;;  %v6285_v35 = vpop.f32.mrb[79].mxu0 }
 0x680   : > { %v15008_v41 = vmax.f32 %v6283_v15, %v7173_v24  ;;  %v7175_v49 = vpop.f32.mrb[79].mxu1 }
 0x681   : > { %v15010_v37 = vmax.f32 %v6285_v35, %v7175_v49 }
 0x682   : > { %7274 = vrot.lane.b32.xlu1 %v15008_v41, %s11704_s16 }
 0x683   : > { %7276 = vrot.lane.b32.xlu0 %v15010_v37, %s11704_s16 }
 0x6d0   : > { %v7239_v53 = vpop.permute.xlu1 %7238 }
 0x6d1   : > { %v7241_v13 = vpop.permute.xlu0 %7240 }
 0x6d2   : > { %v7278_v63 = vsel %vm1192_vm6, %v7239_v53, %v7241_v13  ;;  %v7309_v3 = vmax.f32 %v14938_v33, %v7241_v13 }
 0x6d3   : > { %v7308_v32 = vmax.f32 %v14936_v2, %v7278_v63 }
 0x6d4   : > { %v7243_v54 = vpop.permute.xlu1 %7242  ;;  %v15029_v26 = vadd.f32 %v7341_v21, %v7309_v3 }
 0x6d5   : > { %v7245_v6 = vpop.permute.xlu0 %7244  ;;  %v7388_v0 = vadd.f32 %v7341_v21, %v7308_v32 }
 0x6d6   : > { %v7311_v19 = vmax.f32 %v14946_v7, %v7245_v6  ;;  %v7279_v29 = vsel %vm1192_vm6, %v7243_v54, %v7245_v6  ;;  %v7409_v33 = vmax.f32 %v15029_v26, 0.0 }
 0x6d7   : > { %v7310_v18 = vmax.f32 %v14944_v12, %v7279_v29  ;;  %v7408_v11 = vmax.f32 %v7388_v0, 0.0 }
 0x6d8   : > { %v15034_v17 = vadd.f32 %v7346_v62, %v7311_v19  ;;  %v7247_v38 = vpop.permute.xlu1 %7246 }
 0x6d9   : > { %v7390_v59 = vadd.f32 %v7346_v62, %v7310_v18  ;;  %v7249_v43 = vpop.permute.xlu0 %7248 }
 0x6da   : > { %v7411_v2 = vmax.f32 %v15034_v17, 0.0  ;;  %v7280_v8 = vsel %vm1192_vm6, %v7247_v38, %v7249_v43  ;;  %v7313_v28 = vmax.f32 %v14954_v4, %v7249_v43  ;;  %v7428_v17 = vld [vmem:[%s15357_s5] sm:$0xff] }
 0x6db   : > { %v7410_v7 = vmax.f32 %v7390_v59, 0.0  ;;  %v7312_v47 = vmax.f32 %v14952_v23, %v7280_v8 }
 0x6dc   : > { %v15045_v12 = vpack.c.bf16 %v7411_v2, %v7409_v33  ;;  %v7251_v9 = vpop.permute.xlu1 %7250  ;;  %v15047_v42 = vadd.f32 %v7351_v30, %v7313_v28 }
 0x6dd   : > { %v11636_v45 = vpack.i.bf16 %v7410_v7, %v7408_v11  ;;  %v10445_v25 = vpack.c.bf16 %v7410_v7, %v7408_v11  ;;  %v7253_v22 = vpop.permute.xlu0 %7252  ;;  %v7392_v60 = vadd.f32 %v7351_v30, %v7312_v47 }
 0x6de   : > { %v7315_v16 = vmax.f32 %v14962_v1, %v7253_v22  ;;  %v7281_v4 = vsel %vm1192_vm6, %v7251_v9, %v7253_v22  ;;  %v7413_v49 = vmax.f32 %v15047_v42, 0.0  ;;  %v7429_v42 = vld [vmem:[%s15357_s5 + $0x8] sm:$0xff] }
 0x6df   : > { %v7314_v61 = vmax.f32 %v14960_v48, %v7281_v4  ;;  %10446 = vmatpush3.bf16.msra.mxu1 %v10445_v25  ;;  %11637 = vrot.lane.b32.xlu1 %v11636_v45, %s11706_s18  ;;  %v7412_v30 = vmax.f32 %v7392_v60, 0.0 }
 0x6e0   : > { %v15053_v23 = vadd.f32 %v7356_v31, %v7315_v16  ;;  %v7255_v15 = vpop.permute.xlu1 %7254  ;;  %10447 = vmatprep.subr.bf16.mxu1 %v15411_v20 }
 0x6e1   : > { %v7394_v24 = vadd.f32 %v7356_v31, %v7314_v61  ;;  %v7257_v35 = vpop.permute.xlu0 %7256 }
 0x6e2   : > { %v7415_v21 = vmax.f32 %v15053_v23, 0.0  ;;  %v7282_v1 = vsel %vm1192_vm6, %v7255_v15, %v7257_v35  ;;  %v7317_v62 = vmax.f32 %v14970_v27, %v7257_v35  ;;  %v8040_v23 = vld [vmem:[%s15358_s6 + $0x18] sm:$0xff] }
 0x6e3   : > { %v7414_v48 = vmax.f32 %v7394_v24, 0.0  ;;  %v7316_v53 = vmax.f32 %v14968_v40, %v7282_v1 }
 0x6e4   : > { %v15065_v13 = vpack.c.bf16 %v7415_v21, %v7413_v49  ;;  %v7259_v31 = vpop.permute.xlu1 %7258  ;;  %v15067_v54 = vadd.f32 %v7361_v10, %v7317_v62 }
 0x6e5   : > { %v11641_v63 = vpack.i.bf16 %v7414_v48, %v7412_v30  ;;  %v10448_v3 = vpack.c.bf16 %v7414_v48, %v7412_v30  ;;  %v7261_v32 = vpop.permute.xlu0 %7260  ;;  %v7396_v19 = vadd.f32 %v7361_v10, %v7316_v53 }
 0x6e6   : > { %v7319_v6 = vmax.f32 %v14978_v56, %v7261_v32  ;;  %v7283_v27 = vsel %vm1192_vm6, %v7259_v31, %v7261_v32  ;;  %v7417_v59 = vmax.f32 %v15067_v54, 0.0  ;;  %v11661_v54 = vpack.i.bf16 %v7411_v2, %v7409_v33  ;;  %v8038_v33 = vld [vmem:[%s15358_s6 + $0x8] sm:$0xff] }
 0x6e7   : > { %v7318_v29 = vmax.f32 %v14976_v14, %v7283_v27  ;;  %10449 = vmatpush3.bf16.msra.mxu1 %v10448_v3  ;;  %11642 = vrot.lane.b32.xlu0 %v11641_v63, %s11706_s18  ;;  %v7416_v8 = vmax.f32 %v7396_v19, 0.0 }
 0x6e8   : > { %v7399_v40 = vadd.f32 %v15016_v57, %v7319_v6  ;;  %v7263_v0 = vpop.permute.xlu1 %7262  ;;  %10450 = vmatprep.subr.bf16.mxu1 %v15411_v20 }
 0x6e9   : > { %v7398_v18 = vadd.f32 %v15016_v57, %v7318_v29  ;;  %v7265_v38 = vpop.permute.xlu0 %7264 }
 0x6ea   : > { %v7419_v43 = vmax.f32 %v7399_v40, 0.0  ;;  %v7284_v56 = vsel %vm1192_vm6, %v7263_v0, %v7265_v38  ;;  %v7321_v10 = vmax.f32 %v14986_v55, %v7265_v38  ;;  %v8039_v38 = vld [vmem:[%s15358_s6 + $0x10] sm:$0xff] }
 0x6eb   : > { %v7418_v14 = vmax.f32 %v7398_v18, 0.0  ;;  %v7320_v28 = vmax.f32 %v14984_v39, %v7284_v56  ;;  %v8042_v18 = vld [vmem:[%s15358_s6 + $0x28] sm:$0xff]  ;;  %v8041_v56 = vld [vmem:[%s15358_s6 + $0x20] sm:$0xff] }
 0x6ec   : > { %v15080_v11 = vpack.c.bf16 %v7419_v43, %v7417_v59  ;;  %v7267_v7 = vpop.permute.xlu1 %7266  ;;  %v7401_v57 = vadd.f32 %v15018_v58, %v7321_v10  ;;  %v11671_v29 = vpack.i.bf16 %v7419_v43, %v7417_v59  ;;  %v7431_v59 = vld [vmem:[%s15357_s5 + $0x18] sm:$0xff]  ;;  %v8095_v43 = vld [vmem:[%s15360_s8] sm:$0xff] }
 0x6ed   : > { %v11646_v47 = vpack.i.bf16 %v7418_v14, %v7416_v8  ;;  %v10451_v9 = vpack.c.bf16 %v7418_v14, %v7416_v8  ;;  %v7269_v45 = vpop.permute.xlu0 %7268  ;;  %v7400_v16 = vadd.f32 %v15018_v58, %v7320_v28  ;;  %v7432_v10 = vld [vmem:[%s15357_s5 + $0x20] sm:$0xff]  ;;  %v8043_v8 = vld [vmem:[%s15358_s6 + $0x30] sm:$0x3]  ;;  %v7433_v14 = vld [vmem:[%s15357_s5 + $0x28] sm:$0xff] }
 0x6ee   : > { %v7323_v25 = vmax.f32 %v14994_v52, %v7269_v45  ;;  %v7285_v22 = vsel %vm1192_vm6, %v7267_v7, %v7269_v45  ;;  %v7421_v15 = vmax.f32 %v7401_v57, 0.0  ;;  %v8096_v28 = vld [vmem:[%s15360_s8 + $0x8] sm:$0x3]  ;;  %v7434_v7 = vld [vmem:[%s15357_s5 + $0x30] sm:$0x3] }
 0x6ef   : > { %v7322_v55 = vmax.f32 %v14992_v46, %v7285_v22  ;;  %10452 = vmatpush3.bf16.msra.mxu1 %v10451_v9  ;;  %11647 = vrot.lane.b32.xlu1 %v11646_v47, %s11706_s18  ;;  %v7420_v58 = vmax.f32 %v7400_v16, 0.0 }
 0x6f0   : > { %v7403_v39 = vadd.f32 %v15020_v44, %v7323_v25  ;;  %v7271_v4 = vpop.permute.xlu1 %7270  ;;  %10453 = vmatprep.subr.bf16.mxu1 %v15411_v20 }
 0x6f1   : > { %v7402_v60 = vadd.f32 %v15020_v44, %v7322_v55  ;;  %v7273_v61 = vpop.permute.xlu0 %7272 }
 0x6f2   : > { %v7423_v24 = vmax.f32 %v7403_v39, 0.0  ;;  %v7286_v52 = vsel %vm1192_vm6, %v7271_v4, %v7273_v61  ;;  %v7325_v35 = vmax.f32 %v15002_v34, %v7273_v61 }
 0x6f3   : > { %v7422_v1 = vmax.f32 %v7402_v60, 0.0  ;;  %v7324_v46 = vmax.f32 %v15000_v36, %v7286_v52 }
 0x6f4   : > { %v15094_v62 = vpack.c.bf16 %v7423_v24, %v7421_v15  ;;  %v7275_v30 = vpop.permute.xlu1 %7274  ;;  %v7405_v63 = vadd.f32 %v15022_v51, %v7325_v35  ;;  %v11676_v2 = vpack.i.bf16 %v7423_v24, %v7421_v15 }
 0x6f5   : > { %v11651_v48 = vpack.i.bf16 %v7422_v1, %v7420_v58  ;;  %v10454_v53 = vpack.c.bf16 %v7422_v1, %v7420_v58  ;;  %v7277_v31 = vpop.permute.xlu0 %7276  ;;  %v7404_v32 = vadd.f32 %v15022_v51, %v7324_v46 }
 0x6f6   : > { %v7327_v44 = vmax.f32 %v15010_v37, %v7277_v31  ;;  %v7287_v3 = vsel %vm1192_vm6, %v7275_v30, %v7277_v31  ;;  %v7425_v6 = vmax.f32 %v7405_v63, 0.0 }
 0x6f7   : > { %v7326_v34 = vmax.f32 %v15008_v41, %v7287_v3  ;;  %10455 = vmatpush3.bf16.msra.mxu1 %v10454_v53  ;;  %11652 = vrot.lane.b32.xlu0 %v11651_v48, %s11706_s18  ;;  %v7424_v19 = vmax.f32 %v7404_v32, 0.0 }
 0x6f8   : > { %v7407_v36 = vadd.f32 %v15024_v5, %v7327_v44  ;;  %10456 = vmatprep.subr.bf16.mxu1 %v15411_v20 }
 0x6f9   : > { %v7406_v37 = vadd.f32 %v15024_v5, %v7326_v34  ;;  %v11666_v5 = vpack.i.bf16 %v7415_v21, %v7413_v49  ;;  %v8037_v49 = vld [vmem:[%s15358_s6] sm:$0xff]  ;;  %v7430_v21 = vld [vmem:[%s15357_s5 + $0x10] sm:$0xff] }
 0x6fa   : > { %v7427_v27 = vmax.f32 %v7407_v36, 0.0  ;;  %v8945_v36 = vld [vmem:[%s15357_s5 + $0x38] sm:$0xff] }
 0x6fb   : > { %v7426_v51 = vmax.f32 %v7406_v37, 0.0  ;;  %11662 = vrot.lane.b32.xlu0 %v11661_v54, %s11706_s18 }
 0x6fc   : > { %v15110_v41 = vpack.c.bf16 %v7427_v27, %v7425_v6  ;;  %v11681_v26 = vpack.i.bf16 %v7427_v27, %v7425_v6 }
 0x6fd   : > { %v11656_v40 = vpack.i.bf16 %v7426_v51, %v7424_v19  ;;  %v10457_v0 = vpack.c.bf16 %v7426_v51, %v7424_v19  ;;  %v8946_v19 = vld [vmem:[%s15357_s5 + $0x40] sm:$0xff] }
 0x6ff   : > { %11672 = vrot.lane.b32.xlu0 %v11671_v29, %s11706_s18  ;;  %11657 = vrot.lane.b32.xlu1 %v11656_v40, %s11706_s18 }
 0x700   : > { %10458 = vmatpush3.bf16.msra.mxu1 %v10457_v0 }
 0x701   : > { %10474 = vmatprep.subr.bf16.mxu1 %v15411_v20 }
 0x703   : > { %11682 = vrot.lane.b32.xlu0 %v11681_v26, %s11706_s18  ;;  %11667 = vrot.lane.b32.xlu1 %v11666_v5, %s11706_s18 }
 0x704   : > { %9860 = vmatmul.mubr.msk.f32.vlgmr.msra.gmra.mrb[80].mxu1 %vm1653_vm7, %v7428_v17 }
 0x705   : > { %9862 = vmatprep.mubr.msk.f32.mxu1 %vm11703_vm0, %v15410_v50 }
 0x707   : > { %8051 = vperm.xlu0 %11319, %v8038_v33   ;;  %11677 = vrot.lane.b32.xlu1 %v11676_v2, %s11706_s18  ;;  %v8980_v2 = vld [vmem:[%s15357_s5 + $0xa8] sm:$0xff] }
 0x708   : > { %9863 = vmatmul.mubr.msk.f32.gmra.mrb[82].mxu1 %vm1653_vm7, %v7429_v42  ;;  %v8981_v42 = vld [vmem:[%s15357_s5 + $0xb0] sm:$0xff] }
 0x709   : > { %9865 = vmatprep.mubr.msk.f32.mxu1 %vm11703_vm0, %v15410_v50 }
 0x70b   : > { %8061 = vperm.xlu0 %11319, %v8040_v23   ;;  %8046 = vperm.xlu1 %11320, %v8037_v49   ;;  %v8966_v23 = vld [vmem:[%s15357_s5 + $0x70] sm:$0xff]  ;;  %v8983_v49 = vld [vmem:[%s15357_s5 + $0xc0] sm:$0xff] }
 0x70c   : > { %9866 = vmatmul.mubr.msk.f32.gmra.mrb[84].mxu1 %vm1653_vm7, %v7430_v21  ;;  %v8967_v21 = vld [vmem:[%s15357_s5 + $0x78] sm:$0xff] }
 0x70d   : > { %9868 = vmatprep.mubr.msk.f32.mxu1 %vm11703_vm0, %v15410_v50 }
 0x70f   : > { %8071 = vperm.xlu0 %11319, %v8042_v18   ;;  %8056 = vperm.xlu1 %11320, %v8039_v38   ;;  %v8984_v18 = vld [vmem:[%s15357_s5 + $0xc8] sm:$0xff]  ;;  %v8968_v38 = vld [vmem:[%s15357_s5 + $0x80] sm:$0xff] }
 0x710   : > { %9869 = vmatmul.mubr.msk.f32.gmra.mrb[86].mxu1 %vm1653_vm7, %v7431_v59  ;;  %v8985_v59 = vld [vmem:[%s15357_s5 + $0xd0] sm:$0xff] }
 0x711   : > { %9871 = vmatprep.mubr.msk.f32.mxu1 %vm11703_vm0, %v15410_v50 }
 0x713   : > { %8099 = vperm.xlu0 %11319, %v8095_v43   ;;  %8066 = vperm.xlu1 %11320, %v8041_v56   ;;  %v8969_v43 = vld [vmem:[%s15357_s5 + $0x88] sm:$0xff]  ;;  %v8986_v56 = vld [vmem:[%s15357_s5 + $0xd8] sm:$0x3] }
 0x714   : > { %9872 = vmatmul.mubr.msk.f32.gmra.mrb[88].mxu1 %vm1653_vm7, %v7432_v10  ;;  %v8970_v10 = vld [vmem:[%s15357_s5 + $0x90] sm:$0xff] }
 0x715   : > { %9874 = vmatprep.mubr.msk.f32.mxu1 %vm11703_vm0, %v15410_v50 }
 0x717   : > { %8076 = vperm.xlu1 %11320, %v8043_v8   ;;  %v8971_v8 = vld [vmem:[%s15357_s5 + $0x98] sm:$0xff] }
 0x718   : > { %9875 = vmatmul.mubr.msk.f32.gmra.mrb[90].mxu1 %vm1653_vm7, %v7433_v14  ;;  %v8972_v14 = vld [vmem:[%s15357_s5 + $0xa0] sm:$0x3] }
 0x719   : > { %9877 = vmatprep.mubr.msk.f32.mxu1 %vm11703_vm0, %v15410_v50 }
 0x71b   : > { %8104 = vperm.xlu1 %11320, %v8096_v28  }
 0x71c   : > { %9878 = vmatmul.mubr.msk.f32.gmra.mrb[92].mxu1 %vm1653_vm7, %v7434_v7 }
 0x71d   : > { %9941 = vmatprep.mubr.msk.f32.mxu1 %vm11703_vm0, %v15410_v50 }
 0x751   : > { %v11638_v47 = vpop.permute.xlu1 %11637 }
 0x752   : > { %v11640_v9 = vunpack.i.h.bf16 %v11638_v47  ;;  %v11639_v45 = vunpack.i.l.bf16 %v11638_v47 }
 0x754   : > { %v10430_v57 = vpack.c.bf16 %v11640_v9, %v11639_v45 }
 0x756   : > { %10431 = vmatpush3.bf16.msra.mxu0 %v10430_v57 }
 0x757   : > { %10432 = vmatprep.subr.bf16.mxu0 %v15411_v20 }
 0x759   : > { %v11643_v25 = vpop.permute.xlu0 %11642 }
 0x75a   : > { %v11645_v22 = vunpack.i.h.bf16 %v11643_v25  ;;  %v11644_v16 = vunpack.i.l.bf16 %v11643_v25 }
 0x75c   : > { %v10433_v55 = vpack.c.bf16 %v11645_v22, %v11644_v16 }
 0x75e   : > { %10434 = vmatpush3.bf16.msra.mxu0 %v10433_v55 }
 0x75f   : > { %10435 = vmatprep.subr.bf16.mxu0 %v15411_v20 }
 0x761   : > { %v11648_v39 = vpop.permute.xlu1 %11647 }
 0x762   : > { %v11650_v4 = vunpack.i.h.bf16 %v11648_v39  ;;  %v11649_v60 = vunpack.i.l.bf16 %v11648_v39 }
 0x764   : > { %v10436_v61 = vpack.c.bf16 %v11650_v4, %v11649_v60 }
 0x766   : > { %10437 = vmatpush3.bf16.msra.mxu0 %v10436_v61  ;;  %v8093_v61 = vld [vmem:[%s15359_s7] sm:$0xff] }
 0x767   : > { %10438 = vmatprep.subr.bf16.mxu0 %v15411_v20 }
 0x769   : > { %v11653_v15 = vpop.permute.xlu0 %11652 }
 0x76a   : > { %v11655_v24 = vunpack.i.h.bf16 %v11653_v15  ;;  %v11654_v52 = vunpack.i.l.bf16 %v11653_v15 }
 0x76c   : > { %v10439_v35 = vpack.c.bf16 %v11655_v24, %v11654_v52 }
 0x76d   : > { %v11663_v58 = vpop.permute.xlu0 %11662 }
 0x76e   : > { %v11665_v1 = vunpack.i.h.bf16 %v11663_v58  ;;  %v11664_v46 = vunpack.i.l.bf16 %v11663_v58  ;;  %10440 = vmatpush3.bf16.msra.mxu0 %v10439_v35 }
 0x76f   : > { %10441 = vmatprep.subr.bf16.mxu0 %v15411_v20 }
 0x770   : > { %v10475_v30 = vpack.c.bf16 %v11665_v1, %v11664_v46 }
 0x771   : > { %v11658_v48 = vpop.permute.xlu1 %11657  ;;  %v11673_v44 = vpop.permute.xlu0 %11672 }
 0x772   : > { %v11660_v53 = vunpack.i.h.bf16 %v11658_v48  ;;  %v11659_v31 = vunpack.i.l.bf16 %v11658_v48  ;;  %10476 = vmatpush3.bf16.msra.mxu1 %v10475_v30  ;;  %v11675_v54 = vunpack.i.h.bf16 %v11673_v44  ;;  %v11674_v37 = vunpack.i.l.bf16 %v11673_v44 }
 0x773   : > { %10477 = vmatprep.subr.bf16.mxu1 %v15411_v20 }
 0x774   : > { %v10442_v63 = vpack.c.bf16 %v11660_v53, %v11659_v31  ;;  %v10481_v51 = vpack.c.bf16 %v11675_v54, %v11674_v37 }
 0x775   : > { %v11668_v3 = vpop.permute.xlu1 %11667  ;;  %v11683_v0 = vpop.permute.xlu0 %11682 }
 0x776   : > { %v11670_v32 = vunpack.i.h.bf16 %v11668_v3  ;;  %v11669_v34 = vunpack.i.l.bf16 %v11668_v3  ;;  %10443 = vmatpush3.bf16.msra.mxu0 %v10442_v63  ;;  %v11685_v5 = vunpack.i.h.bf16 %v11683_v0  ;;  %v11684_v26 = vunpack.i.l.bf16 %v11683_v0 }
 0x777   : > { %10459 = vmatprep.subr.bf16.mxu0 %v15411_v20 }
 0x778   : > { %v10478_v6 = vpack.c.bf16 %v11670_v32, %v11669_v34  ;;  %v10487_v33 = vpack.c.bf16 %v11685_v5, %v11684_v26 }
 0x779   : > { %v11678_v27 = vpop.permute.xlu1 %11677  ;;  %9819 = vmatmul.mubr.msk.f32.vlgmr.msra.gmra.mrb[80].mxu0 %vm1653_vm7, %v8945_v36 }
 0x77a   : > { %10461 = vmatpush3.bf16.msra.mxu0 %v15045_v12  ;;  %10479 = vmatpush3.bf16.msra.mxu1 %v10478_v6  ;;  %v11680_v29 = vunpack.i.h.bf16 %v11678_v27  ;;  %v11679_v40 = vunpack.i.l.bf16 %v11678_v27  ;;  %v8947_v12 = vld [vmem:[%s15357_s5 + $0x48] sm:$0xff] }
 0x77b   : > { %9821 = vmatprep.mubr.msk.f32.mxu0 %vm11703_vm0, %v15410_v50  ;;  %10462 = vmatprep.subr.bf16.mxu0 %v15411_v20 }
 0x77c   : > { %10480 = vmatprep.subr.bf16.mxu1 %v15411_v20  ;;  %v10484_v17 = vpack.c.bf16 %v11680_v29, %v11679_v40 }
 0x77d   : > { %9822 = vmatmul.mubr.msk.f32.gmra.mrb[82].mxu0 %vm1653_vm7, %v8946_v19 }
 0x77e   : > { %10464 = vmatpush3.bf16.msra.mxu0 %v15065_v13  ;;  %10482 = vmatpush3.bf16.msra.mxu1 %v10481_v51  ;;  %v8948_v13 = vld [vmem:[%s15357_s5 + $0x50] sm:$0xff] }
 0x77f   : > { %9824 = vmatprep.mubr.msk.f32.mxu0 %vm11703_vm0, %v15410_v50  ;;  %10465 = vmatprep.subr.bf16.mxu0 %v15411_v20 }
 0x780   : > { %10483 = vmatprep.subr.bf16.mxu1 %v15411_v20 }
 0x781   : > { %9825 = vmatmul.mubr.msk.f32.gmra.mrb[84].mxu0 %vm1653_vm7, %v8947_v12 }
 0x782   : > { %10467 = vmatpush3.bf16.msra.mxu0 %v15080_v11  ;;  %10485 = vmatpush3.bf16.msra.mxu1 %v10484_v17  ;;  %v8949_v11 = vld [vmem:[%s15357_s5 + $0x58] sm:$0xff] }
 0x783   : > { %9827 = vmatprep.mubr.msk.f32.mxu0 %vm11703_vm0, %v15410_v50  ;;  %10468 = vmatprep.subr.bf16.mxu0 %v15411_v20 }
 0x784   : > { %10486 = vmatprep.subr.bf16.mxu1 %v15411_v20 }
 0x785   : > { %9828 = vmatmul.mubr.msk.f32.gmra.mrb[86].mxu0 %vm1653_vm7, %v8948_v13 }
 0x786   : > { %10470 = vmatpush3.bf16.msra.mxu0 %v15094_v62  ;;  %10488 = vmatpush3.bf16.msra.mxu1 %v10487_v33  ;;  %v8950_v62 = vld [vmem:[%s15357_s5 + $0x60] sm:$0xff] }
 0x787   : > { %9830 = vmatprep.mubr.msk.f32.mxu0 %vm11703_vm0, %v15410_v50  ;;  %10471 = vmatprep.subr.bf16.mxu0 %v15411_v20  ;;  %v8951_v20 = vld [vmem:[%s15357_s5 + $0x68] sm:$0x3] }
 0x789   : > { %9831 = vmatmul.mubr.msk.f32.gmra.mrb[88].mxu0 %vm1653_vm7, %v8949_v11  ;;  %9942 = vmatmul.mubr.msk.f32.vlgmr.msra.gmra.mrb[94].mxu1 %vm1653_vm7, %v8980_v2 }
 0x78a   : > { %10473 = vmatpush3.bf16.msra.mxu0 %v15110_v41  ;;  %9833 = vmatprep.mubr.msk.f32.mxu0 %vm11703_vm0, %v15410_v50  ;;  %v8982_v41 = vld [vmem:[%s15357_s5 + $0xb8] sm:$0xff] }
 0x78b   : > { %9944 = vmatprep.mubr.msk.f32.mxu1 %vm11703_vm0, %v15410_v50 }
 0x78d   : > { %9834 = vmatmul.mubr.msk.f32.gmra.mrb[90].mxu0 %vm1653_vm7, %v8950_v62  ;;  %9945 = vmatmul.mubr.msk.f32.gmra.mrb[96].mxu1 %vm1653_vm7, %v8981_v42 }
 0x78e   : > { %9836 = vmatprep.mubr.msk.f32.mxu0 %vm11703_vm0, %v15410_v50  ;;  %9947 = vmatprep.mubr.msk.f32.mxu1 %vm11703_vm0, %v15410_v50 }
 0x791   : > { %9837 = vmatmul.mubr.msk.f32.gmra.mrb[92].mxu0 %vm1653_vm7, %v8951_v20  ;;  %9948 = vmatmul.mubr.msk.f32.gmra.mrb[98].mxu1 %vm1653_vm7, %v8982_v41 }
 0x792   : > { %9900 = vmatprep.mubr.msk.f32.mxu0 %vm11703_vm0, %v15410_v50  ;;  %9950 = vmatprep.mubr.msk.f32.mxu1 %vm11703_vm0, %v15410_v50 }
 0x795   : > { %9901 = vmatmul.mubr.msk.f32.vlgmr.msra.gmra.mrb[94].mxu0 %vm1653_vm7, %v8966_v23  ;;  %9951 = vmatmul.mubr.msk.f32.gmra.mrb[100].mxu1 %vm1653_vm7, %v8983_v49  ;;  %v8047_v23 = vpop.permute.xlu1 %8046  ;;  %v8052_v49 = vpop.permute.xlu0 %8051 }
 0x796   : > { %9903 = vmatprep.mubr.msk.f32.mxu0 %vm11703_vm0, %v15410_v50  ;;  %9953 = vmatprep.mubr.msk.f32.mxu1 %vm11703_vm0, %v15410_v50 }
 0x799   : > { %9904 = vmatmul.mubr.msk.f32.gmra.mrb[96].mxu0 %vm1653_vm7, %v8967_v21  ;;  %9954 = vmatmul.mubr.msk.f32.gmra.mrb[102].mxu1 %vm1653_vm7, %v8984_v18 }
 0x79a   : > { %9906 = vmatprep.mubr.msk.f32.mxu0 %vm11703_vm0, %v15410_v50  ;;  %9956 = vmatprep.mubr.msk.f32.mxu1 %vm11703_vm0, %v15410_v50 }
 0x79d   : > { %9907 = vmatmul.mubr.msk.f32.gmra.mrb[98].mxu0 %vm1653_vm7, %v8968_v38  ;;  %9957 = vmatmul.mubr.msk.f32.gmra.mrb[104].mxu1 %vm1653_vm7, %v8985_v59 }
 0x79e   : > { %9909 = vmatprep.mubr.msk.f32.mxu0 %vm11703_vm0, %v15410_v50  ;;  %9959 = vmatprep.mubr.msk.f32.mxu1 %vm11703_vm0, %v15410_v50 }
 0x7a1   : > { %9910 = vmatmul.mubr.msk.f32.gmra.mrb[100].mxu0 %vm1653_vm7, %v8969_v43  ;;  %9960 = vmatmul.mubr.msk.f32.gmra.mrb[106].mxu1 %vm1653_vm7, %v8986_v56 }
 0x7a2   : > { %9912 = vmatprep.mubr.msk.f32.mxu0 %vm11703_vm0, %v15410_v50 }
 0x7a5   : > { %9913 = vmatmul.mubr.msk.f32.gmra.mrb[102].mxu0 %vm1653_vm7, %v8970_v10 }
 0x7a6   : > { %9915 = vmatprep.mubr.msk.f32.mxu0 %vm11703_vm0, %v15410_v50 }
 0x7a9   : > { %9916 = vmatmul.mubr.msk.f32.gmra.mrb[104].mxu0 %vm1653_vm7, %v8971_v8 }
 0x7aa   : > { %9918 = vmatprep.mubr.msk.f32.mxu0 %vm11703_vm0, %v15410_v50 }
 0x7ad   : > { %9919 = vmatmul.mubr.msk.f32.gmra.mrb[106].mxu0 %vm1653_vm7, %v8972_v14 }
 0x7ae   : > { %9976 = vmatprep.mubr.msk.f32.mxu0 %vm8107_vm11, %v8093_v61 }
 0x7d7   : > { %v7691_v28 = vpop.f32.mrb[80].mxu1 }
 0x7d8   : > { %v9861_v7 = vpop.f32.mrb[81].mxu1 }
 0x7db   : > { %v7696_v47 = vpop.f32.mrb[82].mxu1 }
 0x7dc   : > { %v9864_v9 = vpop.f32.mrb[83].mxu1 }
 0x7df   : > { %v7701_v45 = vpop.f32.mrb[84].mxu1 }
 0x7e0   : > { %v9867_v57 = vpop.f32.mrb[85].mxu1 }
 0x7e3   : > { %v7706_v25 = vpop.f32.mrb[86].mxu1 }
 0x7e4   : > { %v9870_v22 = vpop.f32.mrb[87].mxu1 }
 0x7e7   : > { %v7711_v16 = vpop.f32.mrb[88].mxu1 }
 0x7e8   : > { %v9873_v55 = vpop.f32.mrb[89].mxu1 }
 0x7eb   : > { %v7716_v39 = vpop.f32.mrb[90].mxu1 }
 0x7ec   : > { %v9876_v4 = vpop.f32.mrb[91].mxu1 }
 0x7ed   : > { %v8062_v4 = vpop.permute.xlu0 %8061 }
 0x7ef   : > { %v7721_v60 = vpop.f32.mrb[92].mxu1 }
 0x7f0   : > { %v9879_v50 = vpop.f32.mrb[93].mxu1 }
 0x84c   : > { %v7570_v15 = vpop.f32.mrb[80].mxu0 }
 0x84d   : > { %v7692_v24 = vadd.f32 %v7691_v28, %v7570_v15  ;;  %v9820_v52 = vpop.f32.mrb[81].mxu0 }
 0x850   : > { %v7575_v35 = vpop.f32.mrb[82].mxu0 }
 0x851   : > { %v7697_v58 = vadd.f32 %v7696_v47, %v7575_v35  ;;  %v9823_v1 = vpop.f32.mrb[83].mxu0 }
 0x854   : > { %v7580_v46 = vpop.f32.mrb[84].mxu0 }
 0x855   : > { %v7702_v30 = vadd.f32 %v7701_v45, %v7580_v46  ;;  %v9826_v48 = vpop.f32.mrb[85].mxu0 }
 0x858   : > { %v7585_v53 = vpop.f32.mrb[86].mxu0 }
 0x859   : > { %v7707_v31 = vadd.f32 %v7706_v25, %v7585_v53  ;;  %v9829_v63 = vpop.f32.mrb[87].mxu0 }
 0x85a   : > { %v8072_v63 = vpop.permute.xlu0 %8071 }
 0x85c   : > { %v7590_v44 = vpop.f32.mrb[88].mxu0  ;;  %v7996_v3 = vpop.f32.mrb[94].mxu1 }
 0x85d   : > { %v7712_v32 = vadd.f32 %v7711_v16, %v7590_v44  ;;  %v9832_v34 = vpop.f32.mrb[89].mxu0  ;;  %v9943_v36 = vpop.f32.mrb[95].mxu1 }
 0x85e   : > { %v8057_v16 = vpop.permute.xlu1 %8056 }
 0x860   : > { %v7595_v54 = vpop.f32.mrb[90].mxu0  ;;  %v8001_v37 = vpop.f32.mrb[96].mxu1 }
 0x861   : > { %v7717_v6 = vadd.f32 %v7716_v39, %v7595_v54  ;;  %v9835_v27 = vpop.f32.mrb[91].mxu0  ;;  %v9946_v19 = vpop.f32.mrb[97].mxu1 }
 0x862   : > { %v8067_v48 = vpop.permute.xlu1 %8066 }
 0x864   : > { %v7600_v51 = vpop.f32.mrb[92].mxu0  ;;  %v8006_v29 = vpop.f32.mrb[98].mxu1 }
 0x865   : > { %v7722_v40 = vadd.f32 %v7721_v60, %v7600_v51  ;;  %v9838_v0 = vpop.f32.mrb[93].mxu0  ;;  %v9949_v12 = vpop.f32.mrb[99].mxu1 }
 0x866   : > { %v8077_v27 = vpop.permute.xlu1 %8076  ;;  %v8100_v12 = vpop.permute.xlu0 %8099 }
 0x868   : > { %v7820_v5 = vpop.f32.mrb[94].mxu0  ;;  %v8011_v26 = vpop.f32.mrb[100].mxu1 }
 0x869   : > { %v7854_v17 = vadd.f32 %v7820_v5, %v7692_v24  ;;  %v9902_v13 = vpop.f32.mrb[95].mxu0  ;;  %v9952_v33 = vpop.f32.mrb[101].mxu1 }
 0x86b   : > { %v8030_v11 = vadd.f32 %v7996_v3, %v7854_v17 }
 0x86c   : > { %v7825_v2 = vpop.f32.mrb[96].mxu0  ;;  %v8016_v62 = vpop.f32.mrb[102].mxu1 }
 0x86d   : > { %v7855_v42 = vadd.f32 %v7825_v2, %v7697_v58  ;;  %v9905_v20 = vpop.f32.mrb[97].mxu0  ;;  %v9955_v41 = vpop.f32.mrb[103].mxu1  ;;  %v8079_v21 = vadd.f32 %v8047_v23, %v8030_v11 }
 0x86f   : > { %v8031_v18 = vadd.f32 %v8001_v37, %v7855_v42  ;;  %v8086_v14 = vmax.f32 %v8079_v21, 0.0 }
 0x870   : > { %v7830_v38 = vpop.f32.mrb[98].mxu0  ;;  %v8021_v59 = vpop.f32.mrb[104].mxu1 }
 0x871   : > { %v8080_v43 = vadd.f32 %v8052_v49, %v8031_v18  ;;  %v7856_v56 = vadd.f32 %v7830_v38, %v7702_v30  ;;  %v9908_v10 = vpop.f32.mrb[99].mxu0  ;;  %v9958_v8 = vpop.f32.mrb[105].mxu1 }
 0x873   : > { %v8087_v28 = vmax.f32 %v8080_v43, 0.0  ;;  %v8032_v7 = vadd.f32 %v8006_v29, %v7856_v56  ;;  %v8094_v29 = vld [vmem:[%s15359_s7 + $0x8] sm:$0x3] }
 0x874   : > { %v7835_v47 = vpop.f32.mrb[100].mxu0  ;;  %v8026_v9 = vpop.f32.mrb[106].mxu1 }
 0x875   : > { %v7857_v45 = vadd.f32 %v7835_v47, %v7707_v31  ;;  %v9911_v57 = vpop.f32.mrb[101].mxu0  ;;  %v10489_v25 = vpack.c.bf16 %v8087_v28, %v8086_v14  ;;  %v9961_v22 = vpop.f32.mrb[107].mxu1  ;;  %v8081_v55 = vadd.f32 %v8057_v16, %v8032_v7 }
 0x877   : > { %v8033_v39 = vadd.f32 %v8011_v26, %v7857_v45  ;;  %10490 = vmatprep.subr.bf16.mxu0 %v10489_v25  ;;  %v8088_v24 = vmax.f32 %v8081_v55, 0.0 }
 0x878   : > { %v7840_v60 = vpop.f32.mrb[102].mxu0  ;;  %10492 = vmatpush3.bf16.msra.mxu0 %v10489_v25 }
 0x879   : > { %v8082_v50 = vadd.f32 %v8062_v4, %v8033_v39  ;;  %v7858_v61 = vadd.f32 %v7840_v60, %v7712_v32  ;;  %v9914_v15 = vpop.f32.mrb[103].mxu0 }
 0x87b   : > { %v8089_v52 = vmax.f32 %v8082_v50, 0.0  ;;  %v8034_v35 = vadd.f32 %v8016_v62, %v7858_v61 }
 0x87c   : > { %v7845_v58 = vpop.f32.mrb[104].mxu0 }
 0x87d   : > { %v7859_v1 = vadd.f32 %v7845_v58, %v7717_v6  ;;  %v9917_v46 = vpop.f32.mrb[105].mxu0  ;;  %v10493_v30 = vpack.c.bf16 %v8089_v52, %v8088_v24  ;;  %v8083_v53 = vadd.f32 %v8067_v48, %v8034_v35 }
 0x87f   : > { %v8035_v31 = vadd.f32 %v8021_v59, %v7859_v1  ;;  %10494 = vmatprep.subr.bf16.mxu0 %v10493_v30  ;;  %v8090_v54 = vmax.f32 %v8083_v53, 0.0 }
 0x880   : > { %v7850_v44 = vpop.f32.mrb[106].mxu0  ;;  %10496 = vmatpush3.bf16.msra.mxu0 %v10493_v30 }
 0x881   : > { %v8084_v3 = vadd.f32 %v8072_v63, %v8035_v31  ;;  %v7860_v34 = vadd.f32 %v7850_v44, %v7722_v40  ;;  %v9920_v36 = vpop.f32.mrb[107].mxu0  ;;  %v8105_v40 = vpop.permute.xlu1 %8104 }
 0x883   : > { %v8091_v32 = vmax.f32 %v8084_v3, 0.0  ;;  %v8036_v37 = vadd.f32 %v8026_v9, %v7860_v34 }
 0x885   : > { %v8085_v19 = vadd.f32 %v8077_v27, %v8036_v37  ;;  %v10497_v51 = vpack.c.bf16 %v8091_v32, %v8090_v54 }
 0x887   : > { %v8092_v6 = vmax.f32 %v8085_v19, 0.0  ;;  %10498 = vmatprep.subr.bf16.mxu0 %v10497_v51 }
 0x888   : > { %10500 = vmatpush3.bf16.msra.mxu0 %v10497_v51 }
 0x889   : > { %9974 = vmatprep.subr.msk.mxu0 %vm8114_vm12, %v8092_v6 }
 0x88c   : > { %9975 = vmatpush3.msk.msra.mxu0 %vm8114_vm12, %v8092_v6 }
 0x88d   : > { %9977 = vmatmul.mubr.msk.f32.vlgmr.msra.gmra.mrb[108].mxu0 %vm8107_vm11, %v8094_v29 }
 0x960   : > { %v9978_v0 = vpop.f32.mrb[108].mxu0 }
 0x961   : > { %v8190_v5 = vadd.f32 %v9978_v0, %v8105_v40  ;;  %v8184_v26 = vpop.f32.mrb[109].mxu0 }
 0x962   : > { %v8185_v17 = vadd.f32 %v8184_v26, %v8100_v12 }
 0x963   : > { %v8196_v13 = vsel %vm8195_vm13, %v8190_v5, -inf }
 0x964   : > { %v8194_v33 = vsel %vm8193_vm14, %v8185_v17, -inf }
 0x965   : > { %v8197_v11 = vmax.f32 %v8194_v33, %v8196_v13 }
 0x967   : > { %v8198_v2 = vrot.slane %v8197_v11, 4 }
 0x969   : > { %v8199_v62 = vmax.f32 %v8197_v11, %v8198_v2 }
 0x96b   : > { %v8200_v42 = vrot.slane %v8199_v62, 2 }
 0x96d   : > { %v8201_v20 = vmax.f32 %v8199_v62, %v8200_v42 }
 0x96f   : > { %v8202_v41 = vrot.slane %v8201_v20, 1 }
 0x971   : > { %v8203_v23 = vmax.f32 %v8201_v20, %v8202_v41 }
 0x973   : > { %v8204_v49 = vsub.f32 %v8185_v17, %v8203_v23  ;;  %v8205_v21 = vsub.f32 %v8190_v5, %v8203_v23 }
 0x975   : > { %v8206_v18 = vmul.f32 1.442695, %v8204_v49  ;;  %v8208_v38 = vmul.f32 1.442695, %v8205_v21 }
 0x977   : > { %11686 = vpow2.f32 %v8206_v18 }
 0x978   : > { %11688 = vpow2.f32 %v8208_v38 }
 0x981   : > { %v11687_v59 = vpop.eup %11686 }
 0x982   : > { %v11689_v43 = vpop.eup %11688  ;;  %v8210_v56 = vsel %vm8193_vm14, %v11687_v59, 0.0 }
 0x983   : > { %v8211_v10 = vsel %vm8195_vm13, %v11689_v43, 0.0 }
 0x984   : > { %v8212_v8 = vadd.f32 %v8211_v10, %v8210_v56 }
 0x986   : > { %v8213_v14 = vrot.slane %v8212_v8, 4 }
 0x988   : > { %v8214_v28 = vadd.f32 %v8213_v14, %v8212_v8 }
 0x98a   : > { %v8215_v7 = vrot.slane %v8214_v28, 2 }
 0x98c   : > { %v8216_v47 = vadd.f32 %v8215_v7, %v8214_v28 }
 0x98e   : > { %v8217_v9 = vrot.slane %v8216_v47, 1 }
 0x990   : > { %v8218_v45 = vadd.f32 %v8217_v9, %v8216_v47 }
 0x992   : > { %11690 = vlog2.f32 %v8218_v45 }
 0x99c   : > { %v11691_v57 = vpop.eup %11690 }
 0x99d   : > { %v8220_v25 = vmul.f32 0.6931472, %v11691_v57 }
 0x99f   : > { %v8221_v22 = vadd.f32 %v8220_v25, %v8203_v23 }
 0x9a1   : > { %v8222_v16 = vsub.f32 %v8185_v17, %v8221_v22  ;;  %v8223_v55 = vsub.f32 %v8190_v5, %v8221_v22 }
 0x9a3   : > { %8224 = vst.msk [vmem:[%s332_s13] sm:$0xff] %vm8193_vm14, %v8222_v16 }
 0x9a4   : > { %8225 = vst.msk [vmem:[%s332_s13 + $0x8] sm:$0x3] %vm8195_vm13, %v8223_v55 }
 0x9a5 PF: > { %s19_s30 = sadd.s32 1, %s11698_s30  }
 0x9a6   : > { %p16_p4 = scmp.ge.s32.totalorder %s19_s30, 4  }
 0x9a8   :  { %18 = sbr.rel (!%p16_p4) target bundleno = 1 (0x1), region = 107 }

</bundles_post_ra>
